<compile_context>
chip_gen: v7x
topology: tpu7x:2x2x1
jax: 0.10.0
libtpu: 0.0.40
codegen_flags: <defaults>
</compile_context>

<pallas_src>
import functools

import jax
import jax.numpy as jnp
import numpy as np
from jax import lax
from jax.experimental import pallas as pl
from jax.experimental.pallas import tpu as pltpu


def _is_pow2(x: int) -> bool:
    return x > 0 and (x & (x - 1)) == 0


def _tensorcores_per_device() -> int:
    """Best-effort TensorCore count per Pallas device (heuristic; any failure
    falls back to 1, which is always correct, just collapses the grid)."""
    try:
        kind = jax.devices()[0].device_kind.lower()
    except Exception:
        return 1
    return 2 if any(tag in kind for tag in ("v4", "v5p", "v7")) else 1


def _fused_attention_kernel(bb, ck, scale, stride, img_w, pool_w, n_cells, hw,
                            pool_val, post_scale,
                            feat_ref, wqkv_ref, bqkv_ref, o_ref):
    # feat_ref: (bb, C, H*W) lane-dense features; wqkv_ref: (2Ck+C, C);
    # bqkv_ref: (2Ck+C, 1); o_ref: (bb, C, H*W).
    pow2 = _is_pow2(img_w) and _is_pow2(stride)
    shift_w = img_w.bit_length() - 1
    shift_s = stride.bit_length() - 1

    def block_ids(shape, pixel_dim):
        # pooled-cell id of each flat pixel index along `pixel_dim` of `shape`
        m = lax.broadcasted_iota(jnp.int32, shape, pixel_dim)
        if pow2:  # shifts/masks only (guaranteed cheap VPU lowering)
            row, col = m >> shift_w, m & (img_w - 1)
            return (row >> shift_s) * pool_w + (col >> shift_s)
        row = m // img_w
        col = m - row * img_w
        return (row // stride) * pool_w + (col // stride)

    # ---- Membership matrices generated in-kernel (no HBM read, free layout
    #      choice per matmul).  Values are exactly representable in bf16. -----
    # (HW, N) pooling matrix: contraction on LHS-lane / RHS-sublane (MXU native)
    n_mn = lax.broadcasted_iota(jnp.int32, (hw, n_cells), 1)
    m_pool = jnp.where(n_mn == block_ids((hw, n_cells), 0),
                       pool_val, 0.0).astype(jnp.bfloat16)
    # (N, HW) upsample matrix: natural RHS layout for the lane-dense output
    n_nm = lax.broadcasted_iota(jnp.int32, (n_cells, hw), 0)
    m_up = (n_nm == block_ids((n_cells, hw), 1)).astype(jnp.bfloat16)

    wqkv = wqkv_ref[...]
    bqkv = bqkv_ref[...]

    # bb is a static Python int (1 on multi-TC parallel grid, B on collapsed
    # single-TC grid), so this loop is fully unrolled.
    for b in range(bb):
        feat = feat_ref[b]                                               # (C, HW) f32

        # --- AvgPool2d(stride): bf16 MXU matmul, mean factor folded into M.
        xp = jnp.dot(feat.astype(jnp.bfloat16), m_pool,
                     preferred_element_type=jnp.float32)                 # (C, N)
        if post_scale != 1.0:   # only when 1/(s*s) is not exact in bf16
            xp = xp * post_scale

        # --- fused q/k/v 1x1 convs: one small matmul, then static slices.
        qkv = jnp.dot(wqkv, xp, preferred_element_type=jnp.float32) + bqkv
        q = qkv[:ck] * scale            # key_channel**-0.5 folded into q
        k = qkv[ck:2 * ck]
        v = qkv[2 * ck:]

        # energy[n, m] = sum_o q[o, n] * k[o, m]
        energy = lax.dot_general(q, k, (((0,), (0,)), ((), ())),
                                 preferred_element_type=jnp.float32)     # (N, N)
        # TODO(synk): for large N / HW (small stride, big images) tile the key
        # axis with an online-softmax accumulator and tile HW for the
        # pool/upsample matmuls to stay under v7x's 64 MiB VMEM.
        energy = energy - jnp.max(energy, axis=-1, keepdims=True)
        p = jnp.exp(energy)
        attn = p * pl.reciprocal(jnp.sum(p, axis=-1, keepdims=True), approx=True)

        # out[c, n] = sum_m v[c, m] * attn[n, m]
        small = lax.dot_general(v, attn, (((1,), (1,)), ((), ())),
                                preferred_element_type=jnp.float32)      # (C, N)

        # --- nearest-neighbour upsample + residual add, lane-dense store.
        up = jnp.dot(small.astype(jnp.bfloat16), m_up,
                     preferred_element_type=jnp.float32)                 # (C, HW)
        o_ref[b] = up + feat


def basic_attention_module(features, params, stride):
    B, C, H, W = (int(d) for d in features.shape)
    s = int(stride)
    assert H % s == 0 and W % s == 0, "H and W must be divisible by stride"
    h, w = H // s, W // s
    N = h * w
    HW = H * W
    Ck = int(params["wq"].shape[0])
    Cq = 2 * Ck + C
    scale = float(Ck) ** (-0.5)
    inv_area = 1.0 / float(s * s)

    # Fold the average-pool mean factor into the (bf16) membership matrix only
    # when it is exactly representable (power of two); otherwise scale in f32.
    if _is_pow2(s * s):
        pool_val, post_scale = inv_area, 1.0
    else:
        pool_val, post_scale = 1.0, inv_area

    feat_flat = features.reshape(B, C, HW)

    # Fused q/k/v 1x1-conv parameters: 2 DMAs instead of 6 tiny ones.
    wqkv = jnp.concatenate([params["wq"], params["wk"], params["wv"]], axis=0)   # (Cq, C)
    bqkv = jnp.concatenate([params["bq"].reshape(-1, 1),
                            params["bk"].reshape(-1, 1),
                            params["bv"].reshape(-1, 1)], axis=0)                # (Cq, 1)

    # Grid per generation: collapse to one step on single-TC chips (v5e/v6e),
    # keep a parallel per-batch grid on multi-TC chips (v7x / megacore).
    n_tc = _tensorcores_per_device()
    if n_tc > 1:
        bb = B // n_tc if B % n_tc == 0 else 1
    else:
        bb = B
    grid = (B // bb,)

    kernel = functools.partial(_fused_attention_kernel, bb, Ck, scale, s, W, w,
                               N, HW, pool_val, post_scale)

    flops = int(B * (2 * (C * HW * N + Cq * C * N + Ck * N * N + C * N * N
                          + C * N * HW) + C * HW))
    bytes_accessed = int(4 * (2 * B * C * HW + Cq * C + Cq))

    out_flat = pl.pallas_call(
        kernel,
        out_shape=jax.ShapeDtypeStruct((B, C, HW), jnp.float32),
        grid=grid,
        in_specs=[
            pl.BlockSpec((bb, C, HW), lambda b: (b, 0, 0)),   # features (batch block)
            pl.BlockSpec((Cq, C), lambda b: (0, 0)),          # fused qkv weight
            pl.BlockSpec((Cq, 1), lambda b: (0, 0)),          # fused qkv bias
        ],
        out_specs=pl.BlockSpec((bb, C, HW), lambda b: (b, 0, 0)),
        compiler_params=pltpu.CompilerParams(
            dimension_semantics=("parallel",)),
        cost_estimate=pl.CostEstimate(flops=flops,
                                      transcendentals=int(B * N * N),
                                      bytes_accessed=bytes_accessed),
    )(feat_flat, wqkv, bqkv)

    return out_flat.reshape(B, C, H, W)


def reference(features, params, stride):
    """Pure-JAX reference mirroring the PyTorch forward exactly."""
    B, C, H, W = features.shape
    s = stride
    h, w = H // s, W // s
    Ck = params["wq"].shape[0]
    x = features.reshape(B, C, h, s, w, s).mean(axis=(3, 5))
    xf = x.reshape(B, C, h * w)
    q = jnp.einsum("oc,bcn->bon", params["wq"], xf) + params["bq"].reshape(1, Ck, 1)
    k = jnp.einsum("oc,bcn->bon", params["wk"], xf) + params["bk"].reshape(1, Ck, 1)
    v = jnp.einsum("oc,bcn->bon", params["wv"], xf) + params["bv"].reshape(1, C, 1)
    energy = jnp.einsum("bon,bom->bnm", q, k) * (float(Ck) ** -0.5)
    attn = jax.nn.softmax(energy, axis=-1)
    out = jnp.einsum("bcm,bnm->bcn", v, attn).reshape(B, C, h, w)
    out = jnp.repeat(jnp.repeat(out, s, axis=2), s, axis=3)   # F.interpolate nearest
    return out + features


if __name__ == "__main__":
    key = jax.random.PRNGKey(0)
    B, C, H, W = 2, 32, 32, 32
    stride = 8
    Ck = C // 8

    ks = jax.random.split(key, 8)
    features = jax.random.normal(ks[0], (B, C, H, W), jnp.float32)
    params = dict(
        wq=jax.random.normal(ks[1], (Ck, C), jnp.float32) * 0.1,   # q_conv weight (1x1)
        bq=jax.random.normal(ks[2], (Ck, 1), jnp.float32) * 0.1,   # q_conv bias
        wk=jax.random.normal(ks[3], (Ck, C), jnp.float32) * 0.1,   # k_conv weight (1x1)
        bk=jax.random.normal(ks[4], (Ck, 1), jnp.float32) * 0.1,   # k_conv bias
        wv=jax.random.normal(ks[5], (C, C), jnp.float32) * 0.1,    # v_conv weight (1x1)
        bv=jax.random.normal(ks[6], (C, 1), jnp.float32) * 0.1,    # v_conv bias
        gamma=jnp.zeros((1,), jnp.float32),  # declared in module, unused in forward
    )

    fwd = jax.jit(basic_attention_module, static_argnames="stride")
    out = fwd(features, params, stride=stride)
    out = jax.block_until_ready(out)

    ref = reference(features, params, stride)
    np.testing.assert_allclose(np.asarray(out), np.asarray(ref), rtol=2e-2, atol=2e-2)
    print("KERNEL_OK")
</pallas_src>

<mosaic_0001>
module attributes {stable_mosaic.version = 11 : i64} {
  func.func @_fused_attention_kernel(%arg0: i32, %arg1: memref<2x32x1024xf32, #tpu.memory_space<vmem>>, %arg2: memref<40x32xf32, #tpu.memory_space<vmem>>, %arg3: memref<40x1xf32, #tpu.memory_space<vmem>>, %arg4: memref<2x32x1024xf32, #tpu.memory_space<vmem>>) attributes {dimension_semantics = [#tpu.dimension_semantics<parallel>], iteration_bounds = array<i64: 1>, scalar_prefetch = 0 : i64, scratch_operands = 0 : i64, tpu.core_type = #tpu.core_type<tc>, window_params = [{transform_indices = @transform_0, window_bounds = array<i64: 2, 32, 1024>}, {pipeline_mode = #tpu.pipeline_mode<synchronous>, transform_indices = @transform_1, window_bounds = array<i64: 40, 32>}, {pipeline_mode = #tpu.pipeline_mode<synchronous>, transform_indices = @transform_2, window_bounds = array<i64: 40, 1>}, {transform_indices = @transform_3, window_bounds = array<i64: 2, 32, 1024>}]} {
    %0 = tpu.iota {dimensions = array<i32: 1>} : vector<1024x16xi32>
    %1 = tpu.iota {dimensions = array<i32: 0>} : vector<1024x16xi32>
    %c5_i32 = arith.constant 5 : i32
    %2 = vector.broadcast %c5_i32 : i32 to vector<1024x16xi32>
    %3 = arith.shrsi %1, %2 : vector<1024x16xi32>
    %c31_i32 = arith.constant 31 : i32
    %4 = vector.broadcast %c31_i32 : i32 to vector<1024x16xi32>
    %5 = arith.andi %1, %4 : vector<1024x16xi32>
    %c3_i32 = arith.constant 3 : i32
    %6 = vector.broadcast %c3_i32 : i32 to vector<1024x16xi32>
    %7 = arith.shrsi %3, %6 : vector<1024x16xi32>
    %c4_i32 = arith.constant 4 : i32
    %8 = vector.broadcast %c4_i32 : i32 to vector<1024x16xi32>
    %9 = arith.muli %7, %8 : vector<1024x16xi32>
    %c3_i32_0 = arith.constant 3 : i32
    %10 = vector.broadcast %c3_i32_0 : i32 to vector<1024x16xi32>
    %11 = arith.shrsi %5, %10 : vector<1024x16xi32>
    %12 = arith.addi %9, %11 : vector<1024x16xi32>
    %13 = arith.cmpi eq, %0, %12 : vector<1024x16xi32>
    %cst = arith.constant 1.562500e-02 : f32
    %cst_1 = arith.constant 0.000000e+00 : f32
    %14 = vector.broadcast %cst : f32 to vector<1024x16xf32>
    %15 = vector.broadcast %cst_1 : f32 to vector<1024x16xf32>
    %16 = arith.select %13, %14, %15 : vector<1024x16xi1>, vector<1024x16xf32>
    %17 = arith.truncf %16 : vector<1024x16xf32> to vector<1024x16xbf16>
    %18 = tpu.iota {dimensions = array<i32: 0>} : vector<16x1024xi32>
    %19 = tpu.iota {dimensions = array<i32: 1>} : vector<16x1024xi32>
    %c5_i32_2 = arith.constant 5 : i32
    %20 = vector.broadcast %c5_i32_2 : i32 to vector<16x1024xi32>
    %21 = arith.shrsi %19, %20 : vector<16x1024xi32>
    %c31_i32_3 = arith.constant 31 : i32
    %22 = vector.broadcast %c31_i32_3 : i32 to vector<16x1024xi32>
    %23 = arith.andi %19, %22 : vector<16x1024xi32>
    %c3_i32_4 = arith.constant 3 : i32
    %24 = vector.broadcast %c3_i32_4 : i32 to vector<16x1024xi32>
    %25 = arith.shrsi %21, %24 : vector<16x1024xi32>
    %c4_i32_5 = arith.constant 4 : i32
    %26 = vector.broadcast %c4_i32_5 : i32 to vector<16x1024xi32>
    %27 = arith.muli %25, %26 : vector<16x1024xi32>
    %c3_i32_6 = arith.constant 3 : i32
    %28 = vector.broadcast %c3_i32_6 : i32 to vector<16x1024xi32>
    %29 = arith.shrsi %23, %28 : vector<16x1024xi32>
    %30 = arith.addi %27, %29 : vector<16x1024xi32>
    %31 = arith.cmpi eq, %18, %30 : vector<16x1024xi32>
    %32 = arith.extui %31 : vector<16x1024xi1> to vector<16x1024xi32>
    %33 = arith.sitofp %32 : vector<16x1024xi32> to vector<16x1024xf32>
    %34 = arith.truncf %33 : vector<16x1024xf32> to vector<16x1024xbf16>
    %c0 = arith.constant 0 : index
    %c0_7 = arith.constant 0 : index
    %35 = vector.load %arg2[%c0, %c0_7] : memref<40x32xf32, #tpu.memory_space<vmem>>, vector<40x32xf32>
    %c0_8 = arith.constant 0 : index
    %c0_9 = arith.constant 0 : index
    %36 = vector.load %arg3[%c0_8, %c0_9] : memref<40x1xf32, #tpu.memory_space<vmem>>, vector<40x1xf32>
    %c0_10 = arith.constant 0 : index
    %c0_11 = arith.constant 0 : index
    %c0_12 = arith.constant 0 : index
    %37 = vector.load %arg1[%c0_10, %c0_11, %c0_12] : memref<2x32x1024xf32, #tpu.memory_space<vmem>>, vector<1x32x1024xf32>
    %38 = vector.shape_cast %37 : vector<1x32x1024xf32> to vector<32x1024xf32>
    %39 = arith.truncf %38 : vector<32x1024xf32> to vector<32x1024xbf16>
    %cst_13 = arith.constant dense<0.000000e+00> : vector<32x16xf32>
    %40 = tpu.matmul %39, %17, %cst_13 {dimension_numbers = #tpu.dot_dimension_numbers<[1], [0], [0], [1], [0, 0, 1, 1], [], []>} : vector<32x1024xbf16>, vector<1024x16xbf16>, vector<32x16xf32> -> vector<32x16xf32>
    %cst_14 = arith.constant dense<0.000000e+00> : vector<40x16xf32>
    %41 = tpu.matmul %35, %40, %cst_14 {dimension_numbers = #tpu.dot_dimension_numbers<[1], [0], [0], [1], [0, 0, 1, 1], [], []>} : vector<40x32xf32>, vector<32x16xf32>, vector<40x16xf32> -> vector<40x16xf32>
    %42 = vector.broadcast %36 : vector<40x1xf32> to vector<40x16xf32>
    %43 = arith.addf %41, %42 : vector<40x16xf32>
    %44 = vector.extract_strided_slice %43 {offsets = [0, 0], sizes = [4, 16], strides = [1, 1]} : vector<40x16xf32> to vector<4x16xf32>
    %cst_15 = arith.constant 5.000000e-01 : f32
    %45 = vector.broadcast %cst_15 : f32 to vector<4x16xf32>
    %46 = arith.mulf %44, %45 : vector<4x16xf32>
    %47 = vector.extract_strided_slice %43 {offsets = [4, 0], sizes = [4, 16], strides = [1, 1]} : vector<40x16xf32> to vector<4x16xf32>
    %48 = vector.extract_strided_slice %43 {offsets = [8, 0], sizes = [32, 16], strides = [1, 1]} : vector<40x16xf32> to vector<32x16xf32>
    %cst_16 = arith.constant dense<0.000000e+00> : vector<16x16xf32>
    %49 = tpu.matmul %46, %47, %cst_16 {dimension_numbers = #tpu.dot_dimension_numbers<[0], [0], [1], [1], [0, 1, 1, 1], [], []>} : vector<4x16xf32>, vector<4x16xf32>, vector<16x16xf32> -> vector<16x16xf32>
    %cst_17 = arith.constant dense<0xFF800000> : vector<16xf32>
    %50 = vector.multi_reduction <maximumf>, %49, %cst_17 [1] : vector<16x16xf32> to vector<16xf32>
    %51 = vector.shape_cast %50 : vector<16xf32> to vector<16x1xf32>
    %52 = vector.broadcast %51 : vector<16x1xf32> to vector<16x16xf32>
    %53 = arith.subf %49, %52 : vector<16x16xf32>
    %54 = math.exp %53 : vector<16x16xf32>
    %cst_18 = arith.constant dense<0.000000e+00> : vector<16xf32>
    %55 = vector.multi_reduction <add>, %54, %cst_18 [1] : vector<16x16xf32> to vector<16xf32>
    %56 = vector.shape_cast %55 : vector<16xf32> to vector<16x1xf32>
    %57 = tpu.reciprocal %56 {approx = true} : vector<16x1xf32> -> vector<16x1xf32>
    %58 = vector.broadcast %57 : vector<16x1xf32> to vector<16x16xf32>
    %59 = arith.mulf %54, %58 : vector<16x16xf32>
    %cst_19 = arith.constant dense<0.000000e+00> : vector<32x16xf32>
    %60 = tpu.matmul %48, %59, %cst_19 {dimension_numbers = #tpu.dot_dimension_numbers<[1], [1], [0], [0], [0, 0, 1, 0], [], []>} : vector<32x16xf32>, vector<16x16xf32>, vector<32x16xf32> -> vector<32x16xf32>
    %61 = arith.truncf %60 : vector<32x16xf32> to vector<32x16xbf16>
    %cst_20 = arith.constant dense<0.000000e+00> : vector<32x1024xf32>
    %62 = tpu.matmul %61, %34, %cst_20 {dimension_numbers = #tpu.dot_dimension_numbers<[1], [0], [0], [1], [0, 0, 1, 1], [], []>} : vector<32x16xbf16>, vector<16x1024xbf16>, vector<32x1024xf32> -> vector<32x1024xf32>
    %63 = arith.addf %62, %38 : vector<32x1024xf32>
    %c0_21 = arith.constant 0 : index
    %c0_22 = arith.constant 0 : index
    %c0_23 = arith.constant 0 : index
    %64 = vector.load %arg4[%c0_21, %c0_22, %c0_23] : memref<2x32x1024xf32, #tpu.memory_space<vmem>>, vector<1x32x1024xf32>
    %65 = vector.shape_cast %64 : vector<1x32x1024xf32> to vector<32x1024xf32>
    %66 = vector.shape_cast %63 : vector<32x1024xf32> to vector<1x32x1024xf32>
    tpu.vector_store %arg4[%c0_21, %c0_22, %c0_23], %66 {strides = array<i32>} : memref<2x32x1024xf32, #tpu.memory_space<vmem>>, vector<1x32x1024xf32>,
    %c1 = arith.constant 1 : index
    %c0_24 = arith.constant 0 : index
    %c0_25 = arith.constant 0 : index
    %67 = vector.load %arg1[%c1, %c0_24, %c0_25] : memref<2x32x1024xf32, #tpu.memory_space<vmem>>, vector<1x32x1024xf32>
    %68 = vector.shape_cast %67 : vector<1x32x1024xf32> to vector<32x1024xf32>
    %69 = arith.truncf %68 : vector<32x1024xf32> to vector<32x1024xbf16>
    %cst_26 = arith.constant dense<0.000000e+00> : vector<32x16xf32>
    %70 = tpu.matmul %69, %17, %cst_26 {dimension_numbers = #tpu.dot_dimension_numbers<[1], [0], [0], [1], [0, 0, 1, 1], [], []>} : vector<32x1024xbf16>, vector<1024x16xbf16>, vector<32x16xf32> -> vector<32x16xf32>
    %cst_27 = arith.constant dense<0.000000e+00> : vector<40x16xf32>
    %71 = tpu.matmul %35, %70, %cst_27 {dimension_numbers = #tpu.dot_dimension_numbers<[1], [0], [0], [1], [0, 0, 1, 1], [], []>} : vector<40x32xf32>, vector<32x16xf32>, vector<40x16xf32> -> vector<40x16xf32>
    %72 = vector.broadcast %36 : vector<40x1xf32> to vector<40x16xf32>
    %73 = arith.addf %71, %72 : vector<40x16xf32>
    %74 = vector.extract_strided_slice %73 {offsets = [0, 0], sizes = [4, 16], strides = [1, 1]} : vector<40x16xf32> to vector<4x16xf32>
    %cst_28 = arith.constant 5.000000e-01 : f32
    %75 = vector.broadcast %cst_28 : f32 to vector<4x16xf32>
    %76 = arith.mulf %74, %75 : vector<4x16xf32>
    %77 = vector.extract_strided_slice %73 {offsets = [4, 0], sizes = [4, 16], strides = [1, 1]} : vector<40x16xf32> to vector<4x16xf32>
    %78 = vector.extract_strided_slice %73 {offsets = [8, 0], sizes = [32, 16], strides = [1, 1]} : vector<40x16xf32> to vector<32x16xf32>
    %cst_29 = arith.constant dense<0.000000e+00> : vector<16x16xf32>
    %79 = tpu.matmul %76, %77, %cst_29 {dimension_numbers = #tpu.dot_dimension_numbers<[0], [0], [1], [1], [0, 1, 1, 1], [], []>} : vector<4x16xf32>, vector<4x16xf32>, vector<16x16xf32> -> vector<16x16xf32>
    %cst_30 = arith.constant dense<0xFF800000> : vector<16xf32>
    %80 = vector.multi_reduction <maximumf>, %79, %cst_30 [1] : vector<16x16xf32> to vector<16xf32>
    %81 = vector.shape_cast %80 : vector<16xf32> to vector<16x1xf32>
    %82 = vector.broadcast %81 : vector<16x1xf32> to vector<16x16xf32>
    %83 = arith.subf %79, %82 : vector<16x16xf32>
    %84 = math.exp %83 : vector<16x16xf32>
    %cst_31 = arith.constant dense<0.000000e+00> : vector<16xf32>
    %85 = vector.multi_reduction <add>, %84, %cst_31 [1] : vector<16x16xf32> to vector<16xf32>
    %86 = vector.shape_cast %85 : vector<16xf32> to vector<16x1xf32>
    %87 = tpu.reciprocal %86 {approx = true} : vector<16x1xf32> -> vector<16x1xf32>
    %88 = vector.broadcast %87 : vector<16x1xf32> to vector<16x16xf32>
    %89 = arith.mulf %84, %88 : vector<16x16xf32>
    %cst_32 = arith.constant dense<0.000000e+00> : vector<32x16xf32>
    %90 = tpu.matmul %78, %89, %cst_32 {dimension_numbers = #tpu.dot_dimension_numbers<[1], [1], [0], [0], [0, 0, 1, 0], [], []>} : vector<32x16xf32>, vector<16x16xf32>, vector<32x16xf32> -> vector<32x16xf32>
    %91 = arith.truncf %90 : vector<32x16xf32> to vector<32x16xbf16>
    %cst_33 = arith.constant dense<0.000000e+00> : vector<32x1024xf32>
    %92 = tpu.matmul %91, %34, %cst_33 {dimension_numbers = #tpu.dot_dimension_numbers<[1], [0], [0], [1], [0, 0, 1, 1], [], []>} : vector<32x16xbf16>, vector<16x1024xbf16>, vector<32x1024xf32> -> vector<32x1024xf32>
    %93 = arith.addf %92, %68 : vector<32x1024xf32>
    %c1_34 = arith.constant 1 : index
    %c0_35 = arith.constant 0 : index
    %c0_36 = arith.constant 0 : index
    %94 = vector.load %arg4[%c1_34, %c0_35, %c0_36] : memref<2x32x1024xf32, #tpu.memory_space<vmem>>, vector<1x32x1024xf32>
    %95 = vector.shape_cast %94 : vector<1x32x1024xf32> to vector<32x1024xf32>
    %96 = vector.shape_cast %93 : vector<32x1024xf32> to vector<1x32x1024xf32>
    tpu.vector_store %arg4[%c1_34, %c0_35, %c0_36], %96 {strides = array<i32>} : memref<2x32x1024xf32, #tpu.memory_space<vmem>>, vector<1x32x1024xf32>,
    return
  }
  func.func @transform_0(%arg0: i32) -> (i32, i32, i32) {
    %c0_i32 = arith.constant 0 : i32
    %c0_i32_0 = arith.constant 0 : i32
    %c0_i32_1 = arith.constant 0 : i32
    return %arg0, %c0_i32, %c0_i32_0 : i32, i32, i32
  }
  func.func @transform_1(%arg0: i32) -> (i32, i32) {
    %c0_i32 = arith.constant 0 : i32
    %c0_i32_0 = arith.constant 0 : i32
    %c0_i32_1 = arith.constant 0 : i32
    return %c0_i32, %c0_i32_0 : i32, i32
  }
  func.func @transform_2(%arg0: i32) -> (i32, i32) {
    %c0_i32 = arith.constant 0 : i32
    %c0_i32_0 = arith.constant 0 : i32
    %c0_i32_1 = arith.constant 0 : i32
    return %c0_i32, %c0_i32_0 : i32, i32
  }
  func.func @transform_3(%arg0: i32) -> (i32, i32, i32) {
    %c0_i32 = arith.constant 0 : i32
    %c0_i32_0 = arith.constant 0 : i32
    %c0_i32_1 = arith.constant 0 : i32
    return %arg0, %c0_i32, %c0_i32_0 : i32, i32, i32
  }
}

</mosaic_0001>

<bundles_post_ra>
// kernel: basic_attention_module.1
= control target key start
LH: loop header
LB: loop body
LE: loop exit
PB: predicated region body
PF: predicated region fallthrough
CT: control target
= control target key end

     0   :  { %v15_v0 = vlaneseq  ;;  %v5743_v48 = vmov 0.015625|0.015625   ;;  %s5717_s0 = inlined_call_operand.vmem [shape: f32[2,32,1024], index: 0, kind: input, shape index: {}]   ;;  %s5718_s2 = inlined_call_operand.vmem [shape: f32[40,1], index: 2, kind: input, shape index: {}]   ;;  %s5719_s1 = inlined_call_operand.vmem [shape: f32[40,32], index: 1, kind: input, shape index: {}]   ;;  %s5720_s3 = inlined_call_operand.vmem [shape: f32[2,32,1024], index: 3, kind: output, shape index: {}]  }
   0x1   :  { %v4972_v45 = vld [vmem:[%s5717_s0 + $0x148] sm:$0xff]  ;;  %v4977_v49 = vld [vmem:[%s5717_s0 + $0x118] sm:$0xff] }
   0x2   :  { %v3908_v1 = vshrl.u32 %v15_v0, 7  ;;  %v3910_v2 = vand.u32 127, %v15_v0  ;;  %v4982_v60 = vld [vmem:[%s5717_s0 + $0x158] sm:$0xff] }
   0x4   :  { %v34_v3 = vadd.s32 128, %v3908_v1  ;;  %v35_v4 = vadd.s32 136, %v3908_v1  ;;  %v66_v5 = vadd.s32 384, %v3908_v1  ;;  %v67_v6 = vadd.s32 392, %v3908_v1 }
   0x5   :  { %v3917_v7 = vadd.s32 8, %v3908_v1  ;;  %v146_v8 = vshra.s32 %v3908_v1, 5  ;;  %v274_v9 = vand.u32 31, %v3908_v1  ;;  %v50_v10 = vadd.s32 256, %v3908_v1 }
   0x6   :  { %v162_v11 = vshra.s32 %v34_v3, 5  ;;  %v163_v12 = vshra.s32 %v35_v4, 5  ;;  %v290_v13 = vand.u32 31, %v34_v3  ;;  %v291_v14 = vand.u32 31, %v35_v4 }
   0x7   :  { %v194_v15 = vshra.s32 %v66_v5, 5  ;;  %v195_v16 = vshra.s32 %v67_v6, 5  ;;  %v322_v17 = vand.u32 31, %v66_v5  ;;  %v323_v18 = vand.u32 31, %v67_v6 }
   0x8   :  { %v418_v19 = vshra.s32 %v162_v11, 3  ;;  %v419_v20 = vshra.s32 %v163_v12, 3  ;;  %v674_v21 = vshra.s32 %v290_v13, 3  ;;  %v675_v22 = vshra.s32 %v291_v14, 3 }
   0x9   :  { %v450_v23 = vshra.s32 %v194_v15, 3  ;;  %v451_v24 = vshra.s32 %v195_v16, 3  ;;  %v706_v25 = vshra.s32 %v322_v17, 3  ;;  %v707_v26 = vshra.s32 %v323_v18, 3 }
   0xa   :  { %v546_v27 = vmul.u32 4, %v418_v19  ;;  %v547_v28 = vmul.u32 4, %v419_v20  ;;  %v147_v29 = vshra.s32 %v3917_v7, 5  ;;  %v275_v30 = vand.u32 31, %v3917_v7 }
   0xb   :  { %v578_v31 = vmul.u32 4, %v450_v23  ;;  %v579_v32 = vmul.u32 4, %v451_v24  ;;  %v402_v33 = vshra.s32 %v146_v8, 3  ;;  %v658_v34 = vshra.s32 %v274_v9, 3 }
   0xc   :  { %v802_v35 = vadd.s32 %v674_v21, %v546_v27  ;;  %v803_v36 = vadd.s32 %v675_v22, %v547_v28  ;;  %v403_v37 = vshra.s32 %v147_v29, 3  ;;  %v659_v38 = vshra.s32 %v275_v30, 3 }
   0xd   :  { %v834_v39 = vadd.s32 %v706_v25, %v578_v31  ;;  %v835_v40 = vadd.s32 %v707_v26, %v579_v32  ;;  %v530_v41 = vmul.u32 4, %v402_v33  ;;  %v51_v42 = vadd.s32 264, %v3908_v1 }
   0xe   :  { %vm930_vm0 = vcmp.eq.s32.totalorder %v3910_v2, %v802_v35  ;;  %vm931_vm1 = vcmp.eq.s32.totalorder %v3910_v2, %v803_v36  ;;  %v531_v43 = vmul.u32 4, %v403_v37  ;;  %v178_v44 = vshra.s32 %v50_v10, 5 }
   0xf   :  { %vm3927_vm2 = vmpackc.low %vm931_vm1, %vm930_vm0  ;;  %vm962_vm3 = vcmp.eq.s32.totalorder %v3910_v2, %v834_v39  ;;  %vm963_vm4 = vcmp.eq.s32.totalorder %v3910_v2, %v835_v40  ;;  %v786_v46 = vadd.s32 %v658_v34, %v530_v41  ;;  %v179_v47 = vshra.s32 %v51_v42, 5 }
  0x10   :  { %3475 = vmatprep.subr.msk.bf16.mxu0 %vm3927_vm2, %v5743_v48  ;;  %vm3936_vm5 = vmpackc.low %vm963_vm4, %vm962_vm3  ;;  %v787_v50 = vadd.s32 %v659_v38, %v531_v43  ;;  %v306_v51 = vand.u32 31, %v50_v10  ;;  %v307_v52 = vand.u32 31, %v51_v42  ;;  %v434_v53 = vshra.s32 %v178_v44, 3  ;;  %v5053_v44 = vld [vmem:[%s5717_s0 + $0x100] sm:$0xff] }
  0x11   :  { %3503 = vmatprep.subr.msk.bf16.mxu1 %vm3936_vm5, %v5743_v48  ;;  %vm914_vm6 = vcmp.eq.s32.totalorder %v3910_v2, %v786_v46  ;;  %v435_v54 = vshra.s32 %v179_v47, 3  ;;  %v36_v55 = vadd.s32 144, %v3908_v1  ;;  %v37_v56 = vadd.s32 152, %v3908_v1 }
  0x12   :  { %vm915_vm7 = vcmp.eq.s32.totalorder %v3910_v2, %v787_v50  ;;  %v562_v57 = vmul.u32 4, %v434_v53  ;;  %v690_v58 = vshra.s32 %v306_v51, 3  ;;  %v691_v59 = vshra.s32 %v307_v52, 3 }
  0x13   :  { %vm3947_vm8 = vmpackc.low %vm915_vm7, %vm914_vm6  ;;  %v563_v61 = vmul.u32 4, %v435_v54  ;;  %v164_v62 = vshra.s32 %v36_v55, 5  ;;  %v165_v63 = vshra.s32 %v37_v56, 5  ;;  %v292_v0 = vand.u32 31, %v36_v55 }
  0x14   :  { %3476 = vmatpush3.bf16.msk.msra.mxu0 %vm3947_vm8, %v5743_v48  ;;  %v818_v3 = vadd.s32 %v690_v58, %v562_v57  ;;  %v293_v4 = vand.u32 31, %v37_v56  ;;  %v68_v5 = vadd.s32 400, %v3908_v1  ;;  %v69_v6 = vadd.s32 408, %v3908_v1 }
  0x15   :  { %v819_v8 = vadd.s32 %v691_v59, %v563_v61  ;;  %v420_v9 = vshra.s32 %v164_v62, 3  ;;  %v421_v10 = vshra.s32 %v165_v63, 3  ;;  %v676_v11 = vshra.s32 %v292_v0, 3 }
  0x16   :  { %vm946_vm9 = vcmp.eq.s32.totalorder %v3910_v2, %v818_v3  ;;  %v677_v12 = vshra.s32 %v293_v4, 3  ;;  %v196_v13 = vshra.s32 %v68_v5, 5  ;;  %v197_v14 = vshra.s32 %v69_v6, 5 }
  0x17   :  { %vm947_vm10 = vcmp.eq.s32.totalorder %v3910_v2, %v819_v8  ;;  %v548_v15 = vmul.u32 4, %v420_v9  ;;  %v549_v16 = vmul.u32 4, %v421_v10  ;;  %v324_v17 = vand.u32 31, %v68_v5  ;;  %v5064_v5 = vld [vmem:[%s5717_s0 + $0x140] sm:$0xff] }
  0x18   :  { %vm3958_vm11 = vmpackc.low %vm947_vm10, %vm946_vm9  ;;  %v325_v19 = vand.u32 31, %v69_v6  ;;  %v452_v20 = vshra.s32 %v196_v13, 3  ;;  %v453_v21 = vshra.s32 %v197_v14, 3  ;;  %v20_v22 = vadd.s32 16, %v3908_v1 }
  0x19   :  { %3504 = vmatpush3.bf16.msk.msra.mxu1 %vm3958_vm11, %v5743_v48  ;;  %v804_v23 = vadd.s32 %v676_v11, %v548_v15  ;;  %v805_v24 = vadd.s32 %v677_v12, %v549_v16  ;;  %v708_v25 = vshra.s32 %v324_v17, 3  ;;  %v21_v26 = vadd.s32 24, %v3908_v1 }
  0x1a   :  { %v580_v27 = vmul.u32 4, %v452_v20  ;;  %v581_v28 = vmul.u32 4, %v453_v21  ;;  %v709_v29 = vshra.s32 %v325_v19, 3  ;;  %v148_v30 = vshra.s32 %v20_v22, 5 }
  0x1b   :  { %vm932_vm12 = vcmp.eq.s32.totalorder %v3910_v2, %v804_v23  ;;  %vm933_vm13 = vcmp.eq.s32.totalorder %v3910_v2, %v805_v24  ;;  %v149_v31 = vshra.s32 %v21_v26, 5  ;;  %v276_v32 = vand.u32 31, %v20_v22  ;;  %v5069_v22 = vld [vmem:[%s5717_s0 + $0x110] sm:$0xff] }
  0x1c   :  { %vm3969_vm14 = vmpackc.low %vm933_vm13, %vm932_vm12  ;;  %v836_v34 = vadd.s32 %v708_v25, %v580_v27  ;;  %v837_v35 = vadd.s32 %v709_v29, %v581_v28  ;;  %v277_v36 = vand.u32 31, %v21_v26  ;;  %v404_v37 = vshra.s32 %v148_v30, 3 }
  0x1d   :  { %3477 = vmatprep.subr.msk.bf16.mxu0 %vm3969_vm14, %v5743_v48  ;;  %v405_v38 = vshra.s32 %v149_v31, 3  ;;  %v660_v39 = vshra.s32 %v276_v32, 3  ;;  %v52_v40 = vadd.s32 272, %v3908_v1  ;;  %v53_v41 = vadd.s32 280, %v3908_v1 }
  0x1e   :  { %vm964_vm15 = vcmp.eq.s32.totalorder %v3910_v2, %v836_v34  ;;  %vm965_vm0 = vcmp.eq.s32.totalorder %v3910_v2, %v837_v35  ;;  %v532_v42 = vmul.u32 4, %v404_v37  ;;  %v661_v43 = vshra.s32 %v277_v36, 3 }
  0x1f   :  { %vm3980_vm1 = vmpackc.low %vm965_vm0, %vm964_vm15  ;;  %v533_v46 = vmul.u32 4, %v405_v38  ;;  %v180_v47 = vshra.s32 %v52_v40, 5  ;;  %v181_v50 = vshra.s32 %v53_v41, 5  ;;  %v308_v51 = vand.u32 31, %v52_v40 }
  0x20   :  { %3505 = vmatprep.subr.msk.bf16.mxu1 %vm3980_vm1, %v5743_v48  ;;  %v788_v52 = vadd.s32 %v660_v39, %v532_v42  ;;  %v309_v53 = vand.u32 31, %v53_v41  ;;  %v38_v54 = vadd.s32 160, %v3908_v1  ;;  %v39_v55 = vadd.s32 168, %v3908_v1 }
  0x21   :  { %v789_v56 = vadd.s32 %v661_v43, %v533_v46  ;;  %v436_v57 = vshra.s32 %v180_v47, 3  ;;  %v437_v58 = vshra.s32 %v181_v50, 3  ;;  %v692_v59 = vshra.s32 %v308_v51, 3 }
  0x22   :  { %vm916_vm3 = vcmp.eq.s32.totalorder %v3910_v2, %v788_v52  ;;  %v693_v61 = vshra.s32 %v309_v53, 3  ;;  %v166_v62 = vshra.s32 %v38_v54, 5  ;;  %v167_v63 = vshra.s32 %v39_v55, 5 }
  0x23   :  { %vm917_vm4 = vcmp.eq.s32.totalorder %v3910_v2, %v789_v56  ;;  %v564_v0 = vmul.u32 4, %v436_v57  ;;  %v565_v3 = vmul.u32 4, %v437_v58  ;;  %v294_v4 = vand.u32 31, %v38_v54 }
  0x24   :  { %vm3991_vm6 = vmpackc.low %vm917_vm4, %vm916_vm3  ;;  %v295_v6 = vand.u32 31, %v39_v55  ;;  %v422_v8 = vshra.s32 %v166_v62, 3  ;;  %v423_v9 = vshra.s32 %v167_v63, 3  ;;  %v70_v10 = vadd.s32 416, %v3908_v1 }
  0x25   :  { %3478 = vmatpush3.bf16.msk.msra.mxu0 %vm3991_vm6, %v5743_v48  ;;  %v820_v11 = vadd.s32 %v692_v59, %v564_v0  ;;  %v821_v12 = vadd.s32 %v693_v61, %v565_v3  ;;  %v678_v13 = vshra.s32 %v294_v4, 3  ;;  %v71_v14 = vadd.s32 424, %v3908_v1 }
  0x26   :  { %v550_v15 = vmul.u32 4, %v422_v8  ;;  %v551_v16 = vmul.u32 4, %v423_v9  ;;  %v679_v17 = vshra.s32 %v295_v6, 3  ;;  %v198_v19 = vshra.s32 %v70_v10, 5 }
  0x27   :  { %vm948_vm7 = vcmp.eq.s32.totalorder %v3910_v2, %v820_v11  ;;  %vm949_vm9 = vcmp.eq.s32.totalorder %v3910_v2, %v821_v12  ;;  %v199_v20 = vshra.s32 %v71_v14, 5  ;;  %v326_v21 = vand.u32 31, %v70_v10 }
  0x28   :  { %vm4002_vm10 = vmpackc.low %vm949_vm9, %vm948_vm7  ;;  %v806_v23 = vadd.s32 %v678_v13, %v550_v15  ;;  %v807_v24 = vadd.s32 %v679_v17, %v551_v16  ;;  %v327_v25 = vand.u32 31, %v71_v14  ;;  %v454_v26 = vshra.s32 %v198_v19, 3 }
  0x29   :  { %3506 = vmatpush3.bf16.msk.msra.mxu1 %vm4002_vm10, %v5743_v48  ;;  %v455_v27 = vshra.s32 %v199_v20, 3  ;;  %v710_v28 = vshra.s32 %v326_v21, 3  ;;  %v22_v29 = vadd.s32 32, %v3908_v1  ;;  %v23_v30 = vadd.s32 40, %v3908_v1 }
  0x2a   :  { %vm934_vm12 = vcmp.eq.s32.totalorder %v3910_v2, %v806_v23  ;;  %vm935_vm13 = vcmp.eq.s32.totalorder %v3910_v2, %v807_v24  ;;  %v582_v31 = vmul.u32 4, %v454_v26  ;;  %v711_v32 = vshra.s32 %v327_v25, 3 }
  0x2b   :  { %vm4013_vm15 = vmpackc.low %vm935_vm13, %vm934_vm12  ;;  %v5878_v34 = vmov 0  ;;  %v583_v35 = vmul.u32 4, %v455_v27  ;;  %v150_v36 = vshra.s32 %v22_v29, 5  ;;  %v151_v37 = vshra.s32 %v23_v30, 5 }
  0x2c   :  { %v5879_v34 = vsel %vm4013_vm15, 4294967295, %v5878_v34  ;;  %v278_v38 = vand.u32 31, %v22_v29  ;;  %3479 = vmatprep.subr.msk.bf16.mxu0 %vm4013_vm15, %v5743_v48  ;;  %v838_v39 = vadd.s32 %v710_v28, %v582_v31  ;;  %v279_v40 = vand.u32 31, %v23_v30 }
  0x2d   :  { %v54_v41 = vadd.s32 288, %v3908_v1  ;;  %v55_v42 = vadd.s32 296, %v3908_v1  ;;  %v839_v43 = vadd.s32 %v711_v32, %v583_v35  ;;  %v406_v46 = vshra.s32 %v150_v36, 3 }
  0x2e   :  { %v407_v47 = vshra.s32 %v151_v37, 3  ;;  %v662_v50 = vshra.s32 %v278_v38, 3  ;;  %vm966_vm0 = vcmp.eq.s32.totalorder %v3910_v2, %v838_v39  ;;  %v663_v51 = vshra.s32 %v279_v40, 3 }
  0x2f   :  { %v182_v52 = vshra.s32 %v54_v41, 5  ;;  %v183_v53 = vshra.s32 %v55_v42, 5  ;;  %vm967_vm3 = vcmp.eq.s32.totalorder %v3910_v2, %v839_v43  ;;  %v534_v54 = vmul.u32 4, %v406_v46 }
  0x30   :  { %v535_v55 = vmul.u32 4, %v407_v47  ;;  %v310_v56 = vand.u32 31, %v54_v41  ;;  %vm4024_vm4 = vmpackc.low %vm967_vm3, %vm966_vm0  ;;  %v5880_v57 = vmov 0  ;;  %v311_v58 = vand.u32 31, %v55_v42 }
  0x31   :  { %v5881_v57 = vsel %vm4024_vm4, 4294967295, %v5880_v57  ;;  %v438_v59 = vshra.s32 %v182_v52, 3  ;;  %v439_v61 = vshra.s32 %v183_v53, 3  ;;  %v40_v62 = vadd.s32 176, %v3908_v1  ;;  %3507 = vmatprep.subr.msk.bf16.mxu1 %vm4024_vm4, %v5743_v48 }
  0x32   :  { %v790_v63 = vadd.s32 %v662_v50, %v534_v54  ;;  %v791_v0 = vadd.s32 %v663_v51, %v535_v55  ;;  %v694_v3 = vshra.s32 %v310_v56, 3  ;;  %v41_v4 = vadd.s32 184, %v3908_v1 }
  0x33   :  { %v566_v6 = vmul.u32 4, %v438_v59  ;;  %v567_v8 = vmul.u32 4, %v439_v61  ;;  %v695_v9 = vshra.s32 %v311_v58, 3  ;;  %v168_v10 = vshra.s32 %v40_v62, 5 }
  0x34   :  { %vm918_vm7 = vcmp.eq.s32.totalorder %v3910_v2, %v790_v63  ;;  %vm919_vm9 = vcmp.eq.s32.totalorder %v3910_v2, %v791_v0  ;;  %v169_v11 = vshra.s32 %v41_v4, 5  ;;  %v296_v12 = vand.u32 31, %v40_v62 }
  0x35   :  { %vm4035_vm12 = vmpackc.low %vm919_vm9, %vm918_vm7  ;;  %v5882_v13 = vmov 0  ;;  %v822_v14 = vadd.s32 %v694_v3, %v566_v6  ;;  %v823_v15 = vadd.s32 %v695_v9, %v567_v8  ;;  %v297_v16 = vand.u32 31, %v41_v4 }
  0x36   :  { %v5883_v13 = vsel %vm4035_vm12, 4294967295, %v5882_v13  ;;  %v424_v17 = vshra.s32 %v168_v10, 3  ;;  %3480 = vmatpush3.bf16.msk.msra.mxu0 %vm4035_vm12, %v5743_v48  ;;  %v425_v19 = vshra.s32 %v169_v11, 3  ;;  %v680_v20 = vshra.s32 %v296_v12, 3 }
  0x37   :  { %v72_v21 = vadd.s32 432, %v3908_v1  ;;  %v73_v23 = vadd.s32 440, %v3908_v1  ;;  %vm950_vm13 = vcmp.eq.s32.totalorder %v3910_v2, %v822_v14  ;;  %vm951_vm0 = vcmp.eq.s32.totalorder %v3910_v2, %v823_v15 }
  0x38   :  { %v552_v24 = vmul.u32 4, %v424_v17  ;;  %v681_v25 = vshra.s32 %v297_v16, 3  ;;  %vm4046_vm3 = vmpackc.low %vm951_vm0, %vm950_vm13  ;;  %v5884_v26 = vmov 0  ;;  %v553_v27 = vmul.u32 4, %v425_v19 }
  0x39   :  { %v5885_v26 = vsel %vm4046_vm3, 4294967295, %v5884_v26  ;;  %v200_v28 = vshra.s32 %v72_v21, 5  ;;  %v201_v29 = vshra.s32 %v73_v23, 5  ;;  %v328_v30 = vand.u32 31, %v72_v21  ;;  %3508 = vmatpush3.bf16.msk.msra.mxu1 %vm4046_vm3, %v5743_v48 }
  0x3a   :  { %v808_v31 = vadd.s32 %v680_v20, %v552_v24  ;;  %v329_v32 = vand.u32 31, %v73_v23  ;;  %v24_v35 = vadd.s32 48, %v3908_v1  ;;  %v25_v36 = vadd.s32 56, %v3908_v1 }
  0x3b   :  { %v809_v37 = vadd.s32 %v681_v25, %v553_v27  ;;  %v456_v38 = vshra.s32 %v200_v28, 3  ;;  %v457_v39 = vshra.s32 %v201_v29, 3  ;;  %v712_v40 = vshra.s32 %v328_v30, 3 }
  0x3c   :  { %vm936_vm7 = vcmp.eq.s32.totalorder %v3910_v2, %v808_v31  ;;  %v713_v41 = vshra.s32 %v329_v32, 3  ;;  %v152_v42 = vshra.s32 %v24_v35, 5  ;;  %v153_v43 = vshra.s32 %v25_v36, 5 }
  0x3d   :  { %vm937_vm9 = vcmp.eq.s32.totalorder %v3910_v2, %v809_v37  ;;  %v584_v46 = vmul.u32 4, %v456_v38  ;;  %v585_v47 = vmul.u32 4, %v457_v39  ;;  %v280_v50 = vand.u32 31, %v24_v35 }
  0x3e   :  { %vm4057_vm13 = vmpackc.low %vm937_vm9, %vm936_vm7  ;;  %v5886_v51 = vmov 0  ;;  %v281_v52 = vand.u32 31, %v25_v36  ;;  %v408_v53 = vshra.s32 %v152_v42, 3  ;;  %v409_v54 = vshra.s32 %v153_v43, 3 }
  0x3f   :  { %v5887_v51 = vsel %vm4057_vm13, 4294967295, %v5886_v51  ;;  %v56_v55 = vadd.s32 304, %v3908_v1  ;;  %3481 = vmatprep.subr.msk.bf16.mxu0 %vm4057_vm13, %v5743_v48  ;;  %v840_v56 = vadd.s32 %v712_v40, %v584_v46  ;;  %v841_v58 = vadd.s32 %v713_v41, %v585_v47 }
  0x40   :  { %v664_v59 = vshra.s32 %v280_v50, 3  ;;  %v57_v61 = vadd.s32 312, %v3908_v1  ;;  %v536_v62 = vmul.u32 4, %v408_v53  ;;  %v537_v63 = vmul.u32 4, %v409_v54 }
  0x41   :  { %v665_v0 = vshra.s32 %v281_v52, 3  ;;  %v184_v3 = vshra.s32 %v56_v55, 5  ;;  %vm968_vm0 = vcmp.eq.s32.totalorder %v3910_v2, %v840_v56  ;;  %vm969_vm7 = vcmp.eq.s32.totalorder %v3910_v2, %v841_v58 }
  0x42   :  { %v185_v4 = vshra.s32 %v57_v61, 5  ;;  %v312_v6 = vand.u32 31, %v56_v55  ;;  %vm4068_vm9 = vmpackc.low %vm969_vm7, %vm968_vm0  ;;  %v5888_v8 = vmov 0  ;;  %v792_v9 = vadd.s32 %v664_v59, %v536_v62 }
  0x43   :  { %v5889_v8 = vsel %vm4068_vm9, 4294967295, %v5888_v8  ;;  %v793_v10 = vadd.s32 %v665_v0, %v537_v63  ;;  %v313_v11 = vand.u32 31, %v57_v61  ;;  %v440_v12 = vshra.s32 %v184_v3, 3  ;;  %3509 = vmatprep.subr.msk.bf16.mxu1 %vm4068_vm9, %v5743_v48 }
  0x44   :  { %v441_v14 = vshra.s32 %v185_v4, 3  ;;  %v696_v15 = vshra.s32 %v312_v6, 3  ;;  %v42_v16 = vadd.s32 192, %v3908_v1  ;;  %v43_v17 = vadd.s32 200, %v3908_v1 }
  0x45   :  { %vm920_vm13 = vcmp.eq.s32.totalorder %v3910_v2, %v792_v9  ;;  %vm921_vm0 = vcmp.eq.s32.totalorder %v3910_v2, %v793_v10  ;;  %v568_v19 = vmul.u32 4, %v440_v12  ;;  %v697_v20 = vshra.s32 %v313_v11, 3 }
  0x46   :  { %vm4079_vm7 = vmpackc.low %vm921_vm0, %vm920_vm13  ;;  %v5890_v21 = vmov 0  ;;  %v569_v23 = vmul.u32 4, %v441_v14  ;;  %v170_v24 = vshra.s32 %v42_v16, 5  ;;  %v171_v25 = vshra.s32 %v43_v17, 5 }
  0x47   :  { %v5891_v21 = vsel %vm4079_vm7, 4294967295, %v5890_v21  ;;  %v298_v27 = vand.u32 31, %v42_v16  ;;  %3482 = vmatpush3.bf16.msk.msra.mxu0 %vm4079_vm7, %v5743_v48  ;;  %v824_v28 = vadd.s32 %v696_v15, %v568_v19  ;;  %v299_v29 = vand.u32 31, %v43_v17 }
  0x48   :  { %v74_v30 = vadd.s32 448, %v3908_v1  ;;  %v75_v31 = vadd.s32 456, %v3908_v1  ;;  %v825_v32 = vadd.s32 %v697_v20, %v569_v23  ;;  %v426_v35 = vshra.s32 %v170_v24, 3 }
  0x49   :  { %v427_v36 = vshra.s32 %v171_v25, 3  ;;  %v682_v37 = vshra.s32 %v298_v27, 3  ;;  %vm952_vm13 = vcmp.eq.s32.totalorder %v3910_v2, %v824_v28  ;;  %v683_v38 = vshra.s32 %v299_v29, 3 }
  0x4a   :  { %v202_v39 = vshra.s32 %v74_v30, 5  ;;  %v203_v40 = vshra.s32 %v75_v31, 5  ;;  %vm953_vm0 = vcmp.eq.s32.totalorder %v3910_v2, %v825_v32  ;;  %v554_v41 = vmul.u32 4, %v426_v35 }
  0x4b   :  { %v555_v42 = vmul.u32 4, %v427_v36  ;;  %v330_v43 = vand.u32 31, %v74_v30  ;;  %vm4090_vm7 = vmpackc.low %vm953_vm0, %vm952_vm13  ;;  %v5892_v46 = vmov 0  ;;  %v331_v47 = vand.u32 31, %v75_v31 }
  0x4c   :  { %v5893_v46 = vsel %vm4090_vm7, 4294967295, %v5892_v46  ;;  %v458_v50 = vshra.s32 %v202_v39, 3  ;;  %v459_v52 = vshra.s32 %v203_v40, 3  ;;  %v26_v53 = vadd.s32 64, %v3908_v1  ;;  %3510 = vmatpush3.bf16.msk.msra.mxu1 %vm4090_vm7, %v5743_v48 }
  0x4d   :  { %v810_v54 = vadd.s32 %v682_v37, %v554_v41  ;;  %v811_v55 = vadd.s32 %v683_v38, %v555_v42  ;;  %v714_v56 = vshra.s32 %v330_v43, 3  ;;  %v27_v58 = vadd.s32 72, %v3908_v1 }
  0x4e   :  { %v586_v59 = vmul.u32 4, %v458_v50  ;;  %v587_v61 = vmul.u32 4, %v459_v52  ;;  %v715_v62 = vshra.s32 %v331_v47, 3  ;;  %v154_v63 = vshra.s32 %v26_v53, 5 }
  0x4f   :  { %vm938_vm13 = vcmp.eq.s32.totalorder %v3910_v2, %v810_v54  ;;  %vm939_vm0 = vcmp.eq.s32.totalorder %v3910_v2, %v811_v55  ;;  %v155_v0 = vshra.s32 %v27_v58, 5  ;;  %v282_v3 = vand.u32 31, %v26_v53 }
  0x50   :  { %vm4101_vm9 = vmpackc.low %vm939_vm0, %vm938_vm13  ;;  %v5894_v4 = vmov 0  ;;  %v842_v6 = vadd.s32 %v714_v56, %v586_v59  ;;  %v843_v9 = vadd.s32 %v715_v62, %v587_v61  ;;  %v283_v10 = vand.u32 31, %v27_v58 }
  0x51   :  { %v5895_v4 = vsel %vm4101_vm9, 4294967295, %v5894_v4  ;;  %v410_v11 = vshra.s32 %v154_v63, 3  ;;  %3483 = vmatprep.subr.msk.bf16.mxu0 %vm4101_vm9, %v5743_v48  ;;  %v411_v12 = vshra.s32 %v155_v0, 3  ;;  %v666_v14 = vshra.s32 %v282_v3, 3 }
  0x52   :  { %v58_v15 = vadd.s32 320, %v3908_v1  ;;  %v59_v16 = vadd.s32 328, %v3908_v1  ;;  %vm970_vm7 = vcmp.eq.s32.totalorder %v3910_v2, %v842_v6  ;;  %vm971_vm13 = vcmp.eq.s32.totalorder %v3910_v2, %v843_v9 }
  0x53   :  { %v538_v17 = vmul.u32 4, %v410_v11  ;;  %v667_v19 = vshra.s32 %v283_v10, 3  ;;  %vm4112_vm0 = vmpackc.low %vm971_vm13, %vm970_vm7  ;;  %v5896_v20 = vmov 0  ;;  %v539_v23 = vmul.u32 4, %v411_v12 }
  0x54   :  { %v5897_v20 = vsel %vm4112_vm0, 4294967295, %v5896_v20  ;;  %v186_v24 = vshra.s32 %v58_v15, 5  ;;  %v187_v25 = vshra.s32 %v59_v16, 5  ;;  %v314_v27 = vand.u32 31, %v58_v15  ;;  %3511 = vmatprep.subr.msk.bf16.mxu1 %vm4112_vm0, %v5743_v48 }
  0x55   :  { %v794_v28 = vadd.s32 %v666_v14, %v538_v17  ;;  %v315_v29 = vand.u32 31, %v59_v16  ;;  %v44_v30 = vadd.s32 208, %v3908_v1  ;;  %v45_v31 = vadd.s32 216, %v3908_v1 }
  0x56   :  { %v795_v32 = vadd.s32 %v667_v19, %v539_v23  ;;  %v442_v35 = vshra.s32 %v186_v24, 3  ;;  %v443_v36 = vshra.s32 %v187_v25, 3  ;;  %v698_v37 = vshra.s32 %v314_v27, 3 }
  0x57   :  { %vm922_vm7 = vcmp.eq.s32.totalorder %v3910_v2, %v794_v28  ;;  %v699_v38 = vshra.s32 %v315_v29, 3  ;;  %v172_v39 = vshra.s32 %v44_v30, 5  ;;  %v173_v40 = vshra.s32 %v45_v31, 5 }
  0x58   :  { %vm923_vm13 = vcmp.eq.s32.totalorder %v3910_v2, %v795_v32  ;;  %v570_v41 = vmul.u32 4, %v442_v35  ;;  %v571_v42 = vmul.u32 4, %v443_v36  ;;  %v300_v43 = vand.u32 31, %v44_v30 }
  0x59   :  { %vm4123_vm0 = vmpackc.low %vm923_vm13, %vm922_vm7  ;;  %v5898_v47 = vmov 0  ;;  %v301_v50 = vand.u32 31, %v45_v31  ;;  %v428_v52 = vshra.s32 %v172_v39, 3  ;;  %v429_v53 = vshra.s32 %v173_v40, 3 }
  0x5a   :  { %v5899_v47 = vsel %vm4123_vm0, 4294967295, %v5898_v47  ;;  %v76_v54 = vadd.s32 464, %v3908_v1  ;;  %3484 = vmatpush3.bf16.msk.msra.mxu0 %vm4123_vm0, %v5743_v48  ;;  %v826_v55 = vadd.s32 %v698_v37, %v570_v41  ;;  %v827_v56 = vadd.s32 %v699_v38, %v571_v42 }
  0x5b   :  { %v684_v58 = vshra.s32 %v300_v43, 3  ;;  %v77_v59 = vadd.s32 472, %v3908_v1  ;;  %v556_v61 = vmul.u32 4, %v428_v52  ;;  %v557_v62 = vmul.u32 4, %v429_v53 }
  0x5c   :  { %v685_v63 = vshra.s32 %v301_v50, 3  ;;  %v204_v0 = vshra.s32 %v76_v54, 5  ;;  %vm954_vm7 = vcmp.eq.s32.totalorder %v3910_v2, %v826_v55  ;;  %vm955_vm13 = vcmp.eq.s32.totalorder %v3910_v2, %v827_v56 }
  0x5d   :  { %v205_v3 = vshra.s32 %v77_v59, 5  ;;  %v332_v6 = vand.u32 31, %v76_v54  ;;  %vm4134_vm9 = vmpackc.low %vm955_vm13, %vm954_vm7  ;;  %v5900_v9 = vmov 0  ;;  %v812_v10 = vadd.s32 %v684_v58, %v556_v61 }
  0x5e   :  { %v5901_v9 = vsel %vm4134_vm9, 4294967295, %v5900_v9  ;;  %v813_v11 = vadd.s32 %v685_v63, %v557_v62  ;;  %v333_v12 = vand.u32 31, %v77_v59  ;;  %v460_v14 = vshra.s32 %v204_v0, 3  ;;  %3512 = vmatpush3.bf16.msk.msra.mxu1 %vm4134_vm9, %v5743_v48 }
  0x5f   :  { %v461_v15 = vshra.s32 %v205_v3, 3  ;;  %v716_v16 = vshra.s32 %v332_v6, 3  ;;  %v28_v17 = vadd.s32 80, %v3908_v1  ;;  %v29_v19 = vadd.s32 88, %v3908_v1 }
  0x60   :  { %vm940_vm0 = vcmp.eq.s32.totalorder %v3910_v2, %v812_v10  ;;  %vm941_vm7 = vcmp.eq.s32.totalorder %v3910_v2, %v813_v11  ;;  %v588_v23 = vmul.u32 4, %v460_v14  ;;  %v717_v24 = vshra.s32 %v333_v12, 3 }
  0x61   :  { %vm4145_vm13 = vmpackc.low %vm941_vm7, %vm940_vm0  ;;  %v5902_v25 = vmov 0  ;;  %v589_v27 = vmul.u32 4, %v461_v15  ;;  %v156_v28 = vshra.s32 %v28_v17, 5  ;;  %v157_v29 = vshra.s32 %v29_v19, 5 }
  0x62   :  { %v5903_v25 = vsel %vm4145_vm13, 4294967295, %v5902_v25  ;;  %v284_v30 = vand.u32 31, %v28_v17  ;;  %3485 = vmatprep.subr.msk.bf16.mxu0 %vm4145_vm13, %v5743_v48  ;;  %v844_v31 = vadd.s32 %v716_v16, %v588_v23  ;;  %v285_v32 = vand.u32 31, %v29_v19 }
  0x63   :  { %v60_v35 = vadd.s32 336, %v3908_v1  ;;  %v61_v36 = vadd.s32 344, %v3908_v1  ;;  %v845_v37 = vadd.s32 %v717_v24, %v589_v27  ;;  %v412_v38 = vshra.s32 %v156_v28, 3 }
  0x64   :  { %v413_v39 = vshra.s32 %v157_v29, 3  ;;  %v668_v40 = vshra.s32 %v284_v30, 3  ;;  %vm972_vm0 = vcmp.eq.s32.totalorder %v3910_v2, %v844_v31  ;;  %v669_v41 = vshra.s32 %v285_v32, 3 }
  0x65   :  { %v188_v42 = vshra.s32 %v60_v35, 5  ;;  %v189_v43 = vshra.s32 %v61_v36, 5  ;;  %vm973_vm7 = vcmp.eq.s32.totalorder %v3910_v2, %v845_v37  ;;  %v540_v50 = vmul.u32 4, %v412_v38 }
  0x66   :  { %v541_v52 = vmul.u32 4, %v413_v39  ;;  %v316_v53 = vand.u32 31, %v60_v35  ;;  %vm4156_vm13 = vmpackc.low %vm973_vm7, %vm972_vm0  ;;  %v5904_v54 = vmov 0  ;;  %v317_v55 = vand.u32 31, %v61_v36 }
  0x67   :  { %v5905_v54 = vsel %vm4156_vm13, 4294967295, %v5904_v54  ;;  %v444_v56 = vshra.s32 %v188_v42, 3  ;;  %v445_v58 = vshra.s32 %v189_v43, 3  ;;  %v46_v59 = vadd.s32 224, %v3908_v1  ;;  %3513 = vmatprep.subr.msk.bf16.mxu1 %vm4156_vm13, %v5743_v48 }
  0x68   :  { %v796_v61 = vadd.s32 %v668_v40, %v540_v50  ;;  %v797_v62 = vadd.s32 %v669_v41, %v541_v52  ;;  %v700_v63 = vshra.s32 %v316_v53, 3  ;;  %v47_v0 = vadd.s32 232, %v3908_v1 }
  0x69   :  { %v572_v3 = vmul.u32 4, %v444_v56  ;;  %v573_v6 = vmul.u32 4, %v445_v58  ;;  %v701_v10 = vshra.s32 %v317_v55, 3  ;;  %v174_v11 = vshra.s32 %v46_v59, 5 }
  0x6a   :  { %vm924_vm0 = vcmp.eq.s32.totalorder %v3910_v2, %v796_v61  ;;  %vm925_vm7 = vcmp.eq.s32.totalorder %v3910_v2, %v797_v62  ;;  %v175_v12 = vshra.s32 %v47_v0, 5  ;;  %v302_v14 = vand.u32 31, %v46_v59 }
  0x6b   :  { %vm4167_vm9 = vmpackc.low %vm925_vm7, %vm924_vm0  ;;  %v5906_v15 = vmov 0  ;;  %v828_v16 = vadd.s32 %v700_v63, %v572_v3  ;;  %v829_v17 = vadd.s32 %v701_v10, %v573_v6  ;;  %v303_v19 = vand.u32 31, %v47_v0 }
  0x6c   :  { %v5907_v15 = vsel %vm4167_vm9, 4294967295, %v5906_v15  ;;  %v430_v23 = vshra.s32 %v174_v11, 3  ;;  %3486 = vmatpush3.bf16.msk.msra.mxu0 %vm4167_vm9, %v5743_v48  ;;  %v431_v24 = vshra.s32 %v175_v12, 3  ;;  %v686_v27 = vshra.s32 %v302_v14, 3 }
  0x6d   :  { %v78_v28 = vadd.s32 480, %v3908_v1  ;;  %v79_v29 = vadd.s32 488, %v3908_v1  ;;  %vm956_vm13 = vcmp.eq.s32.totalorder %v3910_v2, %v828_v16  ;;  %vm957_vm0 = vcmp.eq.s32.totalorder %v3910_v2, %v829_v17 }
  0x6e   :  { %v558_v30 = vmul.u32 4, %v430_v23  ;;  %v687_v31 = vshra.s32 %v303_v19, 3  ;;  %vm4178_vm7 = vmpackc.low %vm957_vm0, %vm956_vm13  ;;  %v5908_v32 = vmov 0  ;;  %v559_v35 = vmul.u32 4, %v431_v24 }
  0x6f   :  { %v5909_v32 = vsel %vm4178_vm7, 4294967295, %v5908_v32  ;;  %v206_v36 = vshra.s32 %v78_v28, 5  ;;  %v207_v37 = vshra.s32 %v79_v29, 5  ;;  %v334_v38 = vand.u32 31, %v78_v28  ;;  %3514 = vmatpush3.bf16.msk.msra.mxu1 %vm4178_vm7, %v5743_v48 }
  0x70   :  { %v814_v39 = vadd.s32 %v686_v27, %v558_v30  ;;  %v335_v40 = vand.u32 31, %v79_v29  ;;  %v30_v41 = vadd.s32 96, %v3908_v1  ;;  %v31_v42 = vadd.s32 104, %v3908_v1 }
  0x71   :  { %v815_v43 = vadd.s32 %v687_v31, %v559_v35  ;;  %v462_v50 = vshra.s32 %v206_v36, 3  ;;  %v463_v52 = vshra.s32 %v207_v37, 3  ;;  %v718_v53 = vshra.s32 %v334_v38, 3 }
  0x72   :  { %vm942_vm13 = vcmp.eq.s32.totalorder %v3910_v2, %v814_v39  ;;  %v719_v55 = vshra.s32 %v335_v40, 3  ;;  %v158_v56 = vshra.s32 %v30_v41, 5  ;;  %v159_v58 = vshra.s32 %v31_v42, 5 }
  0x73   :  { %vm943_vm0 = vcmp.eq.s32.totalorder %v3910_v2, %v815_v43  ;;  %v590_v59 = vmul.u32 4, %v462_v50  ;;  %v591_v61 = vmul.u32 4, %v463_v52  ;;  %v286_v62 = vand.u32 31, %v30_v41 }
  0x74   :  { %vm4189_vm7 = vmpackc.low %vm943_vm0, %vm942_vm13  ;;  %v5910_v63 = vmov 0  ;;  %v287_v0 = vand.u32 31, %v31_v42  ;;  %v414_v3 = vshra.s32 %v158_v56, 3  ;;  %v415_v6 = vshra.s32 %v159_v58, 3 }
  0x75   :  { %v5911_v63 = vsel %vm4189_vm7, 4294967295, %v5910_v63  ;;  %v62_v10 = vadd.s32 352, %v3908_v1  ;;  %3487 = vmatprep.subr.msk.bf16.mxu0 %vm4189_vm7, %v5743_v48  ;;  %v846_v11 = vadd.s32 %v718_v53, %v590_v59  ;;  %v847_v12 = vadd.s32 %v719_v55, %v591_v61 }
  0x76   :  { %v670_v14 = vshra.s32 %v286_v62, 3  ;;  %v63_v16 = vadd.s32 360, %v3908_v1  ;;  %v542_v17 = vmul.u32 4, %v414_v3  ;;  %v543_v19 = vmul.u32 4, %v415_v6 }
  0x77   :  { %v671_v23 = vshra.s32 %v287_v0, 3  ;;  %v190_v24 = vshra.s32 %v62_v10, 5  ;;  %vm974_vm13 = vcmp.eq.s32.totalorder %v3910_v2, %v846_v11  ;;  %vm975_vm0 = vcmp.eq.s32.totalorder %v3910_v2, %v847_v12 }
  0x78   :  { %v191_v27 = vshra.s32 %v63_v16, 5  ;;  %v318_v28 = vand.u32 31, %v62_v10  ;;  %vm4200_vm9 = vmpackc.low %vm975_vm0, %vm974_vm13  ;;  %v5912_v29 = vmov 0  ;;  %v798_v30 = vadd.s32 %v670_v14, %v542_v17 }
  0x79   :  { %v5913_v29 = vsel %vm4200_vm9, 4294967295, %v5912_v29  ;;  %v799_v31 = vadd.s32 %v671_v23, %v543_v19  ;;  %v319_v35 = vand.u32 31, %v63_v16  ;;  %v446_v36 = vshra.s32 %v190_v24, 3  ;;  %3515 = vmatprep.subr.msk.bf16.mxu1 %vm4200_vm9, %v5743_v48 }
  0x7a   :  { %v447_v37 = vshra.s32 %v191_v27, 3  ;;  %v702_v38 = vshra.s32 %v318_v28, 3  ;;  %v48_v39 = vadd.s32 240, %v3908_v1  ;;  %v49_v40 = vadd.s32 248, %v3908_v1 }
  0x7b   :  { %vm926_vm7 = vcmp.eq.s32.totalorder %v3910_v2, %v798_v30  ;;  %vm927_vm13 = vcmp.eq.s32.totalorder %v3910_v2, %v799_v31  ;;  %v574_v41 = vmul.u32 4, %v446_v36  ;;  %v703_v42 = vshra.s32 %v319_v35, 3 }
  0x7c   :  { %vm4211_vm0 = vmpackc.low %vm927_vm13, %vm926_vm7  ;;  %v5914_v43 = vmov 0  ;;  %v575_v50 = vmul.u32 4, %v447_v37  ;;  %v176_v52 = vshra.s32 %v48_v39, 5  ;;  %v177_v53 = vshra.s32 %v49_v40, 5 }
  0x7d   :  { %v5915_v43 = vsel %vm4211_vm0, 4294967295, %v5914_v43  ;;  %v304_v55 = vand.u32 31, %v48_v39  ;;  %3488 = vmatpush3.bf16.msk.msra.mxu0 %vm4211_vm0, %v5743_v48  ;;  %v830_v56 = vadd.s32 %v702_v38, %v574_v41  ;;  %v305_v58 = vand.u32 31, %v49_v40 }
  0x7e   :  { %v80_v59 = vadd.s32 496, %v3908_v1  ;;  %v81_v61 = vadd.s32 504, %v3908_v1  ;;  %v831_v62 = vadd.s32 %v703_v42, %v575_v50  ;;  %v432_v0 = vshra.s32 %v176_v52, 3 }
  0x7f   :  { %v433_v3 = vshra.s32 %v177_v53, 3  ;;  %v688_v6 = vshra.s32 %v304_v55, 3  ;;  %vm958_vm7 = vcmp.eq.s32.totalorder %v3910_v2, %v830_v56  ;;  %v689_v10 = vshra.s32 %v305_v58, 3  ;;  %v1356_v58 = vld [vmem:[%s5717_s0 + $0x8] sm:$0xff] }
  0x80   :  { %v208_v11 = vshra.s32 %v80_v59, 5  ;;  %v209_v12 = vshra.s32 %v81_v61, 5  ;;  %vm959_vm13 = vcmp.eq.s32.totalorder %v3910_v2, %v831_v62  ;;  %v560_v14 = vmul.u32 4, %v432_v0 }
  0x81   :  { %v561_v16 = vmul.u32 4, %v433_v3  ;;  %v336_v17 = vand.u32 31, %v80_v59  ;;  %vm4222_vm0 = vmpackc.low %vm959_vm13, %vm958_vm7  ;;  %v5916_v19 = vmov 0  ;;  %v337_v23 = vand.u32 31, %v81_v61  ;;  %v1364_v59 = vld [vmem:[%s5717_s0 + $0x48] sm:$0xff] }
  0x82   :  { %v5917_v19 = vsel %vm4222_vm0, 4294967295, %v5916_v19  ;;  %v464_v24 = vshra.s32 %v208_v11, 3  ;;  %v465_v27 = vshra.s32 %v209_v12, 3  ;;  %v32_v28 = vadd.s32 112, %v3908_v1  ;;  %3516 = vmatpush3.bf16.msk.msra.mxu1 %vm4222_vm0, %v5743_v48 }
  0x83   :  { %v816_v30 = vadd.s32 %v688_v6, %v560_v14  ;;  %v817_v31 = vadd.s32 %v689_v10, %v561_v16  ;;  %v720_v35 = vshra.s32 %v336_v17, 3  ;;  %v33_v36 = vadd.s32 120, %v3908_v1  ;;  %v1358_v6 = vld [vmem:[%s5717_s0 + $0x18] sm:$0xff]  ;;  %v1355_v14 = vld [vmem:[%s5717_s0] sm:$0xff] }
  0x84   :  { %v592_v37 = vmul.u32 4, %v464_v24  ;;  %v593_v38 = vmul.u32 4, %v465_v27  ;;  %v721_v39 = vshra.s32 %v337_v23, 3  ;;  %v160_v40 = vshra.s32 %v32_v28, 5  ;;  %v1366_v10 = vld [vmem:[%s5717_s0 + $0x58] sm:$0xff]  ;;  %v1363_v16 = vld [vmem:[%s5717_s0 + $0x40] sm:$0xff] }
  0x85   :  { %vm944_vm7 = vcmp.eq.s32.totalorder %v3910_v2, %v816_v30  ;;  %vm945_vm13 = vcmp.eq.s32.totalorder %v3910_v2, %v817_v31  ;;  %v161_v41 = vshra.s32 %v33_v36, 5  ;;  %v288_v42 = vand.u32 31, %v32_v28  ;;  %v1357_v30 = vld [vmem:[%s5717_s0 + $0x10] sm:$0xff] }
  0x86   :  { %vm4233_vm9 = vmpackc.low %vm945_vm13, %vm944_vm7  ;;  %v5918_v50 = vmov 0  ;;  %v848_v52 = vadd.s32 %v720_v35, %v592_v37  ;;  %v849_v53 = vadd.s32 %v721_v39, %v593_v38  ;;  %v289_v55 = vand.u32 31, %v33_v36  ;;  %v1365_v31 = vld [vmem:[%s5717_s0 + $0x50] sm:$0xff] }
  0x87   :  { %v5919_v50 = vsel %vm4233_vm9, 4294967295, %v5918_v50  ;;  %v416_v56 = vshra.s32 %v160_v40, 3  ;;  %3489 = vmatprep.subr.msk.bf16.mxu0 %vm4233_vm9, %v5743_v48  ;;  %v417_v61 = vshra.s32 %v161_v41, 3  ;;  %v672_v62 = vshra.s32 %v288_v42, 3 }
  0x88   :  { %v64_v0 = vadd.s32 368, %v3908_v1  ;;  %v65_v3 = vadd.s32 376, %v3908_v1  ;;  %vm976_vm7 = vcmp.eq.s32.totalorder %v3910_v2, %v848_v52  ;;  %vm977_vm13 = vcmp.eq.s32.totalorder %v3910_v2, %v849_v53 }
  0x89   :  { %v544_v11 = vmul.u32 4, %v416_v56  ;;  %v673_v12 = vshra.s32 %v289_v55, 3  ;;  %vm4262_vm9 = vmpackc.low %vm977_vm13, %vm976_vm7  ;;  %v5920_v17 = vmov 0  ;;  %v545_v23 = vmul.u32 4, %v417_v61 }
  0x8a   :  { %v5921_v17 = vsel %vm4262_vm9, 4294967295, %v5920_v17  ;;  %v192_v24 = vshra.s32 %v64_v0, 5  ;;  %v193_v27 = vshra.s32 %v65_v3, 5  ;;  %v320_v28 = vand.u32 31, %v64_v0  ;;  %3517 = vmatprep.subr.msk.bf16.mxu1 %vm4262_vm9, %v5743_v48 }
  0x8b   :  { %v800_v35 = vadd.s32 %v672_v62, %v544_v11  ;;  %v321_v36 = vand.u32 31, %v65_v3  ;;  %v1388_v37 = vpack.c.bf16 %v1364_v59, %v1356_v58  ;;  %v1390_v38 = vpack.c.bf16 %v1366_v10, %v1358_v6 }
  0x8c   :  { %v801_v39 = vadd.s32 %v673_v12, %v545_v23  ;;  %v448_v40 = vshra.s32 %v192_v24, 3  ;;  %v449_v41 = vshra.s32 %v193_v27, 3  ;;  %v704_v42 = vshra.s32 %v320_v28, 3 }
  0x8d   :  { %vm928_vm7 = vcmp.eq.s32.totalorder %v3910_v2, %v800_v35  ;;  %v705_v52 = vshra.s32 %v321_v36, 3  ;;  %1435 = vmatprep.mubr.bf16.mxu0 %v1388_v37  ;;  %1484 = vmatprep.mubr.bf16.mxu1 %v1390_v38  ;;  %v1387_v53 = vpack.c.bf16 %v1363_v16, %v1355_v14  ;;  %v1389_v55 = vpack.c.bf16 %v1365_v31, %v1357_v30 }
  0x8e   :  { %vm929_vm13 = vcmp.eq.s32.totalorder %v3910_v2, %v801_v39  ;;  %v576_v56 = vmul.u32 4, %v448_v40  ;;  %v577_v61 = vmul.u32 4, %v449_v41  ;;  %v98_v62 = vadd.s32 640, %v3908_v1 }
  0x8f   :  { %vm4278_vm9 = vmpackc.low %vm929_vm13, %vm928_vm7  ;;  %v5922_v58 = vmov 0  ;;  %v99_v59 = vadd.s32 648, %v3908_v1  ;;  %v130_v0 = vadd.s32 896, %v3908_v1  ;;  %v131_v3 = vadd.s32 904, %v3908_v1 }
  0x90   :  { %v5923_v58 = vsel %vm4278_vm9, 4294967295, %v5922_v58  ;;  %v82_v6 = vadd.s32 512, %v3908_v1  ;;  %3490 = vmatpush3.bf16.msk.msra.mxu0 %vm4278_vm9, %v5743_v48  ;;  %v832_v10 = vadd.s32 %v704_v42, %v576_v56  ;;  %v833_v11 = vadd.s32 %v705_v52, %v577_v61 }
  0x91   :  { %v226_v12 = vshra.s32 %v98_v62, 5  ;;  %v354_v14 = vand.u32 31, %v98_v62  ;;  %v227_v16 = vshra.s32 %v99_v59, 5  ;;  %v355_v23 = vand.u32 31, %v99_v59 }
  0x92   :  { %v258_v24 = vshra.s32 %v130_v0, 5  ;;  %v259_v27 = vshra.s32 %v131_v3, 5  ;;  %vm960_vm7 = vcmp.eq.s32.totalorder %v3910_v2, %v832_v10  ;;  %vm961_vm13 = vcmp.eq.s32.totalorder %v3910_v2, %v833_v11 }
  0x93   :  { %v482_v28 = vshra.s32 %v226_v12, 3  ;;  %v738_v30 = vshra.s32 %v354_v14, 3  ;;  %vm4291_vm0 = vmpackc.low %vm961_vm13, %vm960_vm7  ;;  %v5924_v31 = vmov 0  ;;  %1436 = vmatmul.mubr.bf16.vlgmr.msra.gmra.mrb[0].mxu0 %v1387_v53  ;;  %v483_v35 = vshra.s32 %v227_v16, 3 }
  0x94   :  { %v5925_v31 = vsel %vm4291_vm0, 4294967295, %v5924_v31  ;;  %v739_v36 = vshra.s32 %v355_v23, 3  ;;  %v386_v37 = vand.u32 31, %v130_v0  ;;  %v387_v38 = vand.u32 31, %v131_v3  ;;  %3518 = vmatpush3.bf16.msk.msra.mxu1 %vm4291_vm0, %v5743_v48 }
  0x95   :  { %v610_v39 = vmul.u32 4, %v482_v28  ;;  %v514_v40 = vshra.s32 %v258_v24, 3  ;;  %v515_v41 = vshra.s32 %v259_v27, 3  ;;  %v83_v42 = vadd.s32 520, %v3908_v1 }
  0x96   :  { %v611_v52 = vmul.u32 4, %v483_v35  ;;  %v770_v56 = vshra.s32 %v386_v37, 3  ;;  %v771_v61 = vshra.s32 %v387_v38, 3  ;;  %v210_v62 = vshra.s32 %v82_v6, 5 }
  0x97   :  { %v866_v59 = vadd.s32 %v738_v30, %v610_v39  ;;  %v642_v10 = vmul.u32 4, %v514_v40  ;;  %v643_v53 = vmul.u32 4, %v515_v41  ;;  %v211_v11 = vshra.s32 %v83_v42, 5  ;;  %1485 = vmatmul.mubr.bf16.vlgmr.msra.gmra.mrb[0].mxu1 %v1389_v55 }
  0x98   :  { %v867_v0 = vadd.s32 %v739_v36, %v611_v52  ;;  %v338_v3 = vand.u32 31, %v82_v6  ;;  %v339_v12 = vand.u32 31, %v83_v42  ;;  %v466_v14 = vshra.s32 %v210_v62, 3 }
  0x99   :  { %vm994_vm7 = vcmp.eq.s32.totalorder %v3910_v2, %v866_v59  ;;  %v898_v16 = vadd.s32 %v770_v56, %v642_v10  ;;  %v899_v23 = vadd.s32 %v771_v61, %v643_v53  ;;  %v467_v24 = vshra.s32 %v211_v11, 3 }
  0x9a   :  { %vm995_vm13 = vcmp.eq.s32.totalorder %v3910_v2, %v867_v0  ;;  %v594_v27 = vmul.u32 4, %v466_v14  ;;  %v722_v28 = vshra.s32 %v338_v3, 3  ;;  %v723_v35 = vshra.s32 %v339_v12, 3 }
  0x9b   :  { %vm4301_vm0 = vmpackc.low %vm995_vm13, %vm994_vm7  ;;  %v5926_v30 = vmov 0  ;;  %vm1026_vm9 = vcmp.eq.s32.totalorder %v3910_v2, %v898_v16  ;;  %vm1027_vm3 = vcmp.eq.s32.totalorder %v3910_v2, %v899_v23  ;;  %v595_v55 = vmul.u32 4, %v467_v24 }
  0x9c   :  { %v5927_v30 = vsel %vm4301_vm0, 4294967295, %v5926_v30  ;;  %v114_v6 = vadd.s32 768, %v3908_v1  ;;  %3531 = vmatprep.subr.msk.bf16.mxu0 %vm4301_vm0, %v5743_v48  ;;  %vm4311_vm12 = vmpackc.low %vm1027_vm3, %vm1026_vm9  ;;  %v5928_v36 = vmov 0  ;;  %v850_v37 = vadd.s32 %v722_v28, %v594_v27 }
  0x9d   :  { %v5929_v36 = vsel %vm4311_vm12, 4294967295, %v5928_v36  ;;  %v115_v38 = vadd.s32 776, %v3908_v1  ;;  %v100_v39 = vadd.s32 656, %v3908_v1  ;;  %v101_v40 = vadd.s32 664, %v3908_v1  ;;  %3559 = vmatprep.subr.msk.bf16.mxu1 %vm4311_vm12, %v5743_v48 }
  0x9e   :  { %5930 = vst [vmem:[#allocation2_spill] sm:$0xff] %v5929_v36  ;;  %v851_v41 = vadd.s32 %v723_v35, %v595_v55  ;;  %v242_v42 = vshra.s32 %v114_v6, 5  ;;  %v370_v52 = vand.u32 31, %v114_v6  ;;  %v132_v56 = vadd.s32 912, %v3908_v1 }
  0x9f   :  { %vm978_vm3 = vcmp.eq.s32.totalorder %v3910_v2, %v850_v37  ;;  %v243_v61 = vshra.s32 %v115_v38, 5  ;;  %v371_v62 = vand.u32 31, %v115_v38  ;;  %v228_v59 = vshra.s32 %v100_v39, 5 }
  0xa0   :  { %vm979_vm9 = vcmp.eq.s32.totalorder %v3910_v2, %v851_v41  ;;  %v498_v10 = vshra.s32 %v242_v42, 3  ;;  %v754_v53 = vshra.s32 %v370_v52, 3  ;;  %v229_v11 = vshra.s32 %v101_v40, 5 }
  0xa1   :  { %vm4324_vm7 = vmpackc.low %vm979_vm9, %vm978_vm3  ;;  %v5931_v0 = vmov 0  ;;  %v499_v3 = vshra.s32 %v243_v61, 3  ;;  %v755_v12 = vshra.s32 %v371_v62, 3  ;;  %v356_v14 = vand.u32 31, %v100_v39 }
  0xa2   :  { %v5932_v0 = vsel %vm4324_vm7, 4294967295, %v5931_v0  ;;  %v357_v16 = vand.u32 31, %v101_v40  ;;  %3532 = vmatpush3.bf16.msk.msra.mxu0 %vm4324_vm7, %v5743_v48  ;;  %v626_v23 = vmul.u32 4, %v498_v10  ;;  %v484_v24 = vshra.s32 %v228_v59, 3 }
  0xa3   :  { %5933 = vst [vmem:[#allocation3_spill] sm:$0xff] %v5932_v0  ;;  %v485_v27 = vshra.s32 %v229_v11, 3  ;;  %v133_v28 = vadd.s32 920, %v3908_v1  ;;  %v627_v35 = vmul.u32 4, %v499_v3  ;;  %v740_v55 = vshra.s32 %v356_v14, 3 }
  0xa4   :  { %v741_v6 = vshra.s32 %v357_v16, 3  ;;  %v260_v37 = vshra.s32 %v132_v56, 5  ;;  %v882_v38 = vadd.s32 %v754_v53, %v626_v23  ;;  %v612_v41 = vmul.u32 4, %v484_v24 }
  0xa5   :  { %v613_v42 = vmul.u32 4, %v485_v27  ;;  %v261_v52 = vshra.s32 %v133_v28, 5  ;;  %v883_v61 = vadd.s32 %v755_v12, %v627_v35  ;;  %v388_v39 = vand.u32 31, %v132_v56 }
  0xa6   :  { %v389_v40 = vand.u32 31, %v133_v28  ;;  %v516_v62 = vshra.s32 %v260_v37, 3  ;;  %vm1010_vm13 = vcmp.eq.s32.totalorder %v3910_v2, %v882_v38  ;;  %v868_v48 = vadd.s32 %v740_v55, %v612_v41 }
  0xa7   :  { %v869_v10 = vadd.s32 %v741_v6, %v613_v42  ;;  %v517_v59 = vshra.s32 %v261_v52, 3  ;;  %vm1011_vm3 = vcmp.eq.s32.totalorder %v3910_v2, %v883_v61  ;;  %v772_v3 = vshra.s32 %v388_v39, 3 }
  0xa8   :  { %v644_v11 = vmul.u32 4, %v516_v62  ;;  %v773_v14 = vshra.s32 %v389_v40, 3  ;;  %vm4334_vm9 = vmpackc.low %vm1011_vm3, %vm1010_vm13  ;;  %v5934_v16 = vmov 0  ;;  %vm996_vm7 = vcmp.eq.s32.totalorder %v3910_v2, %v868_v48 }
  0xa9   :  { %v5935_v16 = vsel %vm4334_vm9, 4294967295, %v5934_v16  ;;  %vm997_vm12 = vcmp.eq.s32.totalorder %v3910_v2, %v869_v10  ;;  %v645_v56 = vmul.u32 4, %v517_v59  ;;  %v84_v53 = vadd.s32 528, %v3908_v1 }
  0xaa   :  { %5936 = vst [vmem:[#allocation4_spill] sm:$0xff] %v5935_v16  ;;  %v5937_v12 = vmov 0.015625|0.015625   ;;  %vm4344_vm0 = vmpackc.low %vm997_vm12, %vm996_vm7  ;;  %v5938_v23 = vmov 0  ;;  %v900_v24 = vadd.s32 %v772_v3, %v644_v11  ;;  %v85_v27 = vadd.s32 536, %v3908_v1 }
  0xab   :  { %3560 = vmatpush3.bf16.msk.msra.mxu1 %vm4334_vm9, %v5937_v12  ;;  %v5939_v23 = vsel %vm4344_vm0, 4294967295, %v5938_v23  ;;  %v116_v28 = vadd.s32 784, %v3908_v1  ;;  %v117_v48 = vadd.s32 792, %v3908_v1  ;;  %3533 = vmatprep.subr.msk.bf16.mxu0 %vm4344_vm0, %v5937_v12  ;;  %v901_v35 = vadd.s32 %v773_v14, %v645_v56 }
  0xac   :  { %5940 = vst [vmem:[#allocation5_spill] sm:$0xff] %v5939_v23  ;;  %v212_v55 = vshra.s32 %v84_v53, 5  ;;  %v340_v6 = vand.u32 31, %v84_v53  ;;  %v102_v37 = vadd.s32 672, %v3908_v1  ;;  %vm1028_vm12 = vcmp.eq.s32.totalorder %v3910_v2, %v900_v24 }
  0xad   :  { %v213_v38 = vshra.s32 %v85_v27, 5  ;;  %v341_v41 = vand.u32 31, %v85_v27  ;;  %v244_v42 = vshra.s32 %v116_v28, 5  ;;  %vm1029_vm7 = vcmp.eq.s32.totalorder %v3910_v2, %v901_v35 }
  0xae   :  { %v468_v52 = vshra.s32 %v212_v55, 3  ;;  %v724_v61 = vshra.s32 %v340_v6, 3  ;;  %v245_v39 = vshra.s32 %v117_v48, 5  ;;  %vm4357_vm13 = vmpackc.low %vm1029_vm7, %vm1028_vm12  ;;  %v5941_v40 = vmov 0 }
  0xaf   :  { %v5942_v40 = vsel %vm4357_vm13, 4294967295, %v5941_v40  ;;  %v469_v62 = vshra.s32 %v213_v38, 3  ;;  %v725_v10 = vshra.s32 %v341_v41, 3  ;;  %v372_v59 = vand.u32 31, %v116_v28  ;;  %3561 = vmatprep.subr.msk.bf16.mxu1 %vm4357_vm13, %v5937_v12 }
  0xb0   :  { %5943 = vst [vmem:[#allocation6_spill] sm:$0xff] %v5942_v40  ;;  %v373_v11 = vand.u32 31, %v117_v48  ;;  %v596_v3 = vmul.u32 4, %v468_v52  ;;  %v500_v14 = vshra.s32 %v244_v42, 3  ;;  %v501_v56 = vshra.s32 %v245_v39, 3 }
  0xb1   :  { %v103_v53 = vadd.s32 680, %v3908_v1  ;;  %v597_v24 = vmul.u32 4, %v469_v62  ;;  %v756_v27 = vshra.s32 %v372_v59, 3  ;;  %v230_v55 = vshra.s32 %v102_v37, 5 }
  0xb2   :  { %v757_v35 = vshra.s32 %v373_v11, 3  ;;  %v852_v6 = vadd.s32 %v724_v61, %v596_v3  ;;  %v628_v23 = vmul.u32 4, %v500_v14  ;;  %v629_v16 = vmul.u32 4, %v501_v56 }
  0xb3   :  { %v231_v38 = vshra.s32 %v103_v53, 5  ;;  %v853_v41 = vadd.s32 %v725_v10, %v597_v24  ;;  %v358_v28 = vand.u32 31, %v102_v37  ;;  %v359_v48 = vand.u32 31, %v103_v53 }
  0xb4   :  { %v486_v0 = vshra.s32 %v230_v55, 3  ;;  %vm980_vm3 = vcmp.eq.s32.totalorder %v3910_v2, %v852_v6  ;;  %v884_v40 = vadd.s32 %v756_v27, %v628_v23  ;;  %v885_v52 = vadd.s32 %v757_v35, %v629_v16 }
  0xb5   :  { %v487_v42 = vshra.s32 %v231_v38, 3  ;;  %vm981_vm12 = vcmp.eq.s32.totalorder %v3910_v2, %v853_v41  ;;  %v742_v62 = vshra.s32 %v358_v28, 3  ;;  %v743_v59 = vshra.s32 %v359_v48, 3 }
  0xb6   :  { %v614_v39 = vmul.u32 4, %v486_v0  ;;  %vm4367_vm7 = vmpackc.low %vm981_vm12, %vm980_vm3  ;;  %v5944_v11 = vmov 0  ;;  %vm1012_vm13 = vcmp.eq.s32.totalorder %v3910_v2, %v884_v40  ;;  %vm1013_vm0 = vcmp.eq.s32.totalorder %v3910_v2, %v885_v52 }
  0xb7   :  { %v5945_v11 = vsel %vm4367_vm7, 4294967295, %v5944_v11  ;;  %v615_v37 = vmul.u32 4, %v487_v42  ;;  %v134_v61 = vadd.s32 928, %v3908_v1  ;;  %3534 = vmatpush3.bf16.msk.msra.mxu0 %vm4367_vm7, %v5937_v12  ;;  %vm4377_vm9 = vmpackc.low %vm1013_vm0, %vm1012_vm13  ;;  %v5947_v16 = vmov 0 }
  0xb8   :  { %5946 = vst [vmem:[#allocation7_spill] sm:$0xff] %v5945_v11  ;;  %v5948_v16 = vsel %vm4377_vm9, 4294967295, %v5947_v16  ;;  %v870_v0 = vadd.s32 %v742_v62, %v614_v39  ;;  %v135_v23 = vadd.s32 936, %v3908_v1  ;;  %v86_v10 = vadd.s32 544, %v3908_v1  ;;  %3562 = vmatpush3.bf16.msk.msra.mxu1 %vm4377_vm9, %v5937_v12 }
  0xb9   :  { %5949 = vst [vmem:[#allocation8_spill] sm:$0xff] %v5948_v16  ;;  %v87_v40 = vadd.s32 552, %v3908_v1  ;;  %v871_v3 = vadd.s32 %v743_v59, %v615_v37  ;;  %v262_v14 = vshra.s32 %v134_v61, 5  ;;  %v390_v56 = vand.u32 31, %v134_v61 }
  0xba   :  { %v118_v53 = vadd.s32 800, %v3908_v1  ;;  %vm998_vm0 = vcmp.eq.s32.totalorder %v3910_v2, %v870_v0  ;;  %v263_v24 = vshra.s32 %v135_v23, 5  ;;  %v391_v27 = vand.u32 31, %v135_v23 }
  0xbb   :  { %v214_v35 = vshra.s32 %v86_v10, 5  ;;  %vm999_vm13 = vcmp.eq.s32.totalorder %v3910_v2, %v871_v3  ;;  %v518_v55 = vshra.s32 %v262_v14, 3  ;;  %v774_v6 = vshra.s32 %v390_v56, 3 }
  0xbc   :  { %v215_v38 = vshra.s32 %v87_v40, 5  ;;  %vm4390_vm3 = vmpackc.low %vm999_vm13, %vm998_vm0  ;;  %v5950_v41 = vmov 0  ;;  %v519_v28 = vshra.s32 %v263_v24, 3  ;;  %v775_v48 = vshra.s32 %v391_v27, 3 }
  0xbd   :  { %v5951_v41 = vsel %vm4390_vm3, 4294967295, %v5950_v41  ;;  %v342_v52 = vand.u32 31, %v86_v10  ;;  %v343_v42 = vand.u32 31, %v87_v40  ;;  %3535 = vmatprep.subr.msk.bf16.mxu0 %vm4390_vm3, %v5937_v12  ;;  %v646_v39 = vmul.u32 4, %v518_v55 }
  0xbe   :  { %5952 = vst [vmem:[#allocation9_spill] sm:$0xff] %v5951_v41  ;;  %v470_v62 = vshra.s32 %v214_v35, 3  ;;  %v471_v59 = vshra.s32 %v215_v38, 3  ;;  %v119_v37 = vadd.s32 808, %v3908_v1  ;;  %v647_v61 = vmul.u32 4, %v519_v28 }
  0xbf   :  { %v726_v0 = vshra.s32 %v342_v52, 3  ;;  %v727_v23 = vshra.s32 %v343_v42, 3  ;;  %v246_v3 = vshra.s32 %v118_v53, 5  ;;  %v902_v14 = vadd.s32 %v774_v6, %v646_v39 }
  0xc0   :  { %v598_v56 = vmul.u32 4, %v470_v62  ;;  %v599_v16 = vmul.u32 4, %v471_v59  ;;  %v247_v24 = vshra.s32 %v119_v37, 5  ;;  %v903_v27 = vadd.s32 %v775_v48, %v647_v61 }
  0xc1   :  { %v374_v10 = vand.u32 31, %v118_v53  ;;  %v375_v40 = vand.u32 31, %v119_v37  ;;  %v502_v11 = vshra.s32 %v246_v3, 3  ;;  %vm1030_vm12 = vcmp.eq.s32.totalorder %v3910_v2, %v902_v14 }
  0xc2   :  { %v854_v41 = vadd.s32 %v726_v0, %v598_v56  ;;  %v855_v55 = vadd.s32 %v727_v23, %v599_v16  ;;  %v503_v35 = vshra.s32 %v247_v24, 3  ;;  %vm1031_vm0 = vcmp.eq.s32.totalorder %v3910_v2, %v903_v27 }
  0xc3   :  { %v630_v38 = vmul.u32 4, %v502_v11  ;;  %v758_v28 = vshra.s32 %v374_v10, 3  ;;  %v759_v52 = vshra.s32 %v375_v40, 3  ;;  %vm4400_vm13 = vmpackc.low %vm1031_vm0, %vm1030_vm12  ;;  %v5953_v42 = vmov 0 }
  0xc4   :  { %v5954_v42 = vsel %vm4400_vm13, 4294967295, %v5953_v42  ;;  %vm982_vm3 = vcmp.eq.s32.totalorder %v3910_v2, %v854_v41  ;;  %vm983_vm9 = vcmp.eq.s32.totalorder %v3910_v2, %v855_v55  ;;  %v631_v53 = vmul.u32 4, %v503_v35  ;;  %3563 = vmatprep.subr.msk.bf16.mxu1 %vm4400_vm13, %v5937_v12 }
  0xc5   :  { %5955 = vst [vmem:[#allocation10_spill] sm:$0xff] %v5954_v42  ;;  %v104_v6 = vadd.s32 688, %v3908_v1  ;;  %vm4410_vm7 = vmpackc.low %vm983_vm9, %vm982_vm3  ;;  %v5956_v16 = vmov 0  ;;  %v886_v11 = vadd.s32 %v758_v28, %v630_v38  ;;  %v105_v48 = vadd.s32 696, %v3908_v1 }
  0xc6   :  { %v5957_v16 = vsel %vm4410_vm7, 4294967295, %v5956_v16  ;;  %v136_v39 = vadd.s32 944, %v3908_v1  ;;  %v137_v41 = vadd.s32 952, %v3908_v1  ;;  %3536 = vmatpush3.bf16.msk.msra.mxu0 %vm4410_vm7, %v5937_v12  ;;  %v887_v62 = vadd.s32 %v759_v52, %v631_v53 }
  0xc7   :  { %5958 = vst [vmem:[#allocation11_spill] sm:$0xff] %v5957_v16  ;;  %v232_v59 = vshra.s32 %v104_v6, 5  ;;  %v360_v37 = vand.u32 31, %v104_v6  ;;  %v88_v61 = vadd.s32 560, %v3908_v1  ;;  %vm1014_vm9 = vcmp.eq.s32.totalorder %v3910_v2, %v886_v11 }
  0xc8   :  { %v233_v0 = vshra.s32 %v105_v48, 5  ;;  %v361_v23 = vand.u32 31, %v105_v48  ;;  %v264_v3 = vshra.s32 %v136_v39, 5  ;;  %vm1015_vm3 = vcmp.eq.s32.totalorder %v3910_v2, %v887_v62 }
  0xc9   :  { %v488_v14 = vshra.s32 %v232_v59, 3  ;;  %v744_v56 = vshra.s32 %v360_v37, 3  ;;  %v265_v24 = vshra.s32 %v137_v41, 5  ;;  %vm4423_vm12 = vmpackc.low %vm1015_vm3, %vm1014_vm9  ;;  %v5959_v27 = vmov 0 }
  0xca   :  { %v5960_v27 = vsel %vm4423_vm12, 4294967295, %v5959_v27  ;;  %v489_v10 = vshra.s32 %v233_v0, 3  ;;  %v745_v40 = vshra.s32 %v361_v23, 3  ;;  %v392_v55 = vand.u32 31, %v136_v39  ;;  %3564 = vmatpush3.bf16.msk.msra.mxu1 %vm4423_vm12, %v5937_v12 }
  0xcb   :  { %5961 = vst [vmem:[#allocation12_spill] sm:$0xff] %v5960_v27  ;;  %v393_v35 = vand.u32 31, %v137_v41  ;;  %v616_v38 = vmul.u32 4, %v488_v14  ;;  %v520_v28 = vshra.s32 %v264_v3, 3  ;;  %v521_v52 = vshra.s32 %v265_v24, 3 }
  0xcc   :  { %v89_v53 = vadd.s32 568, %v3908_v1  ;;  %v617_v6 = vmul.u32 4, %v489_v10  ;;  %v776_v11 = vshra.s32 %v392_v55, 3  ;;  %v216_v62 = vshra.s32 %v88_v61, 5 }
  0xcd   :  { %v777_v48 = vshra.s32 %v393_v35, 3  ;;  %v872_v59 = vadd.s32 %v744_v56, %v616_v38  ;;  %v648_v37 = vmul.u32 4, %v520_v28  ;;  %v649_v16 = vmul.u32 4, %v521_v52 }
  0xce   :  { %v217_v0 = vshra.s32 %v89_v53, 5  ;;  %v873_v23 = vadd.s32 %v745_v40, %v617_v6  ;;  %v344_v39 = vand.u32 31, %v88_v61  ;;  %v345_v41 = vand.u32 31, %v89_v53 }
  0xcf   :  { %v472_v42 = vshra.s32 %v216_v62, 3  ;;  %vm1000_vm0 = vcmp.eq.s32.totalorder %v3910_v2, %v872_v59  ;;  %v904_v27 = vadd.s32 %v776_v11, %v648_v37  ;;  %v905_v14 = vadd.s32 %v777_v48, %v649_v16 }
  0xd0   :  { %v473_v3 = vshra.s32 %v217_v0, 3  ;;  %vm1001_vm9 = vcmp.eq.s32.totalorder %v3910_v2, %v873_v23  ;;  %v728_v10 = vshra.s32 %v344_v39, 3  ;;  %v729_v55 = vshra.s32 %v345_v41, 3 }
  0xd1   :  { %v600_v24 = vmul.u32 4, %v472_v42  ;;  %vm4433_vm3 = vmpackc.low %vm1001_vm9, %vm1000_vm0  ;;  %v5962_v35 = vmov 0  ;;  %vm1032_vm12 = vcmp.eq.s32.totalorder %v3910_v2, %v904_v27  ;;  %vm1033_vm7 = vcmp.eq.s32.totalorder %v3910_v2, %v905_v14 }
  0xd2   :  { %v5963_v35 = vsel %vm4433_vm3, 4294967295, %v5962_v35  ;;  %v601_v61 = vmul.u32 4, %v473_v3  ;;  %v120_v56 = vadd.s32 816, %v3908_v1  ;;  %3537 = vmatprep.subr.msk.bf16.mxu0 %vm4433_vm3, %v5937_v12  ;;  %vm4443_vm13 = vmpackc.low %vm1033_vm7, %vm1032_vm12  ;;  %v5965_v16 = vmov 0 }
  0xd3   :  { %5964 = vst [vmem:[#allocation13_spill] sm:$0xff] %v5963_v35  ;;  %v5966_v16 = vsel %vm4443_vm13, 4294967295, %v5965_v16  ;;  %v856_v42 = vadd.s32 %v728_v10, %v600_v24  ;;  %v121_v40 = vadd.s32 824, %v3908_v1  ;;  %v106_v38 = vadd.s32 704, %v3908_v1  ;;  %3565 = vmatprep.subr.msk.bf16.mxu1 %vm4443_vm13, %v5937_v12 }
  0xd4   :  { %5967 = vst [vmem:[#allocation14_spill] sm:$0xff] %v5966_v16  ;;  %v107_v27 = vadd.s32 712, %v3908_v1  ;;  %v857_v28 = vadd.s32 %v729_v55, %v601_v61  ;;  %v248_v52 = vshra.s32 %v120_v56, 5  ;;  %v376_v53 = vand.u32 31, %v120_v56 }
  0xd5   :  { %v138_v6 = vadd.s32 960, %v3908_v1  ;;  %vm984_vm7 = vcmp.eq.s32.totalorder %v3910_v2, %v856_v42  ;;  %v249_v11 = vshra.s32 %v121_v40, 5  ;;  %v377_v48 = vand.u32 31, %v121_v40 }
  0xd6   :  { %v234_v62 = vshra.s32 %v106_v38, 5  ;;  %vm985_vm12 = vcmp.eq.s32.totalorder %v3910_v2, %v857_v28  ;;  %v504_v59 = vshra.s32 %v248_v52, 3  ;;  %v760_v37 = vshra.s32 %v376_v53, 3 }
  0xd7   :  { %v235_v0 = vshra.s32 %v107_v27, 5  ;;  %vm4456_vm0 = vmpackc.low %vm985_vm12, %vm984_vm7  ;;  %v5968_v23 = vmov 0  ;;  %v505_v39 = vshra.s32 %v249_v11, 3  ;;  %v761_v41 = vshra.s32 %v377_v48, 3 }
  0xd8   :  { %v5969_v23 = vsel %vm4456_vm0, 4294967295, %v5968_v23  ;;  %v362_v14 = vand.u32 31, %v106_v38  ;;  %v363_v3 = vand.u32 31, %v107_v27  ;;  %3538 = vmatpush3.bf16.msk.msra.mxu0 %vm4456_vm0, %v5937_v12  ;;  %v632_v24 = vmul.u32 4, %v504_v59 }
  0xd9   :  { %5970 = vst [vmem:[#allocation15_spill] sm:$0xff] %v5969_v23  ;;  %v490_v10 = vshra.s32 %v234_v62, 3  ;;  %v491_v55 = vshra.s32 %v235_v0, 3  ;;  %v139_v61 = vadd.s32 968, %v3908_v1  ;;  %v633_v56 = vmul.u32 4, %v505_v39 }
  0xda   :  { %v746_v42 = vshra.s32 %v362_v14, 3  ;;  %v747_v40 = vshra.s32 %v363_v3, 3  ;;  %v266_v28 = vshra.s32 %v138_v6, 5  ;;  %v888_v52 = vadd.s32 %v760_v37, %v632_v24  ;;  %v1372_v37 = vld [vmem:[%s5717_s0 + $0x88] sm:$0xff] }
  0xdb   :  { %v618_v53 = vmul.u32 4, %v490_v10  ;;  %v619_v16 = vmul.u32 4, %v491_v55  ;;  %v267_v11 = vshra.s32 %v139_v61, 5  ;;  %v889_v48 = vadd.s32 %v761_v41, %v633_v56 }
  0xdc   :  { %v394_v38 = vand.u32 31, %v138_v6  ;;  %v395_v27 = vand.u32 31, %v139_v61  ;;  %v522_v35 = vshra.s32 %v266_v28, 3  ;;  %vm1016_vm9 = vcmp.eq.s32.totalorder %v3910_v2, %v888_v52  ;;  %v1380_v6 = vld [vmem:[%s5717_s0 + $0xc8] sm:$0xff] }
  0xdd   :  { %v874_v23 = vadd.s32 %v746_v42, %v618_v53  ;;  %v875_v59 = vadd.s32 %v747_v40, %v619_v16  ;;  %v523_v62 = vshra.s32 %v267_v11, 3  ;;  %vm1017_vm7 = vcmp.eq.s32.totalorder %v3910_v2, %v889_v48  ;;  %v1374_v11 = vld [vmem:[%s5717_s0 + $0x98] sm:$0xff] }
  0xde   :  { %v650_v0 = vmul.u32 4, %v522_v35  ;;  %v778_v39 = vshra.s32 %v394_v38, 3  ;;  %v779_v14 = vshra.s32 %v395_v27, 3  ;;  %vm4472_vm12 = vmpackc.low %vm1017_vm7, %vm1016_vm9  ;;  %v5971_v41 = vmov 0  ;;  %v1382_v48 = vld [vmem:[%s5717_s0 + $0xd8] sm:$0xff] }
  0xdf   :  { %v5972_v41 = vsel %vm4472_vm12, 4294967295, %v5971_v41  ;;  %vm1002_vm0 = vcmp.eq.s32.totalorder %v3910_v2, %v874_v23  ;;  %vm1003_vm13 = vcmp.eq.s32.totalorder %v3910_v2, %v875_v59  ;;  %v651_v16 = vmul.u32 4, %v523_v62  ;;  %3566 = vmatpush3.bf16.msk.msra.mxu1 %vm4472_vm12, %v5937_v12 }
  0xe0   :  { %5973 = vst [vmem:[#allocation16_spill] sm:$0xff] %v5972_v41  ;;  %v90_v35 = vadd.s32 576, %v3908_v1  ;;  %vm4482_vm3 = vmpackc.low %vm1003_vm13, %vm1002_vm0  ;;  %v5974_v3 = vmov 0  ;;  %v906_v24 = vadd.s32 %v778_v39, %v650_v0  ;;  %v91_v10 = vadd.s32 584, %v3908_v1 }
  0xe1   :  { %v5975_v3 = vsel %vm4482_vm3, 4294967295, %v5974_v3  ;;  %v122_v55 = vadd.s32 832, %v3908_v1  ;;  %v123_v23 = vadd.s32 840, %v3908_v1  ;;  %3539 = vmatprep.subr.msk.bf16.mxu0 %vm4482_vm3, %v5937_v12  ;;  %v907_v61 = vadd.s32 %v779_v14, %v651_v16 }
  0xe2   :  { %5976 = vst [vmem:[#allocation17_spill] sm:$0xff] %v5975_v3  ;;  %v218_v56 = vshra.s32 %v90_v35, 5  ;;  %v346_v42 = vand.u32 31, %v90_v35  ;;  %v1396_v40 = vpack.c.bf16 %v1380_v6, %v1372_v37  ;;  %vm1034_vm13 = vcmp.eq.s32.totalorder %v3910_v2, %v906_v24 }
  0xe3   :  { %v219_v28 = vshra.s32 %v91_v10, 5  ;;  %v347_v52 = vand.u32 31, %v91_v10  ;;  %v250_v53 = vshra.s32 %v122_v55, 5  ;;  %vm1035_vm0 = vcmp.eq.s32.totalorder %v3910_v2, %v907_v61 }
  0xe4   :  { %v474_v38 = vshra.s32 %v218_v56, 3  ;;  %v730_v27 = vshra.s32 %v346_v42, 3  ;;  %v251_v59 = vshra.s32 %v123_v23, 5  ;;  %1443 = vmatprep.mubr.bf16.mxu0 %v1396_v40  ;;  %vm4500_vm9 = vmpackc.low %vm1035_vm0, %vm1034_vm13  ;;  %v5977_v62 = vmov 0 }
  0xe5   :  { %v5978_v62 = vsel %vm4500_vm9, 4294967295, %v5977_v62  ;;  %v475_v0 = vshra.s32 %v219_v28, 3  ;;  %v731_v39 = vshra.s32 %v347_v52, 3  ;;  %v378_v14 = vand.u32 31, %v122_v55  ;;  %3567 = vmatprep.subr.msk.bf16.mxu1 %vm4500_vm9, %v5937_v12 }
  0xe6   :  { %5979 = vst [vmem:[#allocation18_spill] sm:$0xff] %v5978_v62  ;;  %v379_v37 = vand.u32 31, %v123_v23  ;;  %v602_v6 = vmul.u32 4, %v474_v38  ;;  %v506_v16 = vshra.s32 %v250_v53, 3  ;;  %v507_v35 = vshra.s32 %v251_v59, 3 }
  0xe7   :  { %v1398_v24 = vpack.c.bf16 %v1382_v48, %v1374_v11  ;;  %v603_v10 = vmul.u32 4, %v475_v0  ;;  %v762_v61 = vshra.s32 %v378_v14, 3  ;;  %v108_v42 = vadd.s32 720, %v3908_v1  ;;  %v1371_v0 = vld [vmem:[%s5717_s0 + $0x80] sm:$0xff] }
  0xe8   :  { %v763_v56 = vshra.s32 %v379_v37, 3  ;;  %v858_v40 = vadd.s32 %v730_v27, %v602_v6  ;;  %v634_v3 = vmul.u32 4, %v506_v16  ;;  %v635_v41 = vmul.u32 4, %v507_v35  ;;  %v1373_v37 = vld [vmem:[%s5717_s0 + $0x90] sm:$0xff] }
  0xe9   :  { %1492 = vmatprep.mubr.bf16.mxu1 %v1398_v24  ;;  %v109_v55 = vadd.s32 728, %v3908_v1  ;;  %v859_v23 = vadd.s32 %v731_v39, %v603_v10  ;;  %v236_v28 = vshra.s32 %v108_v42, 5  ;;  %v364_v52 = vand.u32 31, %v108_v42  ;;  %v1379_v39 = vld [vmem:[%s5717_s0 + $0xc0] sm:$0xff]  ;;  %v1381_v6 = vld [vmem:[%s5717_s0 + $0xd0] sm:$0xff] }
  0xea   :  { %v140_v62 = vadd.s32 976, %v3908_v1  ;;  %vm986_vm7 = vcmp.eq.s32.totalorder %v3910_v2, %v858_v40  ;;  %v890_v53 = vadd.s32 %v762_v61, %v634_v3  ;;  %v891_v11 = vadd.s32 %v763_v56, %v635_v41 }
  0xeb   :  { %v237_v48 = vshra.s32 %v109_v55, 5  ;;  %vm987_vm13 = vcmp.eq.s32.totalorder %v3910_v2, %v859_v23  ;;  %v365_v38 = vand.u32 31, %v109_v55  ;;  %v492_v59 = vshra.s32 %v236_v28, 3 }
  0xec   :  { %v748_v27 = vshra.s32 %v364_v52, 3  ;;  %vm4518_vm0 = vmpackc.low %vm987_vm13, %vm986_vm7  ;;  %v5980_v14 = vmov 0  ;;  %vm1018_vm9 = vcmp.eq.s32.totalorder %v3910_v2, %v890_v53  ;;  %vm1019_vm3 = vcmp.eq.s32.totalorder %v3910_v2, %v891_v11 }
  0xed   :  { %v5981_v14 = vsel %vm4518_vm0, 4294967295, %v5980_v14  ;;  %v493_v41 = vshra.s32 %v237_v48, 3  ;;  %v141_v3 = vadd.s32 984, %v3908_v1  ;;  %3540 = vmatpush3.bf16.msk.msra.mxu0 %vm4518_vm0, %v5937_v12  ;;  %vm4534_vm7 = vmpackc.low %vm1019_vm3, %vm1018_vm9  ;;  %v5983_v16 = vmov 0 }
  0xee   :  { %5982 = vst [vmem:[#allocation19_spill] sm:$0xff] %v5981_v14  ;;  %v5984_v16 = vsel %vm4534_vm7, 4294967295, %v5983_v16  ;;  %v620_v35 = vmul.u32 4, %v492_v59  ;;  %v749_v24 = vshra.s32 %v365_v38, 3  ;;  %v268_v10 = vshra.s32 %v140_v62, 5  ;;  %3568 = vmatpush3.bf16.msk.msra.mxu1 %vm4534_vm7, %v5937_v12 }
  0xef   :  { %5985 = vst [vmem:[#allocation20_spill] sm:$0xff] %v5984_v16  ;;  %v396_v61 = vand.u32 31, %v140_v62  ;;  %v621_v56 = vmul.u32 4, %v493_v41  ;;  %v269_v42 = vshra.s32 %v141_v3, 5  ;;  %v397_v40 = vand.u32 31, %v141_v3 }
  0xf0   :  { %v1395_v55 = vpack.c.bf16 %v1379_v39, %v1371_v0  ;;  %v876_v23 = vadd.s32 %v748_v27, %v620_v35  ;;  %v524_v28 = vshra.s32 %v268_v10, 3  ;;  %v1397_v53 = vpack.c.bf16 %v1381_v6, %v1373_v37 }
  0xf1   :  { %v780_v52 = vshra.s32 %v396_v61, 3  ;;  %v877_v11 = vadd.s32 %v749_v24, %v621_v56  ;;  %v525_v48 = vshra.s32 %v269_v42, 3  ;;  %v781_v14 = vshra.s32 %v397_v40, 3 }
  0xf2   :  { %1444 = vmatmul.mubr.bf16.gmra.mrb[4].mxu0 %v1395_v55  ;;  %v92_v38 = vadd.s32 592, %v3908_v1  ;;  %vm1004_vm3 = vcmp.eq.s32.totalorder %v3910_v2, %v876_v23  ;;  %v652_v62 = vmul.u32 4, %v524_v28  ;;  %1493 = vmatmul.mubr.bf16.gmra.mrb[4].mxu1 %v1397_v53  ;;  %v93_v59 = vadd.s32 600, %v3908_v1 }
  0xf3   :  { %v124_v41 = vadd.s32 848, %v3908_v1  ;;  %vm1005_vm9 = vcmp.eq.s32.totalorder %v3910_v2, %v877_v11  ;;  %v653_v27 = vmul.u32 4, %v525_v48  ;;  %v5986_v3 = vmov 0 }
  0xf4   :  { %v220_v0 = vshra.s32 %v92_v38, 5  ;;  %v348_v39 = vand.u32 31, %v92_v38  ;;  %vm4546_vm13 = vmpackc.low %vm1005_vm9, %vm1004_vm3  ;;  %v908_v37 = vadd.s32 %v780_v52, %v652_v62  ;;  %v221_v6 = vshra.s32 %v93_v59, 5 }
  0xf5   :  { %v5987_v3 = vsel %vm4546_vm13, 4294967295, %v5986_v3  ;;  %v349_v35 = vand.u32 31, %v93_v59  ;;  %v125_v24 = vadd.s32 856, %v3908_v1  ;;  %3541 = vmatprep.subr.msk.bf16.mxu0 %vm4546_vm13, %v5937_v12  ;;  %v909_v10 = vadd.s32 %v781_v14, %v653_v27 }
  0xf6   :  { %5988 = vst [vmem:[#allocation21_spill] sm:$0xff] %v5987_v3  ;;  %v476_v61 = vshra.s32 %v220_v0, 3  ;;  %v732_v56 = vshra.s32 %v348_v39, 3  ;;  %v252_v42 = vshra.s32 %v124_v41, 5  ;;  %vm1036_vm7 = vcmp.eq.s32.totalorder %v3910_v2, %v908_v37 }
  0xf7   :  { %v477_v40 = vshra.s32 %v221_v6, 3  ;;  %v733_v55 = vshra.s32 %v349_v35, 3  ;;  %v253_v23 = vshra.s32 %v125_v24, 5  ;;  %vm1037_vm3 = vcmp.eq.s32.totalorder %v3910_v2, %v909_v10 }
  0xf8   :  { %v604_v28 = vmul.u32 4, %v476_v61  ;;  %v380_v52 = vand.u32 31, %v124_v41  ;;  %v381_v53 = vand.u32 31, %v125_v24  ;;  %vm4556_vm9 = vmpackc.low %vm1037_vm3, %vm1036_vm7  ;;  %v5989_v11 = vmov 0 }
  0xf9   :  { %v5990_v11 = vsel %vm4556_vm9, 4294967295, %v5989_v11  ;;  %v605_v48 = vmul.u32 4, %v477_v40  ;;  %v508_v38 = vshra.s32 %v252_v42, 3  ;;  %v509_v14 = vshra.s32 %v253_v23, 3  ;;  %3569 = vmatprep.subr.msk.bf16.mxu1 %vm4556_vm9, %v5937_v12 }
  0xfa   :  { %5991 = vst [vmem:[#allocation22_spill] sm:$0xff] %v5990_v11  ;;  %v110_v62 = vadd.s32 736, %v3908_v1  ;;  %v860_v59 = vadd.s32 %v732_v56, %v604_v28  ;;  %v764_v27 = vshra.s32 %v380_v52, 3  ;;  %v765_v0 = vshra.s32 %v381_v53, 3 }
  0xfb   :  { %v111_v39 = vadd.s32 744, %v3908_v1  ;;  %v861_v41 = vadd.s32 %v733_v55, %v605_v48  ;;  %v636_v37 = vmul.u32 4, %v508_v38  ;;  %v637_v6 = vmul.u32 4, %v509_v14 }
  0xfc   :  { %v238_v35 = vshra.s32 %v110_v62, 5  ;;  %vm988_vm7 = vcmp.eq.s32.totalorder %v3910_v2, %v860_v59  ;;  %v366_v10 = vand.u32 31, %v110_v62  ;;  %v5992_v56 = vmov 0 }
  0xfd   :  { %v239_v24 = vshra.s32 %v111_v39, 5  ;;  %v367_v61 = vand.u32 31, %v111_v39  ;;  %vm989_vm3 = vcmp.eq.s32.totalorder %v3910_v2, %v861_v41  ;;  %v892_v42 = vadd.s32 %v764_v27, %v636_v37 }
  0xfe   :  { %v893_v40 = vadd.s32 %v765_v0, %v637_v6  ;;  %v494_v23 = vshra.s32 %v238_v35, 3  ;;  %vm4567_vm9 = vmpackc.low %vm989_vm3, %vm988_vm7  ;;  %v750_v52 = vshra.s32 %v366_v10, 3  ;;  %v142_v53 = vadd.s32 992, %v3908_v1 }
  0xff   :  { %v5993_v56 = vsel %vm4567_vm9, 4294967295, %v5992_v56  ;;  %v495_v28 = vshra.s32 %v239_v24, 3  ;;  %v751_v55 = vshra.s32 %v367_v61, 3  ;;  %3542 = vmatpush3.bf16.msk.msra.mxu0 %vm4567_vm9, %v5937_v12  ;;  %vm1020_vm13 = vcmp.eq.s32.totalorder %v3910_v2, %v892_v42 }
 0x100   :  { %5994 = vst [vmem:[#allocation23_spill] sm:$0xff] %v5993_v56  ;;  %vm1021_vm0 = vcmp.eq.s32.totalorder %v3910_v2, %v893_v40  ;;  %v622_v48 = vmul.u32 4, %v494_v23  ;;  %v143_v38 = vadd.s32 1000, %v3908_v1  ;;  %v5995_v14 = vmov 0 }
 0x101   :  { %vm4578_vm7 = vmpackc.low %vm1021_vm0, %vm1020_vm13  ;;  %v623_v62 = vmul.u32 4, %v495_v28  ;;  %v270_v59 = vshra.s32 %v142_v53, 5  ;;  %v398_v27 = vand.u32 31, %v142_v53  ;;  %v94_v0 = vadd.s32 608, %v3908_v1 }
 0x102   :  { %v5996_v14 = vsel %vm4578_vm7, 4294967295, %v5995_v14  ;;  %3570 = vmatpush3.bf16.msk.msra.mxu1 %vm4578_vm7, %v5937_v12  ;;  %v878_v39 = vadd.s32 %v750_v52, %v622_v48  ;;  %v271_v41 = vshra.s32 %v143_v38, 5  ;;  %v399_v37 = vand.u32 31, %v143_v38 }
 0x103   :  { %5997 = vst [vmem:[#allocation24_spill] sm:$0xff] %v5996_v14  ;;  %v95_v6 = vadd.s32 616, %v3908_v1  ;;  %v879_v35 = vadd.s32 %v751_v55, %v623_v62  ;;  %v526_v24 = vshra.s32 %v270_v59, 3  ;;  %v782_v10 = vshra.s32 %v398_v27, 3 }
 0x104   :  { %v222_v61 = vshra.s32 %v94_v0, 5  ;;  %vm1006_vm0 = vcmp.eq.s32.totalorder %v3910_v2, %v878_v39  ;;  %v527_v42 = vshra.s32 %v271_v41, 3  ;;  %v783_v40 = vshra.s32 %v399_v37, 3 }
 0x105   :  { %v223_v23 = vshra.s32 %v95_v6, 5  ;;  %vm1007_vm13 = vcmp.eq.s32.totalorder %v3910_v2, %v879_v35  ;;  %v654_v28 = vmul.u32 4, %v526_v24  ;;  %v350_v53 = vand.u32 31, %v94_v0 }
 0x106   :  { %v351_v14 = vand.u32 31, %v95_v6  ;;  %vm4589_vm3 = vmpackc.low %vm1007_vm13, %vm1006_vm0  ;;  %v5998_v52 = vmov 0  ;;  %v655_v48 = vmul.u32 4, %v527_v42  ;;  %v478_v38 = vshra.s32 %v222_v61, 3 }
 0x107   :  { %v5999_v52 = vsel %vm4589_vm3, 4294967295, %v5998_v52  ;;  %v479_v55 = vshra.s32 %v223_v23, 3  ;;  %v126_v62 = vadd.s32 864, %v3908_v1  ;;  %3543 = vmatprep.subr.msk.bf16.mxu0 %vm4589_vm3, %v5937_v12  ;;  %v910_v59 = vadd.s32 %v782_v10, %v654_v28 }
 0x108   :  { %6000 = vst [vmem:[#allocation25_spill] sm:$0xff] %v5999_v52  ;;  %v734_v27 = vshra.s32 %v350_v53, 3  ;;  %v735_v39 = vshra.s32 %v351_v14, 3  ;;  %v127_v41 = vadd.s32 872, %v3908_v1  ;;  %v911_v0 = vadd.s32 %v783_v40, %v655_v48 }
 0x109   :  { %v606_v37 = vmul.u32 4, %v478_v38  ;;  %v607_v6 = vmul.u32 4, %v479_v55  ;;  %v254_v35 = vshra.s32 %v126_v62, 5  ;;  %vm1038_vm0 = vcmp.eq.s32.totalorder %v3910_v2, %v910_v59 }
 0x10a   :  { %v255_v24 = vshra.s32 %v127_v41, 5  ;;  %v382_v61 = vand.u32 31, %v126_v62  ;;  %v383_v42 = vand.u32 31, %v127_v41  ;;  %vm1039_vm13 = vcmp.eq.s32.totalorder %v3910_v2, %v911_v0 }
 0x10b   :  { %v862_v23 = vadd.s32 %v734_v27, %v606_v37  ;;  %v863_v56 = vadd.s32 %v735_v39, %v607_v6  ;;  %v510_v52 = vshra.s32 %v254_v35, 3  ;;  %vm4600_vm3 = vmpackc.low %vm1039_vm13, %vm1038_vm0  ;;  %v6001_v10 = vmov 0 }
 0x10c   :  { %v6002_v10 = vsel %vm4600_vm3, 4294967295, %v6001_v10  ;;  %v511_v14 = vshra.s32 %v255_v24, 3  ;;  %v766_v28 = vshra.s32 %v382_v61, 3  ;;  %v767_v40 = vshra.s32 %v383_v42, 3  ;;  %3571 = vmatprep.subr.msk.bf16.mxu1 %vm4600_vm3, %v5937_v12 }
 0x10d   :  { %6003 = vst [vmem:[#allocation26_spill] sm:$0xff] %v6002_v10  ;;  %v112_v53 = vadd.s32 752, %v3908_v1  ;;  %vm990_vm7 = vcmp.eq.s32.totalorder %v3910_v2, %v862_v23  ;;  %vm991_vm9 = vcmp.eq.s32.totalorder %v3910_v2, %v863_v56  ;;  %v638_v48 = vmul.u32 4, %v510_v52 }
 0x10e   :  { %v113_v38 = vadd.s32 760, %v3908_v1  ;;  %vm4611_vm0 = vmpackc.low %vm991_vm9, %vm990_vm7  ;;  %v6004_v55 = vmov 0  ;;  %v639_v62 = vmul.u32 4, %v511_v14  ;;  %v144_v39 = vadd.s32 1008, %v3908_v1 }
 0x10f   :  { %v6005_v55 = vsel %vm4611_vm0, 4294967295, %v6004_v55  ;;  %v240_v59 = vshra.s32 %v112_v53, 5  ;;  %v368_v27 = vand.u32 31, %v112_v53  ;;  %3544 = vmatpush3.bf16.msk.msra.mxu0 %vm4611_vm0, %v5937_v12  ;;  %v894_v41 = vadd.s32 %v766_v28, %v638_v48 }
 0x110   :  { %6006 = vst [vmem:[#allocation27_spill] sm:$0xff] %v6005_v55  ;;  %v241_v0 = vshra.s32 %v113_v38, 5  ;;  %v369_v37 = vand.u32 31, %v113_v38  ;;  %v145_v56 = vadd.s32 1016, %v3908_v1  ;;  %v895_v52 = vadd.s32 %v767_v40, %v639_v62 }
 0x111   :  { %v496_v6 = vshra.s32 %v240_v59, 3  ;;  %v752_v35 = vshra.s32 %v368_v27, 3  ;;  %v272_v24 = vshra.s32 %v144_v39, 5  ;;  %vm1022_vm9 = vcmp.eq.s32.totalorder %v3910_v2, %v894_v41 }
 0x112   :  { %v497_v61 = vshra.s32 %v241_v0, 3  ;;  %v753_v42 = vshra.s32 %v369_v37, 3  ;;  %v273_v23 = vshra.s32 %v145_v56, 5  ;;  %vm1023_vm7 = vcmp.eq.s32.totalorder %v3910_v2, %v895_v52 }
 0x113   :  { %v624_v14 = vmul.u32 4, %v496_v6  ;;  %v400_v53 = vand.u32 31, %v144_v39  ;;  %v401_v55 = vand.u32 31, %v145_v56  ;;  %vm4622_vm13 = vmpackc.low %vm1023_vm7, %vm1022_vm9  ;;  %v6007_v28 = vmov 0 }
 0x114   :  { %v6008_v28 = vsel %vm4622_vm13, 4294967295, %v6007_v28  ;;  %v625_v48 = vmul.u32 4, %v497_v61  ;;  %v528_v38 = vshra.s32 %v272_v24, 3  ;;  %v529_v40 = vshra.s32 %v273_v23, 3  ;;  %3572 = vmatpush3.bf16.msk.msra.mxu1 %vm4622_vm13, %v5937_v12 }
 0x115   :  { %6009 = vst [vmem:[#allocation28_spill] sm:$0xff] %v6008_v28  ;;  %v96_v62 = vadd.s32 624, %v3908_v1  ;;  %v880_v59 = vadd.s32 %v752_v35, %v624_v14  ;;  %v784_v27 = vshra.s32 %v400_v53, 3  ;;  %v785_v41 = vshra.s32 %v401_v55, 3  ;;  %v1360_v55 = vld [vmem:[%s5717_s0 + $0x28] sm:$0xff] }
 0x116   :  { %v97_v0 = vadd.s32 632, %v3908_v1  ;;  %v881_v39 = vadd.s32 %v753_v42, %v625_v48  ;;  %v656_v37 = vmul.u32 4, %v528_v38  ;;  %v657_v56 = vmul.u32 4, %v529_v40  ;;  %v1368_v35 = vld [vmem:[%s5717_s0 + $0x68] sm:$0xff]  ;;  %v1362_v40 = vld [vmem:[%s5717_s0 + $0x38] sm:$0xff] }
 0x117   :  { %v224_v52 = vshra.s32 %v96_v62, 5  ;;  %vm1008_vm9 = vcmp.eq.s32.totalorder %v3910_v2, %v880_v59  ;;  %v352_v24 = vand.u32 31, %v96_v62  ;;  %v6010_v42 = vmov 0  ;;  %v1370_v62 = vld [vmem:[%s5717_s0 + $0x78] sm:$0xff] }
 0x118   :  { %v225_v6 = vshra.s32 %v97_v0, 5  ;;  %v353_v61 = vand.u32 31, %v97_v0  ;;  %vm1009_vm7 = vcmp.eq.s32.totalorder %v3910_v2, %v881_v39  ;;  %v912_v23 = vadd.s32 %v784_v27, %v656_v37 }
 0x119   :  { %v913_v10 = vadd.s32 %v785_v41, %v657_v56  ;;  %v480_v28 = vshra.s32 %v224_v52, 3  ;;  %vm4639_vm13 = vmpackc.low %vm1009_vm7, %vm1008_vm9  ;;  %v736_v53 = vshra.s32 %v352_v24, 3  ;;  %v128_v38 = vadd.s32 880, %v3908_v1 }
 0x11a   :  { %v6011_v42 = vsel %vm4639_vm13, 4294967295, %v6010_v42  ;;  %v481_v14 = vshra.s32 %v225_v6, 3  ;;  %v737_v48 = vshra.s32 %v353_v61, 3  ;;  %3545 = vmatprep.subr.msk.bf16.mxu0 %vm4639_vm13, %v5937_v12  ;;  %vm1040_vm9 = vcmp.eq.s32.totalorder %v3910_v2, %v912_v23 }
 0x11b   :  { %6012 = vst [vmem:[#allocation29_spill] sm:$0xff] %v6011_v42  ;;  %vm1041_vm7 = vcmp.eq.s32.totalorder %v3910_v2, %v913_v10  ;;  %v608_v59 = vmul.u32 4, %v480_v28  ;;  %v129_v27 = vadd.s32 888, %v3908_v1  ;;  %v6013_v41 = vmov 0  ;;  %v4666_v42 = vld [vmem:[%s5717_s0 + $0x20] sm:$0xff] }
 0x11c   :  { %vm4656_vm0 = vmpackc.low %vm1041_vm7, %vm1040_vm9  ;;  %v609_v0 = vmul.u32 4, %v481_v14  ;;  %v256_v39 = vshra.s32 %v128_v38, 5  ;;  %v384_v37 = vand.u32 31, %v128_v38  ;;  %v1392_v56 = vpack.c.bf16 %v1368_v35, %v1360_v55  ;;  %6016 = vst [vmem:[#allocation31_spill] sm:$0xff] %v4666_v42  ;;  %v4671_v55 = vld [vmem:[%s5717_s0 + $0x60] sm:$0xff] }
 0x11d   :  { %v6014_v41 = vsel %vm4656_vm0, 4294967295, %v6013_v41  ;;  %3573 = vmatprep.subr.msk.bf16.mxu1 %vm4656_vm0, %v5937_v12  ;;  %v864_v52 = vadd.s32 %v736_v53, %v608_v59  ;;  %v257_v6 = vshra.s32 %v129_v27, 5  ;;  %v385_v24 = vand.u32 31, %v129_v27  ;;  %6017 = vst [vmem:[#allocation32_spill] sm:$0xff] %v4671_v55  ;;  %v1376_v53 = vld [vmem:[%s5717_s0 + $0xa8] sm:$0xff] }
 0x11e   :  { %6015 = vst [vmem:[#allocation30_spill] sm:$0xff] %v6014_v41  ;;  %v1394_v61 = vpack.c.bf16 %v1370_v62, %v1362_v40  ;;  %v865_v10 = vadd.s32 %v737_v48, %v609_v0  ;;  %v512_v28 = vshra.s32 %v256_v39, 3  ;;  %v768_v23 = vshra.s32 %v384_v37, 3  ;;  %1533 = vmatprep.mubr.bf16.mxu0 %v1392_v56  ;;  %v1384_v48 = vld [vmem:[%s5717_s0 + $0xe8] sm:$0xff]  ;;  %v4693_v37 = vld [vmem:[%s5717_s0 + $0x30] sm:$0xff] }
 0x11f   :  { %vm992_vm9 = vcmp.eq.s32.totalorder %v3910_v2, %v864_v52  ;;  %v513_v35 = vshra.s32 %v257_v6, 3  ;;  %v769_v14 = vshra.s32 %v385_v24, 3  ;;  %v6018_v40 = vmov 0  ;;  %6021 = vst [vmem:[#allocation34_spill] sm:$0xff] %v4693_v37  ;;  %v4698_v56 = vld [vmem:[%s5717_s0 + $0x70] sm:$0xff]  ;;  %v4704_v52 = vld [vmem:[%s5717_s0 + $0xb8] sm:$0xff] }
 0x120   :  { %1582 = vmatprep.mubr.bf16.mxu1 %v1394_v61  ;;  %vm993_vm7 = vcmp.eq.s32.totalorder %v3910_v2, %v865_v10  ;;  %v640_v38 = vmul.u32 4, %v512_v28  ;;  %v1391_v59 = vpack.c.bf16 %v4671_v55, %v4666_v42  ;;  %v1400_v0 = vpack.c.bf16 %v1384_v48, %v1376_v53  ;;  %6022 = vst [vmem:[#allocation35_spill] sm:$0xff] %v4698_v56  ;;  %v1386_v6 = vld [vmem:[%s5717_s0 + $0xf8] sm:$0xff]  ;;  %v4719_v10 = vld [vmem:[%s5717_s0 + $0xa0] sm:$0xff]  ;;  %v4740_v53 = vld [vmem:[%s5717_s0 + $0xf0] sm:$0xff] }
 0x121   :  { %vm4681_vm0 = vmpackc.low %vm993_vm7, %vm992_vm9  ;;  %v641_v62 = vmul.u32 4, %v513_v35  ;;  %6023 = vst [vmem:[#allocation36_spill] sm:$0xff] %v4704_v52  ;;  %v6024_v24 = vmov 0  ;;  %v1393_v61 = vpack.c.bf16 %v4698_v56, %v4693_v37  ;;  %v4724_v28 = vld [vmem:[%s5717_s0 + $0xe0] sm:$0xff]  ;;  %v5805_v37 = vmov 0.0|0.0  }
 0x122   :  { %v6019_v40 = vsel %vm4681_vm0, 4294967295, %v6018_v40  ;;  %3546 = vmatpush3.bf16.msk.msra.mxu0 %vm4681_vm0, %v5937_v12  ;;  %v896_v27 = vadd.s32 %v768_v23, %v640_v38  ;;  %6027 = vst [vmem:[#allocation38_spill] sm:$0xff] %v4719_v10  ;;  %6028 = vst [vmem:[#allocation39_spill] sm:$0xff] %v4724_v28  ;;  %v1402_v23 = vpack.c.bf16 %v1386_v6, %v4704_v52  ;;  %vm6064_vm4 = vcmask 130048  }
 0x123   :  { %6020 = vst [vmem:[#allocation33_spill] sm:$0xff] %v6019_v40  ;;  %v897_v39 = vadd.s32 %v769_v14, %v641_v62  ;;  %v1399_v35 = vpack.c.bf16 %v4724_v28, %v4719_v10  ;;  %v4735_v14 = vld [vmem:[%s5717_s0 + $0xb0] sm:$0xff]  ;;  %6030 = vst [vmem:[#allocation41_spill] sm:$0xff] %v4740_v53  ;;  %3811 = vmatprep.subr.bf16.mxu0 %v5805_v37  ;;  %v2264_v33 = vpack.c.bf16 %v4982_v60, %v4977_v49 }
 0x124   :  { %vm1024_vm9 = vcmp.eq.s32.totalorder %v3910_v2, %v896_v27  ;;  %6029 = vst [vmem:[#allocation40_spill] sm:$0xff] %v4735_v14  ;;  %v1401_v48 = vpack.c.bf16 %v4740_v53, %v4735_v14  ;;  %vm6065_vm15 = vmmov %vm6064_vm4 }
 0x125   :  { %vm1025_vm7 = vcmp.eq.s32.totalorder %v3910_v2, %v897_v39  ;;  %1534 = vmatmul.mubr.bf16.vlgmr.msra.gmra.mrb[8].mxu0 %v1391_v59 }
 0x126   :  { %vm4710_vm0 = vmpackc.low %vm1025_vm7, %vm1024_vm9  ;;  %1541 = vmatprep.mubr.bf16.mxu0 %v1400_v0  ;;  %vm5820_vm9 = vmmov 0   ;;  %vm5828_vm7 = vcmask 261120  }
 0x127   :  { %v6025_v24 = vsel %vm4710_vm0, 4294967295, %v6024_v24  ;;  %3574 = vmatpush3.bf16.msk.msra.mxu1 %vm4710_vm0, %v5937_v12  ;;  %vm5822_vm0 = vcmask 1043456  }
 0x128   :  { %6026 = vst [vmem:[#allocation37_spill] sm:$0xff] %v6025_v24 }
 0x12a   :  { %1583 = vmatmul.mubr.bf16.vlgmr.msra.gmra.mrb[8].mxu1 %v1393_v61 }
 0x12b   :  { %1590 = vmatprep.mubr.bf16.mxu1 %v1402_v23 }
 0x12d   :  { %1542 = vmatmul.mubr.bf16.gmra.mrb[12].mxu0 %v1399_v35  ;;  %v5803_v35 = vmov 0.0  }
 0x12e   :  { %3743 = vmatprep.mubr.msk.f32.mxu0 %vm5820_vm9, %v5803_v35 }
 0x132   :  { %1591 = vmatmul.mubr.bf16.gmra.mrb[12].mxu1 %v1401_v48  ;;  %v5812_v48 = vmov 0  }
 0x133   :  { %3841 = vset.pattern.permute.xlu0 %v5812_v48  ;;  %3842 = vset.pattern.permute.xlu1 %v5812_v48 }
 0x166   :  { %v3491_v38 = vpop.f32.mrb[0].mxu0 }
 0x167   :  { %v3492_v62 = vpop.f32.mrb[1].mxu0 }
 0x168   :  { %v3493_v59 = vadd.f32 %v3492_v62, %v3491_v38  ;;  %v3494_v27 = vpop.f32.mrb[2].mxu0  ;;  %v1350_v38 = vld [vmem:[%s5718_s2] sm:$0xff] }
 0x169   :  { %v3495_v0 = vpop.f32.mrb[3].mxu0  ;;  %1601 = vperm.xlu0 %3841, %v1350_v38  }
 0x16a   :  { %v3519_v39 = vpop.f32.mrb[0].mxu1  ;;  %v3496_v6 = vadd.f32 %v3495_v0, %v3494_v27 }
 0x16b   :  { %v3520_v61 = vpop.f32.mrb[1].mxu1 }
 0x16c   :  { %v3521_v23 = vadd.f32 %v3520_v61, %v3519_v39  ;;  %v3522_v28 = vpop.f32.mrb[2].mxu1 }
 0x16d   :  { %v3523_v52 = vpop.f32.mrb[3].mxu1 }
 0x16e   :  { %v1487_v10 = vadd.f32 %v3521_v23, %v3493_v59  ;;  %v3524_v56 = vadd.f32 %v3523_v52, %v3522_v28 }
 0x170   :  { %v1490_v55 = vadd.f32 %v3524_v56, %v3496_v6 }
 0x1c5   :  { %v3497_v52 = vpop.f32.mrb[4].mxu0  ;;  %v3525_v56 = vpop.f32.mrb[4].mxu1 }
 0x1c6   :  { %v3498_v28 = vpop.f32.mrb[5].mxu0  ;;  %v3526_v59 = vpop.f32.mrb[5].mxu1 }
 0x1c7   :  { %v3499_v62 = vadd.f32 %v3498_v28, %v3497_v52  ;;  %v3500_v27 = vpop.f32.mrb[6].mxu0  ;;  %v3527_v0 = vadd.f32 %v3526_v59, %v3525_v56  ;;  %v3528_v39 = vpop.f32.mrb[6].mxu1 }
 0x1c8   :  { %v3501_v6 = vpop.f32.mrb[7].mxu0  ;;  %v3529_v23 = vpop.f32.mrb[7].mxu1 }
 0x1c9   :  { %v3502_v61 = vadd.f32 %v3501_v6, %v3500_v27  ;;  %v1495_v35 = vadd.f32 %v3527_v0, %v3499_v62  ;;  %v3530_v37 = vadd.f32 %v3529_v23, %v3528_v39 }
 0x1cb   :  { %v1498_v53 = vadd.f32 %v3530_v37, %v3502_v61 }
 0x1f8   :  { %v3547_v14 = vpop.f32.mrb[8].mxu0 }
 0x1f9   :  { %v3548_v42 = vpop.f32.mrb[9].mxu0 }
 0x1fa   :  { %v3549_v24 = vadd.f32 %v3548_v42, %v3547_v14  ;;  %v3550_v40 = vpop.f32.mrb[10].mxu0 }
 0x1fb   :  { %v3551_v48 = vpop.f32.mrb[11].mxu0 }
 0x1fc   :  { %v1536_v38 = vadd.f32 %v3549_v24, %v1487_v10  ;;  %v3552_v41 = vadd.f32 %v3551_v48, %v3550_v40 }
 0x1fd   :  { %v3575_v11 = vpop.f32.mrb[8].mxu1 }
 0x1fe   :  { %v3576_v3 = vpop.f32.mrb[9].mxu1  ;;  %v1539_v52 = vadd.f32 %v3552_v41, %v1490_v55 }
 0x1ff   :  { %v3577_v28 = vadd.f32 %v3576_v3, %v3575_v11  ;;  %v3578_v16 = vpop.f32.mrb[10].mxu1  ;;  %v6031_v11 = vmov 0.0|0.0  }
 0x200   :  { %v3579_v56 = vpop.f32.mrb[11].mxu1  ;;  %v3553_v59 = vpop.f32.mrb[12].mxu0 }
 0x201   :  { %v1585_v36 = vadd.f32 %v3577_v28, %v1536_v38  ;;  %v3580_v27 = vadd.f32 %v3579_v56, %v3578_v16  ;;  %v3554_v6 = vpop.f32.mrb[13].mxu0  ;;  %v4783_v28 = vld [vmem:[%s5719_s1 + $0x18] sm:$0xff]  ;;  %v4789_v56 = vpop.permute.xlu0 %1601 }
 0x202   :  { %v3555_v62 = vadd.f32 %v3554_v6, %v3553_v59  ;;  %v3556_v0 = vpop.f32.mrb[14].mxu0  ;;  %6033 = vst [vmem:[#allocation42_spill] sm:$0xff] %v4783_v28  ;;  %6034 = vst [vmem:[#allocation43_spill] sm:$0xff] %v4789_v56 }
 0x203   :  { %v1588_v37 = vadd.f32 %v3580_v27, %v1539_v52  ;;  %v3557_v39 = vpop.f32.mrb[15].mxu0  ;;  %v4774_v52 = vld [vmem:[%s5719_s1 + $0x10] sm:$0xff] }
 0x204   :  { %v1544_v61 = vadd.f32 %v3555_v62, %v1495_v35  ;;  %v3558_v42 = vadd.f32 %v3557_v39, %v3556_v0  ;;  %v4756_v35 = vld [vmem:[%s5719_s1] sm:$0xff] }
 0x205   :  { %v3812_v14 = vpack.c.bf16 %v1588_v37, %v1585_v36  ;;  %v3581_v23 = vpop.f32.mrb[12].mxu1  ;;  %v6032_v36 = vmov 0.0  }
 0x206   :  { %v3582_v24 = vpop.f32.mrb[13].mxu1  ;;  %v1547_v40 = vadd.f32 %v3558_v42, %v1498_v53  ;;  %v4765_v53 = vld [vmem:[%s5719_s1 + $0x8] sm:$0xff] }
 0x207   :  { %v3583_v10 = vadd.f32 %v3582_v24, %v3581_v23  ;;  %v3584_v48 = vpop.f32.mrb[14].mxu1  ;;  %3813 = vmatpush3.bf16.msra.mxu0 %v3812_v14  ;;  %v1353_v14 = vld [vmem:[%s5718_s2 + $0x18] sm:$0xff] }
 0x208   :  { %v3585_v3 = vpop.f32.mrb[15].mxu1  ;;  %3814 = vmatprep.subr.bf16.mxu0 %v6031_v11 }
 0x209   :  { %v1593_v41 = vadd.f32 %v3583_v10, %v1544_v61  ;;  %v3586_v55 = vadd.f32 %v3585_v3, %v3584_v48  ;;  %v4806_v48 = vld [vmem:[%s5719_s1 + $0x20] sm:$0xff]  ;;  %v6036_v3 = vmov 0  }
 0x20a   :  { %6035 = vst [vmem:[#allocation44_spill] sm:$0xff] %v4806_v48 }
 0x20b   :  { %v1596_v16 = vadd.f32 %v3586_v55, %v1547_v40 }
 0x20d   :  { %v3815_v38 = vpack.c.bf16 %v1596_v16, %v1593_v41 }
 0x20f   :  { %3816 = vmatpush3.bf16.msra.mxu0 %v3815_v38 }
 0x212   :  { %3744 = vmatmul.mubr.msk.f32.vlgmr.msra.gmra.mrb[16].mxu0 %vm5828_vm7, %v4756_v35 }
 0x213   :  { %3746 = vmatprep.mubr.msk.f32.mxu0 %vm5820_vm9, %v6032_v36 }
 0x216   :  { %3747 = vmatmul.mubr.msk.f32.gmra.mrb[18].mxu0 %vm5828_vm7, %v4765_v53 }
 0x217   :  { %3749 = vmatprep.mubr.msk.f32.mxu0 %vm5820_vm9, %v6032_v36 }
 0x21a   :  { %3750 = vmatmul.mubr.msk.f32.gmra.mrb[20].mxu0 %vm5828_vm7, %v4774_v52 }
 0x21b   :  { %3752 = vmatprep.mubr.msk.f32.mxu0 %vm5820_vm9, %v6032_v36 }
 0x21e   :  { %3753 = vmatmul.mubr.msk.f32.gmra.mrb[22].mxu0 %vm5828_vm7, %v4783_v28 }
 0x21f   :  { %3755 = vmatprep.mubr.msk.f32.mxu0 %vm5820_vm9, %v6032_v36  ;;  %vm5827_vm9 = vcmask 31744  }
 0x222   :  { %3756 = vmatmul.mubr.msk.f32.gmra.mrb[24].mxu0 %vm5828_vm7, %v4806_v48 }
 0x223   :  { %2069 = vmatprep.mubr.bf16.mxu0 %v6036_v3 }
 0x2e5   :  { %v1706_v59 = vpop.f32.mrb[16].mxu0 }
 0x2e6   :  { %v1707_v27 = vadd.f32 %v1706_v59, %v4789_v56  ;;  %v3745_v6 = vpop.f32.mrb[17].mxu0  ;;  %v1351_v59 = vld [vmem:[%s5718_s2 + $0x8] sm:$0xff] }
 0x2e8   :  { %v1730_v62 = vmul.f32 0.5, %v1707_v27  ;;  %v1764_v0 = vrot.slane %v1707_v27, 4  ;;  %v1352_v27 = vld [vmem:[%s5718_s2 + $0x10] sm:$0xff] }
 0x2e9   :  { %v1711_v37 = vpop.f32.mrb[18].mxu0 }
 0x2ea   :  { %3758 = vmatprep.subr.msk.mxu1 %vm5822_vm0, %v1764_v0  ;;  %1731 = vxpose.xlu0.b32.start.end [1/1] (short) (narrow) %v1730_v62, 16  ;;  %v3748_v39 = vpop.f32.mrb[19].mxu0 }
 0x2eb   :  { %3759 = vmatpush3.msk.msra.mxu1 %vm5822_vm0, %v1764_v0  ;;  %vm5829_vm0 = vcmask 130048  }
 0x2ed   :  { %v4794_v61 = vpop.f32.mrb[20].mxu0 }
 0x2ee   :  { %v3751_v42 = vpop.f32.mrb[21].mxu0 }
 0x2f1   :  { %v4799_v23 = vpop.f32.mrb[22].mxu0 }
 0x2f2   :  { %v3754_v24 = vpop.f32.mrb[23].mxu0 }
 0x317   :  { %1616 = vperm.xlu0 %3841, %v1353_v14  }
 0x36a   :  { %v1747_v40 = vpop.trf.xlu0 }
 0x36b   :  { %3760 = vmatprep.mubr.msk.f32.mxu1 %vm5827_vm9, %v1747_v40 }
 0x36e   :  { %v1748_v10 = vpop.trf.xlu0 }
 0x36f   :  { %3761 = vmatmul.mubr.msk.f32.vlgmr.msra.gmra.mrb[16].mxu1 %vm5827_vm9, %v1748_v10 }
 0x442   :  { %v3762_v41 = vpop.f32.mrb[16].mxu1 }
 0x443   :  { %v1841_v55 = vpop.f32.mrb[17].mxu1  ;;  %v1854_v38 = vsel %vm5829_vm0, %v3762_v41, -inf }
 0x444   :  { %v1851_v16 = vsel %vm5829_vm0, %v1841_v55, -inf }
 0x445   :  { %1852 = vmax.xlane.f32.xlu1 %v1851_v16 }
 0x449   :  { %1855 = vmax.xlane.f32.xlu1 %v1854_v38 }
 0x45a   :  { %1606 = vperm.xlu1 %3842, %v1351_v59  }
 0x45e   :  { %1611 = vperm.xlu1 %3842, %v1352_v27  }
 0x4d2   :  { %v1853_v6 = vpop.xlane.xlu1 %1852 }
 0x4d3   :  { %v1857_v62 = vsub.f32 %v1841_v55, %v1853_v6  ;;  %v1726_v55 = vpop.f32.mrb[24].mxu0  ;;  %v1235_v6 = vadd.s32 256, %v3910_v2 }
 0x4d4   :  { %v3757_v27 = vpop.f32.mrb[25].mxu0 }
 0x4d5   :  { %v1859_v42 = vmul.f32 1.442695, %v1857_v62  ;;  %v5843_v27 = vmov 1.0|1.0  }
 0x4d6   :  { %v1856_v0 = vpop.xlane.xlu1 %1855 }
 0x4d7   :  { %v1858_v39 = vsub.f32 %v3762_v41, %v1856_v0  ;;  %v1354_v41 = vld [vmem:[%s5718_s2 + $0x20] sm:$0xff] }
 0x4d9   :  { %v1861_v14 = vmul.f32 1.442695, %v1858_v39  ;;  %v1243_v39 = vshra.s32 %v1235_v6, 5 }
 0x4da   :  { %v4819_v24 = vpop.permute.xlu1 %1606 }
 0x4db   :  { %6037 = vst [vmem:[#allocation45_spill] sm:$0xff] %v4819_v24  ;;  %3843 = vpow2.f32 %v1861_v14  ;;  %v1712_v40 = vadd.f32 %v1711_v37, %v4819_v24  ;;  %v1236_v37 = vadd.s32 384, %v3910_v2 }
 0x4dc   :  { %3845 = vpow2.f32 %v1859_v42  ;;  %v1251_v42 = vand.u32 31, %v1235_v6 }
 0x4dd   :  { %3767 = vmatprep.mubr.msk.f32.mxu1 %vm5829_vm0, %v1712_v40  ;;  %v1244_v62 = vshra.s32 %v1236_v37, 5  ;;  %v1252_v0 = vand.u32 31, %v1236_v37  ;;  %v6040_v37 = vmov 0 }
 0x4de   :  { %v1275_v24 = vshra.s32 %v1251_v42, 3 }
 0x4df   :  { %v1260_v14 = vshra.s32 %v1244_v62, 3  ;;  %v1276_v40 = vshra.s32 %v1252_v0, 3 }
 0x4e5   :  { %v3844_v10 = vpop.eup %3843 }
 0x4e6   :  { %v1866_v16 = vsel %vm5829_vm0, %v3844_v10, 0.0  ;;  %v3846_v38 = vpop.eup %3845 }
 0x4e7   :  { %1867 = vadd.xlane.f32.xlu1 %v1866_v16  ;;  %v1863_v59 = vsel %vm5829_vm0, %v3846_v38, 0.0  ;;  %v1259_v16 = vshra.s32 %v1243_v39, 3  ;;  %v6043_v39 = vmov 0 }
 0x4e9   :  { %v1267_v56 = vmul.u32 4, %v1259_v16 }
 0x4eb   :  { %1864 = vadd.xlane.f32.xlu1 %v1863_v59  ;;  %v1268_v59 = vmul.u32 4, %v1260_v14  ;;  %v1283_v28 = vadd.s32 %v1275_v24, %v1267_v56  ;;  %v4848_v56 = vpop.permute.xlu1 %1611  ;;  %v4860_v14 = vpop.permute.xlu0 %1616 }
 0x4ec   :  { %6045 = vst [vmem:[#allocation46_spill] sm:$0xff] %v4860_v14 }
 0x4ed   :  { %v1284_v48 = vadd.s32 %v1276_v40, %v1268_v59  ;;  %vm1291_vm0 = vcmp.eq.s32.totalorder %v3908_v1, %v1283_v28  ;;  %vm1299_vm13 = vcmp.eq.s32.totalorder %v3917_v7, %v1283_v28  ;;  %v1717_v40 = vadd.f32 %v4794_v61, %v4848_v56 }
 0x4ee   :  { %vm4841_vm12 = vmpackc.low %vm1299_vm13, %vm1291_vm0  ;;  %v1234_v59 = vadd.s32 128, %v3910_v2  ;;  %v1241_v61 = vshra.s32 %v3910_v2, 5 }
 0x4ef   :  { %vm1292_vm9 = vcmp.eq.s32.totalorder %v3908_v1, %v1284_v48  ;;  %vm1300_vm7 = vcmp.eq.s32.totalorder %v3917_v7, %v1284_v48  ;;  %v6041_v37 = vsel %vm4841_vm12, 4294967295, %v6040_v37 }
 0x4f0   :  { %vm4834_vm3 = vmpackc.low %vm1300_vm7, %vm1292_vm9  ;;  %vm6042_vm9 = vcmask 130048  }
 0x4f1   :  { %3228 = vmatprep.subr.msk.bf16.mxu0 %vm4834_vm3, %v5843_v27  ;;  %vm4852_vm0 = vmpackc.low %vm6042_vm9, %vm6042_vm9 }
 0x4f2   :  { %3230 = vmatpush1.bf16.msk.msra.mxu0 %vm4841_vm12, %v5843_v27  ;;  %v6044_v39 = vsel %vm4852_vm0, 4294967295, %v6043_v39  ;;  %vm6047_vm13 = vmmov %vm6042_vm9 }
 0x4f3   :  { %vm6048_vm7 = vmmov %vm6042_vm9 }
 0x4f4   :  { %vm6049_vm9 = vmmov %vm6048_vm7 }
 0x4fc   :  { %1621 = vperm.xlu1 %3842, %v1354_v41   ;;  %v6038_v41 = vmov 0 }
 0x4fd   :  { %v6039_v41 = vsel %vm4834_vm3, 4294967295, %v6038_v41 }
 0x574   :  { %v1868_v28 = vpop.xlane.xlu1 %1867 }
 0x575   :  { %3847 = vrcp.f32 %v1868_v28  ;;  %v1242_v28 = vshra.s32 %v1234_v59, 5 }
 0x578   :  { %v1865_v48 = vpop.xlane.xlu1 %1864 }
 0x579   :  { %3849 = vrcp.f32 %v1865_v48  ;;  %v1250_v48 = vand.u32 31, %v1234_v59  ;;  %v6052_v59 = vmov 0 }
 0x57f   :  { %v3848_v24 = vpop.eup %3847 }
 0x580   :  { %v1872_v0 = vmul.f32 %v3848_v24, %v3844_v10  ;;  %v1722_v10 = vadd.f32 %v4799_v23, %v4860_v14  ;;  %v1258_v24 = vshra.s32 %v1242_v28, 3  ;;  %v1249_v23 = vand.u32 31, %v3910_v2 }
 0x581   :  { %v1238_v28 = vadd.s32 640, %v3910_v2 }
 0x583   :  { %v3850_v6 = vpop.eup %3849 }
 0x584   :  { %v1871_v62 = vmul.f32 %v3850_v6, %v3846_v38  ;;  %v4866_v38 = vpop.permute.xlu1 %1621  ;;  %v1257_v6 = vshra.s32 %v1241_v61, 3  ;;  %v1240_v61 = vadd.s32 896, %v3910_v2 }
 0x585   :  { %6046 = vst [vmem:[#allocation47_spill] sm:$0xff] %v4866_v38  ;;  %v1727_v16 = vadd.f32 %v1726_v55, %v4866_v38 }
 0x586   :  { %v3817_v42 = vpack.c.bf16 %v1872_v0, %v1871_v62  ;;  %v1266_v62 = vmul.u32 4, %v1258_v24  ;;  %v1274_v0 = vshra.s32 %v1250_v48, 3  ;;  %v1246_v48 = vshra.s32 %v1238_v28, 5 }
 0x587   :  { %v1254_v24 = vand.u32 31, %v1238_v28  ;;  %v6055_v28 = vmov 0 }
 0x588   :  { %3819 = vmatprep.subr.msk.bf16.mxu1 %vm4852_vm0, %v3817_v42 }
 0x589   :  { %3822 = vmatpush3.bf16.xpose.msk.msra.mxu1 %vm4852_vm0, %v3817_v42  ;;  %v1265_v42 = vmul.u32 4, %v1257_v6  ;;  %v1256_v6 = vand.u32 31, %v1240_v61 }
 0x590   :  { %3768 = vmatmul.mubr.msk.f32.vlgmr.msra.gmra.mrb[18].mxu1 %vm6047_vm13, %v1717_v40  ;;  %v1273_v40 = vshra.s32 %v1249_v23, 3  ;;  %v1248_v23 = vshra.s32 %v1240_v61, 5  ;;  %v6058_v61 = vmov 0 }
 0x591   :  { %3770 = vmatprep.mubr.msk.f32.mxu1 %vm6048_vm7, %v1722_v10  ;;  %v1282_v10 = vadd.s32 %v1274_v0, %v1266_v62  ;;  %v1262_v62 = vshra.s32 %v1246_v48, 3  ;;  %v1278_v0 = vshra.s32 %v1254_v24, 3 }
 0x592   :  { %v1281_v55 = vadd.s32 %v1273_v40, %v1265_v42  ;;  %v1264_v42 = vshra.s32 %v1248_v23, 3  ;;  %v1280_v40 = vshra.s32 %v1256_v6, 3 }
 0x593   :  { %vm1290_vm13 = vcmp.eq.s32.totalorder %v3908_v1, %v1282_v10  ;;  %vm1298_vm7 = vcmp.eq.s32.totalorder %v3917_v7, %v1282_v10  ;;  %v1270_v10 = vmul.u32 4, %v1262_v62 }
 0x594   :  { %3771 = vmatmul.mubr.msk.f32.gmra.mrb[20].mxu1 %vm6049_vm9, %v1727_v16  ;;  %vm4878_vm9 = vmpackc.low %vm1298_vm7, %vm1290_vm13  ;;  %v6050_v16 = vmov 0  ;;  %vm1289_vm0 = vcmp.eq.s32.totalorder %v3908_v1, %v1281_v55  ;;  %vm1297_vm12 = vcmp.eq.s32.totalorder %v3917_v7, %v1281_v55  ;;  %v1272_v55 = vmul.u32 4, %v1264_v42 }
 0x595   :  { %2016 = vmatprep.mubr.bf16.mxu1 %v6036_v3  ;;  %v6051_v16 = vsel %vm4878_vm9, 4294967295, %v6050_v16  ;;  %3222 = vmatprep.subr.msk.bf16.mxu1 %vm4878_vm9, %v5843_v27  ;;  %vm4887_vm3 = vmpackc.low %vm1297_vm12, %vm1289_vm0  ;;  %v1286_v38 = vadd.s32 %v1278_v0, %v1270_v10 }
 0x596   :  { %v6053_v59 = vsel %vm4887_vm3, 4294967295, %v6052_v59  ;;  %3224 = vmatpush1.bf16.msk.msra.mxu1 %vm4887_vm3, %v5843_v27  ;;  %v1288_v14 = vadd.s32 %v1280_v40, %v1272_v55 }
 0x597   :  { %6054 = vst [vmem:[#allocation48_spill] sm:$0xff] %v6053_v59  ;;  %vm1294_vm12 = vcmp.eq.s32.totalorder %v3908_v1, %v1286_v38  ;;  %vm1302_vm0 = vcmp.eq.s32.totalorder %v3917_v7, %v1286_v38  ;;  %v1237_v38 = vadd.s32 512, %v3910_v2 }
 0x598   :  { %vm1296_vm13 = vcmp.eq.s32.totalorder %v3908_v1, %v1288_v14  ;;  %vm1304_vm7 = vcmp.eq.s32.totalorder %v3917_v7, %v1288_v14  ;;  %vm4900_vm3 = vmpackc.low %vm1302_vm0, %vm1294_vm12  ;;  %v1239_v14 = vadd.s32 768, %v3910_v2 }
 0x599   :  { %v6056_v28 = vsel %vm4900_vm3, 4294967295, %v6055_v28  ;;  %3234 = vmatprep.subr.msk.bf16.mxu1 %vm4900_vm3, %v5843_v27  ;;  %vm4907_vm9 = vmpackc.low %vm1304_vm7, %vm1296_vm13  ;;  %v1245_v48 = vshra.s32 %v1237_v38, 5  ;;  %v1253_v23 = vand.u32 31, %v1237_v38 }
 0x59a   :  { %6057 = vst [vmem:[#allocation49_spill] sm:$0xff] %v6056_v28  ;;  %v6059_v61 = vsel %vm4907_vm9, 4294967295, %v6058_v61  ;;  %3240 = vmatprep.subr.msk.bf16.mxu0 %vm4907_vm9, %v5843_v27  ;;  %v1247_v24 = vshra.s32 %v1239_v14, 5  ;;  %v1255_v62 = vand.u32 31, %v1239_v14 }
 0x59b   :  { %v1261_v6 = vshra.s32 %v1245_v48, 3  ;;  %v1277_v40 = vshra.s32 %v1253_v23, 3  ;;  %v6066_v23 = vmov 1.0|1.0  }
 0x59c   :  { %v1263_v0 = vshra.s32 %v1247_v24, 3  ;;  %v1279_v55 = vshra.s32 %v1255_v62, 3 }
 0x59d   :  { %v1269_v42 = vmul.u32 4, %v1261_v6  ;;  %v6116_v6 = vld [vmem:[#allocation10_spill] sm:$0xff] }
 0x59e   :  { %v1271_v10 = vmul.u32 4, %v1263_v0 }
 0x59f   :  { %v1285_v28 = vadd.s32 %v1277_v40, %v1269_v42  ;;  %v6118_v42 = vld [vmem:[#allocation11_spill] sm:$0xff]  ;;  %v6120_v40 = vld [vmem:[#allocation12_spill] sm:$0xff] }
 0x5a0   :  { %v1287_v59 = vadd.s32 %v1279_v55, %v1271_v10  ;;  %v6122_v10 = vld [vmem:[#allocation13_spill] sm:$0xff]  ;;  %v6124_v55 = vld [vmem:[#allocation14_spill] sm:$0xff] }
 0x5a1   :  { %vm1293_vm12 = vcmp.eq.s32.totalorder %v3908_v1, %v1285_v28  ;;  %vm1301_vm0 = vcmp.eq.s32.totalorder %v3917_v7, %v1285_v28 }
 0x5a2   :  { %vm1295_vm13 = vcmp.eq.s32.totalorder %v3908_v1, %v1287_v59  ;;  %vm1303_vm7 = vcmp.eq.s32.totalorder %v3917_v7, %v1287_v59  ;;  %vm4920_vm3 = vmpackc.low %vm1301_vm0, %vm1293_vm12  ;;  %v4967_v7 = vld [vmem:[%s5717_s0 + $0x108] sm:$0xff]  ;;  %v6114_v59 = vld [vmem:[#allocation9_spill] sm:$0xff] }
 0x5a3   :  { %vm4924_vm9 = vmpackc.low %vm1303_vm7, %vm1295_vm13  ;;  %v2262_v18 = vpack.c.bf16 %v4972_v45, %v4967_v7  ;;  %vm6078_vm13 = vnez %v5891_v21  ;;  %vm6079_vm7 = vnez %v5893_v46  ;;  %v5104_v21 = vld [vmem:[%s5717_s0 + $0x1d8] sm:$0xff]  ;;  %v6097_v46 = vld [vmem:[#allocation2_spill] sm:$0xff] }
 0x5a4   :  { %vm6068_vm12 = vmmov %vm6064_vm4 }
 0x5a5   :  { %vm6069_vm0 = vmmov %vm6064_vm4 }
 0x663   :  { %v3769_v27 = vpop.f32.mrb[18].mxu1 }
 0x664   :  { %v1957_v2 = vpop.f32.mrb[19].mxu1 }
 0x665   :  { %v1976_v38 = vpack.c.bf16 %v3769_v27, %v1957_v2  ;;  %v6112_v27 = vld [vmem:[#allocation8_spill] sm:$0xff]  ;;  %v6126_v2 = vld [vmem:[#allocation15_spill] sm:$0xff] }
 0x667   :  { %v3772_v24 = vpop.f32.mrb[20].mxu1  ;;  %3225 = vmatmul.mubr.msk.bf16.vlgmr.msra.gmra.mrb[24].mxu1 %vm6064_vm4, %v1976_v38  ;;  %3231 = vmatmul.mubr.msk.bf16.vlgmr.msra.gmra.mrb[28].mxu0 %vm6065_vm15, %v1976_v38  ;;  %vm6067_vm15 = vmmov %vm6064_vm4 }
 0x668   :  { %v1967_v28 = vpop.f32.mrb[21].mxu1  ;;  %3236 = vmatpush1.bf16.msk.msra.mxu1 %vm4920_vm3, %v6066_v23  ;;  %2026 = vmatprep.mubr.bf16.mxu1 %v6036_v3 }
 0x669   :  { %v1977_v1 = vpack.c.bf16 %v3772_v24, %v1967_v28  ;;  %2079 = vmatprep.mubr.bf16.mxu0 %v6036_v3  ;;  %3242 = vmatpush1.bf16.msk.msra.mxu0 %vm4924_vm9, %v6066_v23  ;;  %v6130_v24 = vld [vmem:[#allocation17_spill] sm:$0xff]  ;;  %v6132_v28 = vld [vmem:[#allocation18_spill] sm:$0xff] }
 0x66a   :  { %3605 = vmatprep.subr.msk.bf16.mxu1 %vm3927_vm2, %v5937_v12  ;;  %3633 = vmatprep.subr.msk.bf16.mxu0 %vm3936_vm5, %v5937_v12  ;;  %vm6070_vm2 = vnez %v5879_v34  ;;  %vm6071_vm5 = vnez %v5881_v57  ;;  %v5074_v34 = vld [vmem:[%s5717_s0 + $0x150] sm:$0xff]  ;;  %v5085_v57 = vld [vmem:[%s5717_s0 + $0x188] sm:$0xff] }
 0x66f   :  { %3226 = vmatmul.mubr.msk.bf16.gmra.mrb[28].mxu1 %vm6067_vm15, %v1977_v1  ;;  %3232 = vmatmul.mubr.msk.bf16.gmra.mrb[32].mxu0 %vm6064_vm4, %v1977_v1  ;;  %vm6080_vm15 = vnez %v5895_v4  ;;  %vm6081_vm4 = vnez %v5897_v20 }
 0x670   :  { %2122 = vmatprep.mubr.bf16.mxu1 %v6036_v3  ;;  %2175 = vmatprep.mubr.bf16.mxu0 %v6036_v3 }
 0x677   :  { %3237 = vmatmul.mubr.msk.bf16.vlgmr.msra.gmra.mrb[32].mxu1 %vm6068_vm12, %v1976_v38  ;;  %3243 = vmatmul.mubr.msk.bf16.vlgmr.msra.gmra.mrb[36].mxu0 %vm6069_vm0, %v1976_v38  ;;  %vm6082_vm12 = vnez %v5899_v47  ;;  %v5125_v47 = vld [vmem:[%s5717_s0 + $0x180] sm:$0xff]  ;;  %v6128_v38 = vld [vmem:[#allocation16_spill] sm:$0xff] }
 0x678   :  { %3606 = vmatpush3.bf16.msk.msra.mxu1 %vm3947_vm8, %v5937_v12  ;;  %3634 = vmatpush3.bf16.msk.msra.mxu0 %vm3958_vm11, %v5937_v12  ;;  %vm6072_vm8 = vmmov %vm6069_vm0 }
 0x679   :  { %3607 = vmatprep.subr.msk.bf16.mxu1 %vm3969_vm14, %v5937_v12  ;;  %3635 = vmatprep.subr.msk.bf16.mxu0 %vm3980_vm1, %v5937_v12  ;;  %vm6073_vm11 = vmmov %vm6069_vm0  ;;  %vm6074_vm14 = vnez %v5883_v13  ;;  %vm6075_vm1 = vnez %v5885_v26  ;;  %vm6083_vm0 = vnez %v5901_v9  ;;  %v2261_v13 = vpack.c.bf16 %v5064_v5, %v5053_v44  ;;  %v6099_v9 = vld [vmem:[#allocation3_spill] sm:$0xff] }
 0x67a   :  { %2132 = vmatprep.mubr.bf16.mxu1 %v6036_v3  ;;  %2185 = vmatprep.mubr.bf16.mxu0 %v6036_v3  ;;  %v2263_v26 = vpack.c.bf16 %v5074_v34, %v5069_v22 }
 0x67c   :  { %3608 = vmatpush3.bf16.msk.msra.mxu1 %vm3991_vm6, %v5937_v12  ;;  %3636 = vmatpush3.bf16.msk.msra.mxu0 %vm4002_vm10, %v5937_v12  ;;  %vm6076_vm6 = vnez %v5887_v51  ;;  %vm6077_vm10 = vnez %v5889_v8  ;;  %v5094_v51 = vld [vmem:[%s5717_s0 + $0x1c8] sm:$0xff]  ;;  %v5099_v8 = vld [vmem:[%s5717_s0 + $0x198] sm:$0xff] }
 0x67d   :  { %3609 = vmatprep.subr.msk.bf16.mxu1 %vm6070_vm2, %v5937_v12  ;;  %3637 = vmatprep.subr.msk.bf16.mxu0 %vm6071_vm5, %v5937_v12  ;;  %vm6084_vm2 = vnez %v5903_v25  ;;  %vm6085_vm5 = vnez %v5905_v54  ;;  %v2270_v4 = vpack.c.bf16 %v5094_v51, %v5085_v57  ;;  %v2272_v20 = vpack.c.bf16 %v5104_v21, %v5099_v8  ;;  %v6101_v25 = vld [vmem:[#allocation4_spill] sm:$0xff]  ;;  %v5136_v54 = vld [vmem:[%s5717_s0 + $0x1c0] sm:$0xff] }
 0x67f   :  { %3238 = vmatmul.mubr.msk.bf16.gmra.mrb[36].mxu1 %vm6072_vm8, %v1977_v1  ;;  %3244 = vmatmul.mubr.msk.bf16.gmra.mrb[40].mxu0 %vm6073_vm11, %v1977_v1  ;;  %vm6086_vm8 = vnez %v5907_v15  ;;  %vm6087_vm11 = vnez %v5909_v32  ;;  %v5141_v15 = vld [vmem:[%s5717_s0 + $0x190] sm:$0xff]  ;;  %v6134_v1 = vld [vmem:[#allocation19_spill] sm:$0xff] }
 0x680   :  { %3610 = vmatpush3.bf16.msk.msra.mxu1 %vm6074_vm14, %v5937_v12  ;;  %3638 = vmatpush3.bf16.msk.msra.mxu0 %vm6075_vm1, %v5937_v12  ;;  %vm6088_vm14 = vnez %v5911_v63  ;;  %vm6089_vm1 = vnez %v5913_v29  ;;  %v5146_v32 = vld [vmem:[%s5717_s0 + $0x1d0] sm:$0xff]  ;;  %v6103_v63 = vld [vmem:[#allocation5_spill] sm:$0xff]  ;;  %v6105_v29 = vld [vmem:[#allocation6_spill] sm:$0xff] }
 0x681   :  { %3611 = vmatprep.subr.msk.bf16.mxu1 %vm6076_vm6, %v5937_v12  ;;  %3639 = vmatprep.subr.msk.bf16.mxu0 %vm6077_vm10, %v5937_v12  ;;  %vm6090_vm6 = vnez %v5915_v43  ;;  %vm6091_vm10 = vnez %v5917_v19  ;;  %v5157_v43 = vld [vmem:[%s5717_s0 + $0x128] sm:$0xff]  ;;  %v2269_v19 = vpack.c.bf16 %v5136_v54, %v5125_v47 }
 0x682   :  { %2309 = vmatprep.mubr.bf16.mxu1 %v2262_v18  ;;  %2358 = vmatprep.mubr.bf16.mxu0 %v2264_v33  ;;  %v6136_v18 = vld [vmem:[#allocation20_spill] sm:$0xff]  ;;  %v6138_v33 = vld [vmem:[#allocation21_spill] sm:$0xff] }
 0x684   :  { %3612 = vmatpush3.bf16.msk.msra.mxu1 %vm6078_vm13, %v5937_v12  ;;  %3640 = vmatpush3.bf16.msk.msra.mxu0 %vm6079_vm7, %v5937_v12  ;;  %vm6092_vm13 = vnez %v5919_v50  ;;  %vm6093_vm7 = vnez %v5921_v17  ;;  %v2271_v50 = vpack.c.bf16 %v5146_v32, %v5141_v15  ;;  %v5166_v17 = vld [vmem:[%s5717_s0 + $0x168] sm:$0xff] }
 0x685   :  { %3613 = vmatprep.subr.msk.bf16.mxu1 %vm6080_vm15, %v5937_v12  ;;  %3641 = vmatprep.subr.msk.bf16.mxu0 %vm6081_vm4, %v5937_v12  ;;  %vm6094_vm15 = vnez %v5923_v58  ;;  %vm6095_vm4 = vnez %v5925_v31  ;;  %6107 = vst [vmem:[#allocation2_spill] sm:$0xff] %v5166_v17  ;;  %v5171_v58 = vld [vmem:[%s5717_s0 + $0x138] sm:$0xff]  ;;  %v2266_v62 = vpack.c.bf16 %v5166_v17, %v5157_v43 }
 0x686   :  { %6108 = vst [vmem:[#allocation3_spill] sm:$0xff] %v5171_v58  ;;  %v5176_v31 = vld [vmem:[%s5717_s0 + $0x178] sm:$0xff] }
 0x687   :  { %6109 = vst [vmem:[#allocation4_spill] sm:$0xff] %v5176_v31  ;;  %v2268_v0 = vpack.c.bf16 %v5176_v31, %v5171_v58 }
 0x688   :  { %3614 = vmatpush3.bf16.msk.msra.mxu1 %vm6082_vm12, %v5937_v12  ;;  %3642 = vmatpush3.bf16.msk.msra.mxu0 %vm6083_vm0, %v5937_v12  ;;  %vm6096_vm12 = vnez %v5927_v30  ;;  %vm6098_vm0 = vnez %v6097_v46  ;;  %v6110_v30 = vld [vmem:[#allocation7_spill] sm:$0xff]  ;;  %v6144_v46 = vld [vmem:[#allocation24_spill] sm:$0xff] }
 0x689   :  { %3615 = vmatprep.subr.msk.bf16.mxu1 %vm6084_vm2, %v5937_v12  ;;  %3643 = vmatprep.subr.msk.bf16.mxu0 %vm6085_vm5, %v5937_v12  ;;  %vm6100_vm2 = vnez %v6099_v9  ;;  %vm6102_vm5 = vnez %v6101_v25  ;;  %v5245_v9 = vld [vmem:[%s5717_s0 + $0x120] sm:$0xff] }
 0x68a   :  { %v5250_v25 = vld [vmem:[%s5717_s0 + $0x160] sm:$0xff] }
 0x68b   :  { %6150 = vst [vmem:[#allocation5_spill] sm:$0xff] %v5250_v25 }
 0x68c   :  { %3616 = vmatpush3.bf16.msk.msra.mxu1 %vm6086_vm8, %v5937_v12  ;;  %3644 = vmatpush3.bf16.msk.msra.mxu0 %vm6087_vm11, %v5937_v12  ;;  %vm6104_vm8 = vnez %v6103_v63  ;;  %vm6106_vm11 = vnez %v6105_v29  ;;  %v6151_v63 = vld [vmem:[#allocation27_spill] sm:$0xff]  ;;  %v6153_v29 = vld [vmem:[#allocation28_spill] sm:$0xff] }
 0x68d   :  { %3617 = vmatprep.subr.msk.bf16.mxu1 %vm6088_vm14, %v5937_v12  ;;  %3645 = vmatprep.subr.msk.bf16.mxu0 %vm6089_vm1, %v5937_v12  ;;  %vm6111_vm14 = vnez %v6110_v30  ;;  %vm6113_vm1 = vnez %v6112_v27  ;;  %v5271_v30 = vld [vmem:[%s5717_s0 + $0x1a8] sm:$0xff]  ;;  %v6157_v27 = vld [vmem:[#allocation29_spill] sm:$0xff] }
 0x68e   :  { %6156 = vst [vmem:[#allocation7_spill] sm:$0xff] %v5271_v30 }
 0x690   :  { %3618 = vmatpush3.bf16.msk.msra.mxu1 %vm6090_vm6, %v5937_v12  ;;  %3646 = vmatpush3.bf16.msk.msra.mxu0 %vm6091_vm10, %v5937_v12  ;;  %vm6115_vm6 = vnez %v6114_v59  ;;  %vm6117_vm10 = vnez %v6116_v6  ;;  %v6159_v59 = vld [vmem:[#allocation30_spill] sm:$0xff]  ;;  %v5282_v6 = vld [vmem:[%s5717_s0 + $0x1e8] sm:$0xff] }
 0x691   :  { %3619 = vmatprep.subr.msk.bf16.mxu1 %vm6092_vm13, %v5937_v12  ;;  %3647 = vmatprep.subr.msk.bf16.mxu0 %vm6093_vm7, %v5937_v12  ;;  %vm6119_vm13 = vnez %v6118_v42  ;;  %vm6121_vm7 = vnez %v6120_v40  ;;  %6161 = vst [vmem:[#allocation8_spill] sm:$0xff] %v5282_v6  ;;  %v2265_v42 = vpack.c.bf16 %v5250_v25, %v5245_v9 }
 0x694   :  { %3620 = vmatpush3.bf16.msk.msra.mxu1 %vm6094_vm15, %v5937_v12  ;;  %3648 = vmatpush3.bf16.msk.msra.mxu0 %vm6095_vm4, %v5937_v12  ;;  %vm6123_vm15 = vnez %v6122_v10  ;;  %vm6125_vm4 = vnez %v6124_v55  ;;  %v6164_v10 = vld [vmem:[#allocation33_spill] sm:$0xff] }
 0x695   :  { %3661 = vmatprep.subr.msk.bf16.mxu1 %vm6096_vm12, %v5937_v12  ;;  %3689 = vmatprep.subr.msk.bf16.mxu0 %vm6098_vm0, %v5937_v12  ;;  %vm6127_vm12 = vnez %v6126_v2  ;;  %vm6129_vm0 = vnez %v6128_v38  ;;  %v6166_v55 = vld [vmem:[#allocation37_spill] sm:$0xff]  ;;  %v2274_v2 = vpack.c.bf16 %v5282_v6, %v5271_v30 }
 0x697   :  { %2310 = vmatmul.mubr.bf16.vlgmr.msra.gmra.mrb[40].mxu1 %v2261_v13  ;;  %2359 = vmatmul.mubr.bf16.vlgmr.msra.gmra.mrb[44].mxu0 %v2263_v26  ;;  %v6140_v13 = vld [vmem:[#allocation22_spill] sm:$0xff]  ;;  %v6142_v26 = vld [vmem:[#allocation23_spill] sm:$0xff] }
 0x698   :  { %3662 = vmatpush3.bf16.msk.msra.mxu1 %vm6100_vm2, %v5937_v12  ;;  %3690 = vmatpush3.bf16.msk.msra.mxu0 %vm6102_vm5, %v5937_v12  ;;  %vm6131_vm2 = vnez %v6130_v24  ;;  %vm6133_vm5 = vnez %v6132_v28  ;;  %v5312_v24 = vld [vmem:[%s5717_s0 + $0x1a0] sm:$0xff]  ;;  %v5322_v28 = vld [vmem:[%s5717_s0 + $0x1b0] sm:$0xff] }
 0x699   :  { %3663 = vmatprep.subr.msk.bf16.mxu1 %vm6104_vm8, %v5937_v12  ;;  %3691 = vmatprep.subr.msk.bf16.mxu0 %vm6106_vm11, %v5937_v12  ;;  %vm6135_vm8 = vnez %v6134_v1  ;;  %vm6137_vm11 = vnez %v6136_v18  ;;  %6168 = vst [vmem:[#allocation11_spill] sm:$0xff] %v5312_v24  ;;  %6170 = vst [vmem:[#allocation13_spill] sm:$0xff] %v5322_v28  ;;  %v5327_v1 = vld [vmem:[%s5717_s0 + $0x1f0] sm:$0xff] }
 0x69a   :  { %2317 = vmatprep.mubr.bf16.mxu1 %v2270_v4  ;;  %2366 = vmatprep.mubr.bf16.mxu0 %v2272_v20  ;;  %v6146_v4 = vld [vmem:[#allocation25_spill] sm:$0xff]  ;;  %v6148_v20 = vld [vmem:[#allocation26_spill] sm:$0xff]  ;;  %6171 = vst [vmem:[#allocation14_spill] sm:$0xff] %v5327_v1 }
 0x69c   :  { %3664 = vmatpush3.bf16.msk.msra.mxu1 %vm6111_vm14, %v5937_v12  ;;  %3692 = vmatpush3.bf16.msk.msra.mxu0 %vm6113_vm1, %v5937_v12  ;;  %vm6139_vm14 = vnez %v6138_v33  ;;  %vm6141_vm1 = vnez %v6140_v13  ;;  %v2275_v33 = vpack.c.bf16 %v5327_v1, %v5322_v28 }
 0x69d   :  { %3665 = vmatprep.subr.msk.bf16.mxu1 %vm6115_vm6, %v5937_v12  ;;  %3693 = vmatprep.subr.msk.bf16.mxu0 %vm6117_vm10, %v5937_v12  ;;  %vm6143_vm6 = vnez %v6142_v26  ;;  %vm6145_vm10 = vnez %v6144_v46  ;;  %v3859_v46 = vld [vmem:[%s5717_s0] sm:$0xff] }
 0x69f   :  { %2318 = vmatmul.mubr.bf16.gmra.mrb[44].mxu1 %v2269_v19  ;;  %2367 = vmatmul.mubr.bf16.gmra.mrb[48].mxu0 %v2271_v50  ;;  %v5261_v19 = vld [vmem:[%s5717_s0 + $0x130] sm:$0xff] }
 0x6a0   :  { %3666 = vmatpush3.bf16.msk.msra.mxu1 %vm6119_vm13, %v5937_v12  ;;  %3694 = vmatpush3.bf16.msk.msra.mxu0 %vm6121_vm7, %v5937_v12  ;;  %vm6147_vm13 = vnez %v6146_v4  ;;  %vm6149_vm7 = vnez %v6148_v20  ;;  %v5266_v50 = vld [vmem:[%s5717_s0 + $0x170] sm:$0xff] }
 0x6a1   :  { %3667 = vmatprep.subr.msk.bf16.mxu1 %vm6123_vm15, %v5937_v12  ;;  %3695 = vmatprep.subr.msk.bf16.mxu0 %vm6125_vm4, %v5937_v12  ;;  %vm6152_vm15 = vnez %v6151_v63  ;;  %vm6154_vm4 = vnez %v6153_v29  ;;  %6155 = vst [vmem:[#allocation6_spill] sm:$0xff] %v5266_v50  ;;  %v2267_v40 = vpack.c.bf16 %v5266_v50, %v5261_v19  ;;  %v3860_v20 = vld [vmem:[%s5717_s0 + $0x10] sm:$0xff] }
 0x6a2   :  { %2407 = vmatprep.mubr.bf16.mxu1 %v2266_v62  ;;  %2456 = vmatprep.mubr.bf16.mxu0 %v2268_v0  ;;  %v5287_v62 = vld [vmem:[%s5717_s0 + $0x1b8] sm:$0xff] }
 0x6a3   :  { %6162 = vst [vmem:[#allocation9_spill] sm:$0xff] %v5287_v62  ;;  %v5292_v0 = vld [vmem:[%s5717_s0 + $0x1f8] sm:$0xff] }
 0x6a4   :  { %3668 = vmatpush3.bf16.msk.msra.mxu1 %vm6127_vm12, %v5937_v12  ;;  %3696 = vmatpush3.bf16.msk.msra.mxu0 %vm6129_vm0, %v5937_v12  ;;  %vm6158_vm12 = vnez %v6157_v27  ;;  %vm6160_vm0 = vnez %v6159_v59  ;;  %6163 = vst [vmem:[#allocation10_spill] sm:$0xff] %v5292_v0  ;;  %v2276_v38 = vpack.c.bf16 %v5292_v0, %v5287_v62  ;;  %v3861_v59 = vld [vmem:[%s5717_s0 + $0x8] sm:$0xff] }
 0x6a5   :  { %3669 = vmatprep.subr.msk.bf16.mxu1 %vm6131_vm2, %v5937_v12  ;;  %3697 = vmatprep.subr.msk.bf16.mxu0 %vm6133_vm5, %v5937_v12  ;;  %vm6165_vm2 = vnez %v6164_v10  ;;  %vm6167_vm5 = vnez %v6166_v55 }
 0x6a8   :  { %3670 = vmatpush3.bf16.msk.msra.mxu1 %vm6135_vm8, %v5937_v12  ;;  %3698 = vmatpush3.bf16.msk.msra.mxu0 %vm6137_vm11, %v5937_v12  ;;  %vm6172_vm8 = vmmov 0   ;;  %vm6182_vm11 = vnez %v6039_v41  ;;  %v6192_v41 = vld [vmem:[#allocation43_spill] sm:$0xff] }
 0x6a9   :  { %3671 = vmatprep.subr.msk.bf16.mxu1 %vm6139_vm14, %v5937_v12  ;;  %3699 = vmatprep.subr.msk.bf16.mxu0 %vm6141_vm1, %v5937_v12  ;;  %vm6183_vm14 = vcmask 261120   ;;  %vm6184_vm1 = vnez %v6041_v37 }
 0x6ac   :  { %3672 = vmatpush3.bf16.msk.msra.mxu1 %vm6143_vm6, %v5937_v12  ;;  %3700 = vmatpush3.bf16.msk.msra.mxu0 %vm6145_vm10, %v5937_v12  ;;  %vm6185_vm6 = vnez %v6059_v61  ;;  %vm6186_vm10 = vmmov %vm6183_vm14 }
 0x6ad   :  { %3673 = vmatprep.subr.msk.bf16.mxu1 %vm6147_vm13, %v5937_v12  ;;  %3701 = vmatprep.subr.msk.bf16.mxu0 %vm6149_vm7, %v5937_v12  ;;  %vm6187_vm13 = vmmov %vm6186_vm10 }
 0x6ae   :  { %vm6189_vm7 = vmmov %vm6186_vm10 }
 0x6b0   :  { %3674 = vmatpush3.bf16.msk.msra.mxu1 %vm6152_vm15, %v5937_v12  ;;  %3702 = vmatpush3.bf16.msk.msra.mxu0 %vm6154_vm4, %v5937_v12  ;;  %vm6191_vm15 = vmmov %vm6189_vm7  ;;  %vm6193_vm4 = vcmask 1043456  }
 0x6b1   :  { %3675 = vmatprep.subr.msk.bf16.mxu1 %vm6158_vm12, %v5937_v12  ;;  %3703 = vmatprep.subr.msk.bf16.mxu0 %vm6160_vm0, %v5937_v12  ;;  %vm6194_vm12 = vmmov %vm6193_vm4  ;;  %vm6195_vm0 = vcmask 31744  }
 0x6b4   :  { %3676 = vmatpush3.bf16.msk.msra.mxu1 %vm6165_vm2, %v5937_v12  ;;  %3704 = vmatpush3.bf16.msk.msra.mxu0 %vm6167_vm5, %v5937_v12  ;;  %v5317_v12 = vld [vmem:[%s5717_s0 + $0x1e0] sm:$0xff]  ;;  %vm6197_vm2 = vmmov %vm6195_vm0  ;;  %vm6198_vm5 = vcmask 130048  }
 0x6b5   :  { %3823 = vmatprep.subr.bf16.mxu1 %v6031_v11  ;;  %6169 = vst [vmem:[#allocation12_spill] sm:$0xff] %v5317_v12  ;;  %v2273_v18 = vpack.c.bf16 %v5317_v12, %v5312_v24 }
 0x6b7   :  { %2408 = vmatmul.mubr.bf16.vlgmr.msra.gmra.mrb[48].mxu1 %v2265_v42  ;;  %2457 = vmatmul.mubr.bf16.vlgmr.msra.gmra.mrb[52].mxu0 %v2267_v40  ;;  %v3862_v40 = vld [vmem:[%s5717_s0 + $0x18] sm:$0xff] }
 0x6b8   :  { %2415 = vmatprep.mubr.bf16.mxu1 %v2274_v2  ;;  %2464 = vmatprep.mubr.bf16.mxu0 %v2276_v38  ;;  %v3863_v38 = vld [vmem:[%s5717_s0 + $0x40] sm:$0xff] }
 0x6bf   :  { %2416 = vmatmul.mubr.bf16.gmra.mrb[52].mxu1 %v2273_v18  ;;  %2465 = vmatmul.mubr.bf16.gmra.mrb[56].mxu0 %v2275_v33  ;;  %v3864_v33 = vld [vmem:[%s5717_s0 + $0x50] sm:$0xff] }
 0x6c0   :  { %3781 = vmatprep.mubr.msk.f32.mxu1 %vm6172_vm8, %v6032_v36 }
 0x73a   :  { %v2018_v13 = vpop.f32.mrb[24].mxu1  ;;  %v2071_v26 = vpop.f32.mrb[28].mxu0 }
 0x73b   :  { %v2019_v4 = vadd.f32 %v3859_v46, %v2018_v13  ;;  %v2072_v63 = vadd.f32 %v3860_v20, %v2071_v26  ;;  %v2020_v29 = vpop.f32.mrb[25].mxu1  ;;  %v2073_v27 = vpop.f32.mrb[29].mxu0 }
 0x73c   :  { %v2021_v42 = vadd.f32 %v3861_v59, %v2020_v29  ;;  %v2074_v10 = vadd.f32 %v3862_v40, %v2073_v27  ;;  %v2022_v55 = vpop.f32.mrb[26].mxu1  ;;  %v2075_v2 = vpop.f32.mrb[30].mxu0 }
 0x73d   :  { %2196 = vst [vmem:[%s5720_s3] sm:$0xff] %v2019_v4  ;;  %2198 = vst [vmem:[%s5720_s3 + $0x10] sm:$0xff] %v2072_v63  ;;  %v2023_v18 = vadd.f32 %v3863_v38, %v2022_v55  ;;  %v2076_v13 = vadd.f32 %v3864_v33, %v2075_v2  ;;  %v2024_v26 = vpop.f32.mrb[27].mxu1  ;;  %v2077_v46 = vpop.f32.mrb[31].mxu0  ;;  %v3865_v4 = vld [vmem:[%s5717_s0 + $0x48] sm:$0xff]  ;;  %v3866_v63 = vld [vmem:[%s5717_s0 + $0x58] sm:$0xff] }
 0x73e   :  { %2197 = vst [vmem:[%s5720_s3 + $0x8] sm:$0xff] %v2021_v42  ;;  %2199 = vst [vmem:[%s5720_s3 + $0x18] sm:$0xff] %v2074_v10  ;;  %v2025_v20 = vadd.f32 %v3865_v4, %v2024_v26  ;;  %v2078_v29 = vadd.f32 %v3866_v63, %v2077_v46  ;;  %v3867_v42 = vld [vmem:[%s5717_s0 + $0x80] sm:$0xff]  ;;  %v3868_v10 = vld [vmem:[%s5717_s0 + $0x90] sm:$0xff] }
 0x73f   :  { %2204 = vst [vmem:[%s5720_s3 + $0x40] sm:$0xff] %v2023_v18  ;;  %2206 = vst [vmem:[%s5720_s3 + $0x50] sm:$0xff] %v2076_v13  ;;  %v3869_v18 = vld [vmem:[%s5717_s0 + $0x88] sm:$0xff]  ;;  %v3870_v13 = vld [vmem:[%s5717_s0 + $0x98] sm:$0xff] }
 0x740   :  { %2205 = vst [vmem:[%s5720_s3 + $0x48] sm:$0xff] %v2025_v20  ;;  %2207 = vst [vmem:[%s5720_s3 + $0x58] sm:$0xff] %v2078_v29  ;;  %v3871_v20 = vld [vmem:[%s5717_s0 + $0xc0] sm:$0xff]  ;;  %v3872_v29 = vld [vmem:[%s5717_s0 + $0xd0] sm:$0xff] }
 0x742   :  { %v2028_v27 = vpop.f32.mrb[28].mxu1  ;;  %v2081_v59 = vpop.f32.mrb[32].mxu0 }
 0x743   :  { %v2029_v40 = vadd.f32 %v3867_v42, %v2028_v27  ;;  %v2082_v55 = vadd.f32 %v3868_v10, %v2081_v59  ;;  %v2030_v2 = vpop.f32.mrb[29].mxu1  ;;  %v2083_v38 = vpop.f32.mrb[33].mxu0 }
 0x744   :  { %v2031_v33 = vadd.f32 %v3869_v18, %v2030_v2  ;;  %v2084_v26 = vadd.f32 %v3870_v13, %v2083_v38  ;;  %v2032_v46 = vpop.f32.mrb[30].mxu1  ;;  %v2085_v4 = vpop.f32.mrb[34].mxu0 }
 0x745   :  { %2212 = vst [vmem:[%s5720_s3 + $0x80] sm:$0xff] %v2029_v40  ;;  %2214 = vst [vmem:[%s5720_s3 + $0x90] sm:$0xff] %v2082_v55  ;;  %v2033_v63 = vadd.f32 %v3871_v20, %v2032_v46  ;;  %v2086_v27 = vadd.f32 %v3872_v29, %v2085_v4  ;;  %v2034_v59 = vpop.f32.mrb[31].mxu1  ;;  %v2087_v42 = vpop.f32.mrb[35].mxu0  ;;  %v3873_v40 = vld [vmem:[%s5717_s0 + $0xc8] sm:$0xff]  ;;  %v3874_v55 = vld [vmem:[%s5717_s0 + $0xd8] sm:$0xff] }
 0x746   :  { %2213 = vst [vmem:[%s5720_s3 + $0x88] sm:$0xff] %v2031_v33  ;;  %2215 = vst [vmem:[%s5720_s3 + $0x98] sm:$0xff] %v2084_v26  ;;  %v2035_v10 = vadd.f32 %v3873_v40, %v2034_v59  ;;  %v2088_v2 = vadd.f32 %v3874_v55, %v2087_v42  ;;  %v6173_v33 = vld [vmem:[#allocation31_spill] sm:$0xff]  ;;  %v6174_v26 = vld [vmem:[#allocation34_spill] sm:$0xff] }
 0x747   :  { %2220 = vst [vmem:[%s5720_s3 + $0xc0] sm:$0xff] %v2033_v63  ;;  %2222 = vst [vmem:[%s5720_s3 + $0xd0] sm:$0xff] %v2086_v27  ;;  %v3875_v63 = vld [vmem:[%s5717_s0 + $0x28] sm:$0xff]  ;;  %v3876_v27 = vld [vmem:[%s5717_s0 + $0x38] sm:$0xff] }
 0x748   :  { %2221 = vst [vmem:[%s5720_s3 + $0xc8] sm:$0xff] %v2035_v10  ;;  %2223 = vst [vmem:[%s5720_s3 + $0xd8] sm:$0xff] %v2088_v2  ;;  %v6175_v10 = vld [vmem:[#allocation32_spill] sm:$0xff]  ;;  %v6176_v2 = vld [vmem:[#allocation35_spill] sm:$0xff] }
 0x74a   :  { %v2124_v38 = vpop.f32.mrb[32].mxu1  ;;  %v2177_v18 = vpop.f32.mrb[36].mxu0 }
 0x74b   :  { %v2125_v13 = vadd.f32 %v2124_v38, %v6173_v33  ;;  %v2178_v46 = vadd.f32 %v2177_v18, %v6174_v26  ;;  %v2126_v4 = vpop.f32.mrb[33].mxu1  ;;  %v2179_v20 = vpop.f32.mrb[37].mxu0 }
 0x74c   :  { %v2127_v29 = vadd.f32 %v3875_v63, %v2126_v4  ;;  %v2180_v59 = vadd.f32 %v3876_v27, %v2179_v20  ;;  %v2128_v42 = vpop.f32.mrb[34].mxu1  ;;  %v2181_v40 = vpop.f32.mrb[38].mxu0 }
 0x74d   :  { %2200 = vst [vmem:[%s5720_s3 + $0x20] sm:$0xff] %v2125_v13  ;;  %2202 = vst [vmem:[%s5720_s3 + $0x30] sm:$0xff] %v2178_v46  ;;  %v2129_v55 = vadd.f32 %v2128_v42, %v6175_v10  ;;  %v2182_v38 = vadd.f32 %v2181_v40, %v6176_v2  ;;  %v2130_v18 = vpop.f32.mrb[35].mxu1  ;;  %v2183_v33 = vpop.f32.mrb[39].mxu0  ;;  %v3877_v13 = vld [vmem:[%s5717_s0 + $0x68] sm:$0xff]  ;;  %v3878_v46 = vld [vmem:[%s5717_s0 + $0x78] sm:$0xff] }
 0x74e   :  { %2201 = vst [vmem:[%s5720_s3 + $0x28] sm:$0xff] %v2127_v29  ;;  %2203 = vst [vmem:[%s5720_s3 + $0x38] sm:$0xff] %v2180_v59  ;;  %v2131_v26 = vadd.f32 %v3877_v13, %v2130_v18  ;;  %v2184_v4 = vadd.f32 %v3878_v46, %v2183_v33  ;;  %v6177_v29 = vld [vmem:[#allocation38_spill] sm:$0xff]  ;;  %v6178_v59 = vld [vmem:[#allocation40_spill] sm:$0xff] }
 0x74f   :  { %2208 = vst [vmem:[%s5720_s3 + $0x60] sm:$0xff] %v2129_v55  ;;  %2210 = vst [vmem:[%s5720_s3 + $0x70] sm:$0xff] %v2182_v38  ;;  %v3879_v55 = vld [vmem:[%s5717_s0 + $0xa8] sm:$0xff]  ;;  %v6179_v38 = vld [vmem:[#allocation36_spill] sm:$0xff] }
 0x750   :  { %2209 = vst [vmem:[%s5720_s3 + $0x68] sm:$0xff] %v2131_v26  ;;  %2211 = vst [vmem:[%s5720_s3 + $0x78] sm:$0xff] %v2184_v4  ;;  %v6180_v26 = vld [vmem:[#allocation39_spill] sm:$0xff]  ;;  %v6181_v4 = vld [vmem:[#allocation41_spill] sm:$0xff] }
 0x752   :  { %v2134_v20 = vpop.f32.mrb[36].mxu1  ;;  %v2187_v63 = vpop.f32.mrb[40].mxu0 }
 0x753   :  { %v2135_v27 = vadd.f32 %v2134_v20, %v6177_v29  ;;  %v2188_v42 = vadd.f32 %v2187_v63, %v6178_v59  ;;  %v2136_v40 = vpop.f32.mrb[37].mxu1  ;;  %v2189_v10 = vpop.f32.mrb[41].mxu0 }
 0x754   :  { %v2137_v2 = vadd.f32 %v3879_v55, %v2136_v40  ;;  %v2190_v18 = vadd.f32 %v2189_v10, %v6179_v38  ;;  %v2138_v33 = vpop.f32.mrb[38].mxu1  ;;  %v2191_v13 = vpop.f32.mrb[42].mxu0 }
 0x755   :  { %2216 = vst [vmem:[%s5720_s3 + $0xa0] sm:$0xff] %v2135_v27  ;;  %2218 = vst [vmem:[%s5720_s3 + $0xb0] sm:$0xff] %v2188_v42  ;;  %v2139_v46 = vadd.f32 %v2138_v33, %v6180_v26  ;;  %v2192_v20 = vadd.f32 %v2191_v13, %v6181_v4  ;;  %v2140_v63 = vpop.f32.mrb[39].mxu1  ;;  %v2193_v29 = vpop.f32.mrb[43].mxu0  ;;  %v3880_v27 = vld [vmem:[%s5717_s0 + $0xe8] sm:$0xff]  ;;  %v3881_v42 = vld [vmem:[%s5717_s0 + $0xf8] sm:$0xff] }
 0x756   :  { %2217 = vst [vmem:[%s5720_s3 + $0xa8] sm:$0xff] %v2137_v2  ;;  %2219 = vst [vmem:[%s5720_s3 + $0xb8] sm:$0xff] %v2190_v18  ;;  %v2141_v59 = vadd.f32 %v3880_v27, %v2140_v63  ;;  %v2194_v40 = vadd.f32 %v3881_v42, %v2193_v29 }
 0x757   :  { %2224 = vst [vmem:[%s5720_s3 + $0xe0] sm:$0xff] %v2139_v46  ;;  %2226 = vst [vmem:[%s5720_s3 + $0xf0] sm:$0xff] %v2192_v20 }
 0x758   :  { %2225 = vst [vmem:[%s5720_s3 + $0xe8] sm:$0xff] %v2141_v59  ;;  %2227 = vst [vmem:[%s5720_s3 + $0xf8] sm:$0xff] %v2194_v40 }
 0x76a   :  { %v3621_v10 = vpop.f32.mrb[40].mxu1  ;;  %v3649_v55 = vpop.f32.mrb[44].mxu0 }
 0x76b   :  { %v3622_v2 = vpop.f32.mrb[41].mxu1  ;;  %v3650_v38 = vpop.f32.mrb[45].mxu0 }
 0x76c   :  { %v3623_v18 = vadd.f32 %v3622_v2, %v3621_v10  ;;  %v3651_v33 = vadd.f32 %v3650_v38, %v3649_v55  ;;  %v3624_v13 = vpop.f32.mrb[42].mxu1  ;;  %v3652_v26 = vpop.f32.mrb[46].mxu0 }
 0x76d   :  { %v3625_v46 = vpop.f32.mrb[43].mxu1  ;;  %v3653_v4 = vpop.f32.mrb[47].mxu0 }
 0x76e   :  { %v2361_v63 = vadd.f32 %v3651_v33, %v3623_v18  ;;  %v3626_v20 = vadd.f32 %v3625_v46, %v3624_v13  ;;  %v3654_v29 = vadd.f32 %v3653_v4, %v3652_v26 }
 0x770   :  { %v2364_v27 = vadd.f32 %v3654_v29, %v3626_v20 }
 0x772   :  { %v3627_v42 = vpop.f32.mrb[44].mxu1  ;;  %v3655_v59 = vpop.f32.mrb[48].mxu0 }
 0x773   :  { %v3628_v0 = vpop.f32.mrb[45].mxu1  ;;  %v3656_v6 = vpop.f32.mrb[49].mxu0 }
 0x774   :  { %v3629_v1 = vadd.f32 %v3628_v0, %v3627_v42  ;;  %v3657_v40 = vadd.f32 %v3656_v6, %v3655_v59  ;;  %v3630_v12 = vpop.f32.mrb[46].mxu1  ;;  %v3658_v62 = vpop.f32.mrb[50].mxu0 }
 0x775   :  { %v3631_v30 = vpop.f32.mrb[47].mxu1  ;;  %v3659_v28 = vpop.f32.mrb[51].mxu0 }
 0x776   :  { %v2369_v10 = vadd.f32 %v3657_v40, %v3629_v1  ;;  %v3632_v55 = vadd.f32 %v3631_v30, %v3630_v12  ;;  %v3660_v2 = vadd.f32 %v3659_v28, %v3658_v62 }
 0x778   :  { %v2372_v38 = vadd.f32 %v3660_v2, %v3632_v55 }
 0x78a   :  { %v3677_v24 = vpop.f32.mrb[48].mxu1  ;;  %v3705_v31 = vpop.f32.mrb[52].mxu0 }
 0x78b   :  { %v3678_v18 = vpop.f32.mrb[49].mxu1  ;;  %v3706_v33 = vpop.f32.mrb[53].mxu0 }
 0x78c   :  { %v3679_v13 = vadd.f32 %v3678_v18, %v3677_v24  ;;  %v3707_v26 = vadd.f32 %v3706_v33, %v3705_v31  ;;  %v3680_v46 = vpop.f32.mrb[50].mxu1  ;;  %v3708_v4 = vpop.f32.mrb[54].mxu0 }
 0x78d   :  { %v3681_v20 = vpop.f32.mrb[51].mxu1  ;;  %v3709_v29 = vpop.f32.mrb[55].mxu0 }
 0x78e   :  { %v2410_v0 = vadd.f32 %v3679_v13, %v2361_v63  ;;  %v3682_v6 = vadd.f32 %v3681_v20, %v3680_v46  ;;  %v3710_v42 = vadd.f32 %v3709_v29, %v3708_v4  ;;  %v6196_v29 = vld [vmem:[#allocation45_spill] sm:$0xff] }
 0x790   :  { %v2459_v59 = vadd.f32 %v3707_v26, %v2410_v0  ;;  %v2413_v17 = vadd.f32 %v3682_v6, %v2364_v27 }
 0x792   :  { %v2462_v50 = vadd.f32 %v3710_v42, %v2413_v17  ;;  %v3683_v1 = vpop.f32.mrb[52].mxu1  ;;  %v3711_v30 = vpop.f32.mrb[56].mxu0 }
 0x793   :  { %v3684_v62 = vpop.f32.mrb[53].mxu1  ;;  %v3712_v12 = vpop.f32.mrb[57].mxu0 }
 0x794   :  { %v3824_v28 = vpack.c.bf16 %v2462_v50, %v2459_v59  ;;  %v3685_v40 = vadd.f32 %v3684_v62, %v3683_v1  ;;  %v3713_v55 = vadd.f32 %v3712_v12, %v3711_v30  ;;  %v3686_v2 = vpop.f32.mrb[54].mxu1  ;;  %v3714_v24 = vpop.f32.mrb[58].mxu0 }
 0x795   :  { %v3687_v31 = vpop.f32.mrb[55].mxu1  ;;  %v3715_v18 = vpop.f32.mrb[59].mxu0 }
 0x796   :  { %v2418_v33 = vadd.f32 %v3685_v40, %v2369_v10  ;;  %v3688_v25 = vadd.f32 %v3687_v31, %v3686_v2  ;;  %v3716_v58 = vadd.f32 %v3715_v18, %v3714_v24  ;;  %3825 = vmatpush3.bf16.msra.mxu1 %v3824_v28 }
 0x797   :  { %3826 = vmatprep.subr.bf16.mxu1 %v6031_v11  ;;  %v6188_v11 = vld [vmem:[#allocation42_spill] sm:$0xff] }
 0x798   :  { %v2467_v63 = vadd.f32 %v3713_v55, %v2418_v33  ;;  %v2421_v27 = vadd.f32 %v3688_v25, %v2372_v38 }
 0x79a   :  { %v2470_v17 = vadd.f32 %v3716_v58, %v2421_v27 }
 0x79c   :  { %v3827_v13 = vpack.c.bf16 %v2470_v17, %v2467_v63 }
 0x79e   :  { %3828 = vmatpush3.bf16.msra.mxu1 %v3827_v13 }
 0x79f   :  { %3426 = vmatprep.subr.msk.bf16.mxu1 %vm6182_vm11, %v6066_v23  ;;  %vm6200_vm11 = vmmov %vm6198_vm5 }
 0x7a1   :  { %3782 = vmatmul.mubr.msk.f32.vlgmr.msra.gmra.mrb[22].mxu1 %vm6183_vm14, %v4756_v35  ;;  %v6190_v35 = vld [vmem:[#allocation44_spill] sm:$0xff]  ;;  %vm6201_vm14 = vmmov %vm6198_vm5 }
 0x7a2   :  { %3784 = vmatprep.mubr.msk.f32.mxu1 %vm6172_vm8, %v6032_v36  ;;  %3428 = vmatpush1.bf16.msk.msra.mxu1 %vm6184_vm1, %v6066_v23  ;;  %vm6202_vm1 = vmmov %vm6198_vm5 }
 0x7a3   :  { %3438 = vmatprep.subr.msk.bf16.mxu1 %vm6185_vm6, %v6066_v23  ;;  %vm6203_vm6 = vnez %v6044_v39  ;;  %v6211_v39 = vld [vmem:[#allocation49_spill] sm:$0xff] }
 0x7a5   :  { %3785 = vmatmul.mubr.msk.f32.gmra.mrb[56].mxu1 %vm6186_vm10, %v4765_v53  ;;  %vm6204_vm10 = vnez %v6051_v16 }
 0x7a6   :  { %3787 = vmatprep.mubr.msk.f32.mxu1 %vm6172_vm8, %v6032_v36 }
 0x7a9   :  { %3788 = vmatmul.mubr.msk.f32.gmra.mrb[58].mxu1 %vm6187_vm13, %v4774_v52  ;;  %vm6206_vm13 = vmmov %vm6202_vm1 }
 0x7aa   :  { %3790 = vmatprep.mubr.msk.f32.mxu1 %vm6172_vm8, %v6032_v36 }
 0x7ad   :  { %3791 = vmatmul.mubr.msk.f32.gmra.mrb[60].mxu1 %vm6189_vm7, %v6188_v11  ;;  %vm6207_vm7 = vmmov %vm6202_vm1 }
 0x7ae   :  { %3793 = vmatprep.mubr.msk.f32.mxu1 %vm6172_vm8, %v6032_v36  ;;  %vm6199_vm8 = vmmov %vm6198_vm5 }
 0x7b1   :  { %3794 = vmatmul.mubr.msk.f32.gmra.mrb[62].mxu1 %vm6191_vm15, %v6190_v35 }
 0x7b2   :  { %2899 = vmatprep.mubr.bf16.mxu1 %v6036_v3 }
 0x874   :  { %v2539_v53 = vpop.f32.mrb[22].mxu1 }
 0x875   :  { %v2540_v37 = vadd.f32 %v2539_v53, %v6192_v41  ;;  %v3783_v61 = vpop.f32.mrb[23].mxu1 }
 0x877   :  { %v2563_v58 = vmul.f32 0.5, %v2540_v37  ;;  %v2597_v52 = vrot.slane %v2540_v37, 4  ;;  %v6205_v37 = vld [vmem:[#allocation46_spill] sm:$0xff] }
 0x878   :  { %v2544_v25 = vpop.f32.mrb[56].mxu1 }
 0x879   :  { %3796 = vmatprep.subr.msk.mxu0 %vm6193_vm4, %v2597_v52  ;;  %2564 = vxpose.xlu1.b32.start.end [1/1] (short) (narrow) %v2563_v58, 16  ;;  %v3786_v50 = vpop.f32.mrb[57].mxu1  ;;  %v2545_v0 = vadd.f32 %v2544_v25, %v6196_v29  ;;  %v6208_v58 = vld [vmem:[#allocation48_spill] sm:$0xff]  ;;  %vm6212_vm4 = vnez %v6211_v39  ;;  %v6228_v39 = vld [vmem:[#allocation13_spill] sm:$0xff] }
 0x87a   :  { %3797 = vmatpush3.msk.msra.mxu0 %vm6194_vm12, %v2597_v52  ;;  %vm6209_vm15 = vnez %v6208_v58  ;;  %v6210_v52 = vld [vmem:[#allocation47_spill] sm:$0xff]  ;;  %vm6213_vm12 = vmmov %vm6202_vm1 }
 0x87c   :  { %v2549_v10 = vpop.f32.mrb[58].mxu1 }
 0x87d   :  { %v3789_v36 = vpop.f32.mrb[59].mxu1  ;;  %v2550_v41 = vadd.f32 %v2549_v10, %v4848_v56 }
 0x880   :  { %v2554_v38 = vpop.f32.mrb[60].mxu1 }
 0x881   :  { %v3792_v26 = vpop.f32.mrb[61].mxu1  ;;  %v2555_v61 = vadd.f32 %v2554_v38, %v6205_v37 }
 0x884   :  { %v2559_v46 = vpop.f32.mrb[62].mxu1 }
 0x885   :  { %v3795_v4 = vpop.f32.mrb[63].mxu1  ;;  %v2560_v25 = vadd.f32 %v2559_v46, %v6210_v52  ;;  %v6227_v52 = vld [vmem:[#allocation11_spill] sm:$0xff] }
 0x8f9   :  { %v2580_v20 = vpop.trf.xlu1 }
 0x8fa   :  { %3798 = vmatprep.mubr.msk.f32.mxu0 %vm6195_vm0, %v2580_v20  ;;  %vm6214_vm0 = vmmov %vm6202_vm1 }
 0x8fd   :  { %v2581_v6 = vpop.trf.xlu1 }
 0x8fe   :  { %3799 = vmatmul.mubr.msk.f32.vlgmr.msra.gmra.mrb[26].mxu0 %vm6197_vm2, %v2581_v6  ;;  %vm6215_vm2 = vmmov %vm6214_vm0 }
 0x8ff   :  { %3805 = vmatprep.mubr.msk.f32.mxu0 %vm6198_vm5, %v2545_v0  ;;  %vm6216_vm5 = vmmov %vm6214_vm0 }
 0x9d1   :  { %v3800_v42 = vpop.f32.mrb[26].mxu0 }
 0x9d2   :  { %v2672_v59 = vpop.f32.mrb[27].mxu0  ;;  %v2684_v1 = vsel %vm6199_vm8, %v3800_v42, -inf  ;;  %vm6217_vm8 = vmmov %vm6214_vm0 }
 0x9d3   :  { %2685 = vmax.xlane.f32.xlu1 %v2684_v1  ;;  %v2681_v30 = vsel %vm6200_vm11, %v2672_v59, -inf  ;;  %vm6218_vm11 = vmmov %vm6214_vm0 }
 0x9d4   :  { %2682 = vmax.xlane.f32.xlu0 %v2681_v30 }
 0xa60   :  { %v2686_v62 = vpop.xlane.xlu1 %2685 }
 0xa61   :  { %v2688_v12 = vsub.f32 %v3800_v42, %v2686_v62  ;;  %v2683_v28 = vpop.xlane.xlu0 %2682 }
 0xa62   :  { %v2687_v40 = vsub.f32 %v2672_v59, %v2683_v28 }
 0xa63   :  { %v2691_v55 = vmul.f32 1.442695, %v2688_v12 }
 0xa64   :  { %v2689_v2 = vmul.f32 1.442695, %v2687_v40 }
 0xa66   :  { %3851 = vpow2.f32 %v2689_v2 }
 0xa67   :  { %3853 = vpow2.f32 %v2691_v55 }
 0xa70   :  { %v3852_v24 = vpop.eup %3851 }
 0xa71   :  { %v2693_v31 = vsel %vm6201_vm14, %v3852_v24, 0.0  ;;  %v3854_v18 = vpop.eup %3853  ;;  %vm6221_vm14 = vmmov %vm6214_vm0 }
 0xa72   :  { %2694 = vadd.xlane.f32.xlu0 %v2693_v31  ;;  %v2696_v33 = vsel %vm6202_vm1, %v3854_v18, 0.0 }
 0xa76   :  { %2697 = vadd.xlane.f32.xlu0 %v2696_v33 }
 0xaff   :  { %v2695_v63 = vpop.xlane.xlu0 %2694 }
 0xb00   :  { %3855 = vrcp.f32 %v2695_v63 }
 0xb03   :  { %v2698_v27 = vpop.xlane.xlu0 %2697 }
 0xb04   :  { %3857 = vrcp.f32 %v2698_v27 }
 0xb0a   :  { %v3856_v17 = vpop.eup %3855 }
 0xb0b   :  { %v2701_v11 = vmul.f32 %v3856_v17, %v3852_v24  ;;  %v6223_v17 = vld [vmem:[#allocation5_spill] sm:$0xff] }
 0xb0e   :  { %v3858_v13 = vpop.eup %3857 }
 0xb0f   :  { %v2702_v35 = vmul.f32 %v3858_v13, %v3854_v18  ;;  %v6222_v18 = vld [vmem:[#allocation3_spill] sm:$0xff]  ;;  %v6224_v13 = vld [vmem:[#allocation6_spill] sm:$0xff] }
 0xb11   :  { %v3829_v53 = vpack.c.bf16 %v2702_v35, %v2701_v11 }
 0xb13   :  { %3831 = vmatprep.subr.msk.bf16.mxu0 %vm6203_vm6, %v3829_v53 }
 0xb14   :  { %3834 = vmatpush3.bf16.xpose.msk.msra.mxu0 %vm6203_vm6, %v3829_v53 }
 0xb15   :  { %3420 = vmatprep.subr.msk.bf16.mxu0 %vm6204_vm10, %v6066_v23 }
 0xb1b   :  { %3806 = vmatmul.mubr.msk.f32.vlgmr.msra.gmra.mrb[60].mxu0 %vm6206_vm13, %v2550_v41  ;;  %v6226_v41 = vld [vmem:[#allocation4_spill] sm:$0xff] }
 0xb1c   :  { %3808 = vmatprep.mubr.msk.f32.mxu0 %vm6207_vm7, %v2555_v61  ;;  %3422 = vmatpush1.bf16.msk.msra.mxu0 %vm6209_vm15, %v6066_v23 }
 0xb1d   :  { %3432 = vmatprep.subr.msk.bf16.mxu0 %vm6212_vm4, %v6066_v23 }
 0xb1f   :  { %3809 = vmatmul.mubr.msk.f32.gmra.mrb[62].mxu0 %vm6213_vm12, %v2560_v25 }
 0xb20   :  { %2846 = vmatprep.mubr.bf16.mxu0 %v6036_v3 }
 0xbee   :  { %v3807_v56 = vpop.f32.mrb[60].mxu0 }
 0xbef   :  { %v2787_v16 = vpop.f32.mrb[61].mxu0 }
 0xbf0   :  { %v2806_v50 = vpack.c.bf16 %v3807_v56, %v2787_v16 }
 0xbf2   :  { %v3810_v10 = vpop.f32.mrb[62].mxu0  ;;  %3423 = vmatmul.mubr.msk.bf16.vlgmr.msra.gmra.mrb[64].mxu0 %vm6214_vm0, %v2806_v50  ;;  %3429 = vmatmul.mubr.msk.bf16.vlgmr.msra.gmra.mrb[64].mxu1 %vm6215_vm2, %v2806_v50 }
 0xbf3   :  { %v2797_v36 = vpop.f32.mrb[63].mxu0  ;;  %3434 = vmatpush1.bf16.msk.msra.mxu0 %vm4920_vm3, %v6066_v23  ;;  %3440 = vmatpush1.bf16.msk.msra.mxu1 %vm4924_vm9, %v6066_v23  ;;  %vm6219_vm3 = vmmov %vm6214_vm0 }
 0xbf4   :  { %v2807_v38 = vpack.c.bf16 %v3810_v10, %v2797_v36  ;;  %2856 = vmatprep.mubr.bf16.mxu0 %v6036_v3  ;;  %2909 = vmatprep.mubr.bf16.mxu1 %v6036_v3  ;;  %vm6220_vm9 = vmmov %vm6214_vm0  ;;  %v6229_v10 = vld [vmem:[#allocation7_spill] sm:$0xff] }
 0xbfa   :  { %3424 = vmatmul.mubr.msk.bf16.gmra.mrb[68].mxu0 %vm6216_vm5, %v2807_v38  ;;  %3430 = vmatmul.mubr.msk.bf16.gmra.mrb[68].mxu1 %vm6217_vm8, %v2807_v38 }
 0xbfb   :  { %2952 = vmatprep.mubr.bf16.mxu0 %v6036_v3  ;;  %3005 = vmatprep.mubr.bf16.mxu1 %v6036_v3 }
 0xc02   :  { %3435 = vmatmul.mubr.msk.bf16.vlgmr.msra.gmra.mrb[72].mxu0 %vm6218_vm11, %v2806_v50  ;;  %3441 = vmatmul.mubr.msk.bf16.vlgmr.msra.gmra.mrb[72].mxu1 %vm6219_vm3, %v2806_v50 }
 0xc03   :  { %2962 = vmatprep.mubr.bf16.mxu0 %v6036_v3  ;;  %3015 = vmatprep.mubr.bf16.mxu1 %v6036_v3 }
 0xc0a   :  { %3436 = vmatmul.mubr.msk.bf16.gmra.mrb[76].mxu0 %vm6220_vm9, %v2807_v38  ;;  %3442 = vmatmul.mubr.msk.bf16.gmra.mrb[76].mxu1 %vm6221_vm14, %v2807_v38  ;;  %v6230_v38 = vld [vmem:[#allocation9_spill] sm:$0xff] }
 0xcc5   :  { %v2848_v14 = vpop.f32.mrb[64].mxu0  ;;  %v2901_v48 = vpop.f32.mrb[64].mxu1 }
 0xcc6   :  { %v2849_v23 = vadd.f32 %v5053_v44, %v2848_v14  ;;  %v2902_v26 = vadd.f32 %v5069_v22, %v2901_v48  ;;  %v2850_v46 = vpop.f32.mrb[65].mxu0  ;;  %v2903_v4 = vpop.f32.mrb[65].mxu1 }
 0xcc7   :  { %v2851_v20 = vadd.f32 %v4967_v7, %v2850_v46  ;;  %v2904_v29 = vadd.f32 %v4977_v49, %v2903_v4  ;;  %v2852_v0 = vpop.f32.mrb[66].mxu0  ;;  %v2905_v6 = vpop.f32.mrb[66].mxu1  ;;  %v6232_v4 = vld [vmem:[#allocation14_spill] sm:$0xff] }
 0xcc8   :  { %3443 = vst [vmem:[%s5720_s3 + $0x100] sm:$0xff] %v2849_v23  ;;  %3445 = vst [vmem:[%s5720_s3 + $0x110] sm:$0xff] %v2902_v26  ;;  %v2853_v3 = vadd.f32 %v5064_v5, %v2852_v0  ;;  %v2906_v44 = vadd.f32 %v5074_v34, %v2905_v6  ;;  %v2854_v22 = vpop.f32.mrb[67].mxu0  ;;  %v2907_v42 = vpop.f32.mrb[67].mxu1  ;;  %v6231_v26 = vld [vmem:[#allocation12_spill] sm:$0xff] }
 0xcc9   :  { %3444 = vst [vmem:[%s5720_s3 + $0x108] sm:$0xff] %v2851_v20  ;;  %3446 = vst [vmem:[%s5720_s3 + $0x118] sm:$0xff] %v2904_v29  ;;  %v2855_v7 = vadd.f32 %v4972_v45, %v2854_v22  ;;  %v2908_v49 = vadd.f32 %v4982_v60, %v2907_v42  ;;  %v6233_v6 = vld [vmem:[#allocation8_spill] sm:$0xff] }
 0xcca   :  { %3451 = vst [vmem:[%s5720_s3 + $0x140] sm:$0xff] %v2853_v3  ;;  %3453 = vst [vmem:[%s5720_s3 + $0x150] sm:$0xff] %v2906_v44  ;;  %v6234_v44 = vld [vmem:[#allocation10_spill] sm:$0xff] }
 0xccb   :  { %3452 = vst [vmem:[%s5720_s3 + $0x148] sm:$0xff] %v2855_v7  ;;  %3454 = vst [vmem:[%s5720_s3 + $0x158] sm:$0xff] %v2908_v49 }
 0xccd   :  { %v2858_v5 = vpop.f32.mrb[68].mxu0  ;;  %v2911_v45 = vpop.f32.mrb[68].mxu1 }
 0xcce   :  { %v2859_v60 = vadd.f32 %v5125_v47, %v2858_v5  ;;  %v2912_v34 = vadd.f32 %v5141_v15, %v2911_v45  ;;  %v2860_v59 = vpop.f32.mrb[69].mxu0  ;;  %v2913_v1 = vpop.f32.mrb[69].mxu1 }
 0xccf   :  { %v2861_v30 = vadd.f32 %v5085_v57, %v2860_v59  ;;  %v2914_v62 = vadd.f32 %v5099_v8, %v2913_v1  ;;  %v2862_v12 = vpop.f32.mrb[70].mxu0  ;;  %v2915_v28 = vpop.f32.mrb[70].mxu1 }
 0xcd0   :  { %3459 = vst [vmem:[%s5720_s3 + $0x180] sm:$0xff] %v2859_v60  ;;  %3461 = vst [vmem:[%s5720_s3 + $0x190] sm:$0xff] %v2912_v34  ;;  %v2863_v47 = vadd.f32 %v5136_v54, %v2862_v12  ;;  %v2916_v15 = vadd.f32 %v5146_v32, %v2915_v28  ;;  %v2864_v40 = vpop.f32.mrb[71].mxu0  ;;  %v2917_v55 = vpop.f32.mrb[71].mxu1 }
 0xcd1   :  { %3460 = vst [vmem:[%s5720_s3 + $0x188] sm:$0xff] %v2861_v30  ;;  %3462 = vst [vmem:[%s5720_s3 + $0x198] sm:$0xff] %v2914_v62  ;;  %v2865_v57 = vadd.f32 %v5094_v51, %v2864_v40  ;;  %v2918_v8 = vadd.f32 %v5104_v21, %v2917_v55 }
 0xcd2   :  { %3467 = vst [vmem:[%s5720_s3 + $0x1c0] sm:$0xff] %v2863_v47  ;;  %3469 = vst [vmem:[%s5720_s3 + $0x1d0] sm:$0xff] %v2916_v15 }
 0xcd3   :  { %3468 = vst [vmem:[%s5720_s3 + $0x1c8] sm:$0xff] %v2865_v57  ;;  %3470 = vst [vmem:[%s5720_s3 + $0x1d8] sm:$0xff] %v2918_v8 }
 0xcd5   :  { %v2954_v54 = vpop.f32.mrb[72].mxu0  ;;  %v3007_v51 = vpop.f32.mrb[72].mxu1 }
 0xcd6   :  { %v2955_v21 = vadd.f32 %v5245_v9, %v2954_v54  ;;  %v3008_v32 = vadd.f32 %v5261_v19, %v3007_v51  ;;  %v2956_v2 = vpop.f32.mrb[73].mxu0  ;;  %v3009_v24 = vpop.f32.mrb[73].mxu1 }
 0xcd7   :  { %v2957_v31 = vadd.f32 %v5157_v43, %v2956_v2  ;;  %v3010_v33 = vadd.f32 %v6222_v18, %v3009_v24  ;;  %v2958_v63 = vpop.f32.mrb[74].mxu0  ;;  %v3011_v27 = vpop.f32.mrb[74].mxu1  ;;  %v6225_v43 = vld [vmem:[#allocation2_spill] sm:$0xff] }
 0xcd8   :  { %3447 = vst [vmem:[%s5720_s3 + $0x120] sm:$0xff] %v2955_v21  ;;  %3449 = vst [vmem:[%s5720_s3 + $0x130] sm:$0xff] %v3008_v32  ;;  %v2959_v9 = vadd.f32 %v6223_v17, %v2958_v63  ;;  %v3012_v19 = vadd.f32 %v6224_v13, %v3011_v27  ;;  %v2960_v11 = vpop.f32.mrb[75].mxu0  ;;  %v3013_v35 = vpop.f32.mrb[75].mxu1 }
 0xcd9   :  { %3448 = vst [vmem:[%s5720_s3 + $0x128] sm:$0xff] %v2957_v31  ;;  %3450 = vst [vmem:[%s5720_s3 + $0x138] sm:$0xff] %v3010_v33  ;;  %v2961_v53 = vadd.f32 %v6225_v43, %v2960_v11  ;;  %v3014_v37 = vadd.f32 %v6226_v41, %v3013_v35 }
 0xcda   :  { %3455 = vst [vmem:[%s5720_s3 + $0x160] sm:$0xff] %v2959_v9  ;;  %3457 = vst [vmem:[%s5720_s3 + $0x170] sm:$0xff] %v3012_v19 }
 0xcdb   :  { %3456 = vst [vmem:[%s5720_s3 + $0x168] sm:$0xff] %v2961_v53  ;;  %3458 = vst [vmem:[%s5720_s3 + $0x178] sm:$0xff] %v3014_v37 }
 0xcdd   :  { %v2964_v61 = vpop.f32.mrb[76].mxu0  ;;  %v3017_v58 = vpop.f32.mrb[76].mxu1 }
 0xcde   :  { %v2965_v25 = vadd.f32 %v6227_v52, %v2964_v61  ;;  %v3018_v56 = vadd.f32 %v6228_v39, %v3017_v58  ;;  %v2966_v16 = vpop.f32.mrb[77].mxu0  ;;  %v3019_v50 = vpop.f32.mrb[77].mxu1 }
 0xcdf   :  { %v2967_v36 = vadd.f32 %v6229_v10, %v2966_v16  ;;  %v3020_v14 = vadd.f32 %v6230_v38, %v3019_v50  ;;  %v2968_v48 = vpop.f32.mrb[78].mxu0  ;;  %v3021_v23 = vpop.f32.mrb[78].mxu1 }
 0xce0   :  { %3463 = vst [vmem:[%s5720_s3 + $0x1a0] sm:$0xff] %v2965_v25  ;;  %3465 = vst [vmem:[%s5720_s3 + $0x1b0] sm:$0xff] %v3018_v56  ;;  %v2969_v46 = vadd.f32 %v6231_v26, %v2968_v48  ;;  %v3022_v20 = vadd.f32 %v6232_v4, %v3021_v23  ;;  %v2970_v29 = vpop.f32.mrb[79].mxu0  ;;  %v3023_v0 = vpop.f32.mrb[79].mxu1 }
 0xce1   :  { %3464 = vst [vmem:[%s5720_s3 + $0x1a8] sm:$0xff] %v2967_v36  ;;  %3466 = vst [vmem:[%s5720_s3 + $0x1b8] sm:$0xff] %v3020_v14  ;;  %v2971_v3 = vadd.f32 %v6233_v6, %v2970_v29  ;;  %v3024_v22 = vadd.f32 %v6234_v44, %v3023_v0 }
 0xce2   :  { %3471 = vst [vmem:[%s5720_s3 + $0x1e0] sm:$0xff] %v2969_v46  ;;  %3473 = vst [vmem:[%s5720_s3 + $0x1f0] sm:$0xff] %v3022_v20 }
 0xce3   :  { %3472 = vst [vmem:[%s5720_s3 + $0x1e8] sm:$0xff] %v2971_v3  ;;  %3474 = vst [vmem:[%s5720_s3 + $0x1f8] sm:$0xff] %v3024_v22 }

</bundles_post_ra>
